<compile_context>
chip_gen: v6e
topology: v6e:2x2x1
jax: 0.10.0
libtpu: 0.0.40
codegen_flags: <defaults>
</compile_context>

<pallas_src>
import functools

import jax
import jax.numpy as jnp
from jax.experimental import pallas as pl
from jax.experimental.pallas import tpu as pltpu

EPS = 1e-5


def _iota_mat(shape, fn):
    """Tiny constant selector matrices, built on-chip with 2-D iota (no DMA)."""
    i = jax.lax.broadcasted_iota(jnp.int32, shape, 0)
    j = jax.lax.broadcasted_iota(jnp.int32, shape, 1)
    return fn(i, j).astype(jnp.float32)


def _bn_relu_packed(a, gamma, beta, fold, bfold, m):
    """Training-mode BatchNorm (biased batch variance) + ReLU on a lane-packed
    (rows, W*C) activation. Stats are one pass (sum / sum-of-squares, f32) and
    the apply is a single multiply-add: y = a * s + t."""
    s1 = jnp.dot(jnp.sum(a, axis=0, keepdims=True), fold,
                 preferred_element_type=jnp.float32)            # (1, C)
    s2 = jnp.dot(jnp.sum(a * a, axis=0, keepdims=True), fold,
                 preferred_element_type=jnp.float32)            # (1, C)
    mean = s1 / m
    var = jnp.maximum(s2 / m - mean * mean, 0.0)                # guard cancellation -> no NaN
    scale = gamma * jax.lax.rsqrt(var + EPS)
    shift = beta - mean * scale
    scale_pk = jnp.dot(scale, bfold, preferred_element_type=jnp.float32)   # (1, W*C)
    shift_pk = jnp.dot(shift, bfold, preferred_element_type=jnp.float32)   # (1, W*C)
    return jnp.maximum(a * scale_pk + shift_pk, 0.0)


def preact_bottleneck_kernel(x_ref, bn1_g, bn1_b, w1_ref, bn2_g, bn2_b, w2_ref,
                             bn3_g, bn3_b, w3_ref, fc1_w, fc1_b, fc2_w, fc2_b,
                             wsc_ref, out_ref, *, n, h, w, cin, planes, has_shortcut):
    nr = n * h
    c3 = 4 * planes
    wc3 = w * c3
    m = float(n * h * w)          # BN statistics span the whole batch
    hw = float(h * w)
    f32 = jnp.float32
    bf16 = jnp.bfloat16

    # ---- tiny constant fold/broadcast matrices (per-channel <-> lane-packed) -----
    fold_in = _iota_mat((w * cin, cin), lambda i, j: (i % cin) == j)
    bfold_in = _iota_mat((cin, w * cin), lambda i, j: i == (j % cin))
    fold_p = _iota_mat((w * planes, planes), lambda i, j: (i % planes) == j)
    bfold_p = _iota_mat((planes, w * planes), lambda i, j: i == (j % planes))
    fold_e = _iota_mat((wc3, c3), lambda i, j: (i % c3) == j)
    bfold_e = _iota_mat((c3, wc3), lambda i, j: i == (j % c3))

    x = x_ref[...]                                              # (N*H, W*Cin), lane-dense f32

    # out = relu(bn1(x))
    o1 = _bn_relu_packed(x, bn1_g[...], bn1_b[...], fold_in, bfold_in, m)
    o1b = o1.astype(bf16)

    # shortcut: 1x1 conv of relu(bn1(x)) when present, else identity of x
    if has_shortcut:
        shortcut = jnp.dot(o1b, wsc_ref[...], preferred_element_type=f32)
    else:
        shortcut = x

    # conv1 (1x1): single bf16 matmul, K = W*Cin
    y1 = jnp.dot(o1b, w1_ref[...], preferred_element_type=f32)          # (NR, W*P)

    # conv2 (3x3, pad=1): vertical taps via sublane roll + border mask (XLU/VPU),
    # then three accumulated bf16 matmuls against the per-ky packed weights.
    a2 = _bn_relu_packed(y1, bn2_g[...], bn2_b[...], fold_p, bfold_p, m)
    rows = jax.lax.broadcasted_iota(jnp.int32, (nr, 1), 0)
    top = (rows % h) == 0                   # first row of each image
    bot = (rows % h) == (h - 1)             # last row of each image
    s_dn = jnp.where(top, 0.0, pltpu.roll(a2, shift=1, axis=0))         # row i <- a2[i-1]
    s_up = jnp.where(bot, 0.0, pltpu.roll(a2, shift=nr - 1, axis=0))    # row i <- a2[i+1]
    y2 = (jnp.dot(s_dn.astype(bf16), w2_ref[0], preferred_element_type=f32)
          + jnp.dot(a2.astype(bf16), w2_ref[1], preferred_element_type=f32)
          + jnp.dot(s_up.astype(bf16), w2_ref[2], preferred_element_type=f32))

    # conv3 (1x1): single bf16 matmul, K = W*planes
    a3 = _bn_relu_packed(y2, bn3_g[...], bn3_b[...], fold_p, bfold_p, m)
    y3 = jnp.dot(a3.astype(bf16), w3_ref[...], preferred_element_type=f32)   # (NR, W*C3)

    # Squeeze-and-excitation: global average pool (sublane reduction over H,
    # channel fold over W) -> fc1 + relu -> fc2 + tanh -> broadcast multiply.
    y3_img = y3.reshape(n, h, wc3)                                      # leading-dim split only
    pooled_wc = jnp.sum(y3_img, axis=1)                                 # (N, W*C3)
    pooled = jnp.dot(pooled_wc, fold_e, preferred_element_type=f32) * (1.0 / hw)   # (N, C3)
    h1 = jnp.maximum(
        jnp.dot(pooled, fc1_w[...], preferred_element_type=f32) + fc1_b[...], 0.0)
    se = jnp.tanh(jnp.dot(h1, fc2_w[...], preferred_element_type=f32) + fc2_b[...])  # (N, C3)
    se_pk = jnp.dot(se, bfold_e, preferred_element_type=f32)            # (N, W*C3)

    # out = conv3_out * se + shortcut ; lane-dense store (last dim multiple of 128)
    out_ref[...] = (y3_img * se_pk[:, None, :]).reshape(nr, wc3) + shortcut


def pack_params(params, *, width, cin, stride=1):
    """One-time weight packing (hoist out of the per-call path / cache under jit)."""
    assert stride == 1, "TODO(synk): stride != 1 not implemented"
    planes = params["conv1_w"].shape[0]
    c3 = 4 * planes
    has_shortcut = (stride != 1) or (cin != c3)
    eye_w = jnp.eye(width, dtype=jnp.float32)

    def pack_1x1(wt):
        # (Cout, Cin, 1, 1) -> block-diagonal (W*Cin, W*Cout), bf16 MXU operand.
        return jnp.kron(eye_w, wt[:, :, 0, 0].T.astype(jnp.float32)).astype(jnp.bfloat16)

    def pack_3x3_ky(wt, ky):
        # (Cout, Cin, 3, 3), one ky tap -> banded (W*Cin, W*Cout) handling the kx
        # taps and the W-border zero padding.
        b = sum(jnp.kron(jnp.eye(width, k=1 - kx, dtype=jnp.float32),
                         wt[:, :, ky, kx].T.astype(jnp.float32))
                for kx in range(3))
        return b.astype(jnp.bfloat16)

    w2 = jnp.stack([pack_3x3_ky(params["conv2_w"], ky) for ky in range(3)], axis=0)
    wsc = (pack_1x1(params["shortcut_w"]) if has_shortcut
           else jnp.zeros((8, 128), jnp.bfloat16))

    packed = dict(
        planes=planes, has_shortcut=has_shortcut,
        bn1_g=params["bn1_g"].reshape(1, cin).astype(jnp.float32),
        bn1_b=params["bn1_b"].reshape(1, cin).astype(jnp.float32),
        w1=pack_1x1(params["conv1_w"]),
        bn2_g=params["bn2_g"].reshape(1, planes).astype(jnp.float32),
        bn2_b=params["bn2_b"].reshape(1, planes).astype(jnp.float32),
        w2=w2,
        bn3_g=params["bn3_g"].reshape(1, planes).astype(jnp.float32),
        bn3_b=params["bn3_b"].reshape(1, planes).astype(jnp.float32),
        w3=pack_1x1(params["conv3_w"]),
        fc1_w=params["fc1_w"][:, :, 0, 0].T.astype(jnp.float32),
        fc1_b=params["fc1_b"].reshape(1, -1).astype(jnp.float32),
        fc2_w=params["fc2_w"][:, :, 0, 0].T.astype(jnp.float32),
        fc2_b=params["fc2_b"].reshape(1, -1).astype(jnp.float32),
        wsc=wsc,
    )
    return packed


def preact_bottleneck_forward(x_nchw, packed):
    n, cin, h, w = x_nchw.shape
    planes = packed["planes"]
    c3 = 4 * planes
    has_shortcut = packed["has_shortcut"]

    # NCHW -> packed (N*H, W*Cin), lane-dense
    x_pk = jnp.transpose(x_nchw, (0, 2, 3, 1)).astype(jnp.float32).reshape(n * h, w * cin)

    args = (
        x_pk,
        packed["bn1_g"], packed["bn1_b"], packed["w1"],
        packed["bn2_g"], packed["bn2_b"], packed["w2"],
        packed["bn3_g"], packed["bn3_b"], packed["w3"],
        packed["fc1_w"], packed["fc1_b"], packed["fc2_w"], packed["fc2_b"],
        packed["wsc"],
    )

    kernel = functools.partial(preact_bottleneck_kernel, n=n, h=h, w=w,
                               cin=cin, planes=planes, has_shortcut=has_shortcut)
    vmem = pl.BlockSpec(memory_space=pltpu.MemorySpace.VMEM)
    out_pk = pl.pallas_call(
        kernel,
        out_shape=jax.ShapeDtypeStruct((n * h, w * c3), jnp.float32),
        in_specs=[vmem] * len(args),
        out_specs=vmem,
        compiler_params=pltpu.CompilerParams(vmem_limit_bytes=32 * 1024 * 1024),
    )(*args)

    return jnp.transpose(out_pk.reshape(n, h, w, c3), (0, 3, 1, 2))   # back to NCHW


def reference_forward(x, params, stride=1):
    """Pure-JAX reference mirroring the PyTorch PreActBottleneck forward (NCHW)."""
    def bn(t, g, b):
        mean = jnp.mean(t, axis=(0, 2, 3), keepdims=True)
        var = jnp.var(t, axis=(0, 2, 3), keepdims=True)
        return (t - mean) / jnp.sqrt(var + EPS) * g.reshape(1, -1, 1, 1) + b.reshape(1, -1, 1, 1)

    def conv(t, wt, stride=1, pad=0):
        return jax.lax.conv_general_dilated(
            t, wt, (stride, stride), [(pad, pad), (pad, pad)],
            dimension_numbers=("NCHW", "OIHW", "NCHW"),
            precision=jax.lax.Precision.HIGHEST)

    c3 = params["conv3_w"].shape[0]
    out = jax.nn.relu(bn(x, params["bn1_g"], params["bn1_b"]))
    if stride != 1 or x.shape[1] != c3:
        shortcut = conv(out, params["shortcut_w"], stride)
    else:
        shortcut = x
    out = conv(out, params["conv1_w"])
    out = conv(jax.nn.relu(bn(out, params["bn2_g"], params["bn2_b"])), params["conv2_w"], stride, 1)
    out = conv(jax.nn.relu(bn(out, params["bn3_g"], params["bn3_b"])), params["conv3_w"])
    wse = jnp.mean(out, axis=(2, 3), keepdims=True)
    wse = jax.nn.relu(conv(wse, params["fc1_w"]) + params["fc1_b"].reshape(1, -1, 1, 1))
    wse = jnp.tanh(conv(wse, params["fc2_w"]) + params["fc2_b"].reshape(1, -1, 1, 1))
    return out * wse + shortcut


if __name__ == "__main__":
    # in_planes=32, planes=16, expansion*planes=64, stride=1 -> shortcut is a 1x1 conv
    N, Cin, H, W = 2, 32, 8, 8
    planes = 16
    c3 = 4 * planes
    squeeze = c3 * 2 // 16   # = 8

    keys = jax.random.split(jax.random.PRNGKey(0), 16)
    params = {
        "bn1_g": 1.0 + 0.1 * jax.random.normal(keys[0], (Cin,), jnp.float32),
        "bn1_b": 0.1 * jax.random.normal(keys[1], (Cin,), jnp.float32),
        "conv1_w": 0.1 * jax.random.normal(keys[2], (planes, Cin, 1, 1), jnp.float32),
        "bn2_g": 1.0 + 0.1 * jax.random.normal(keys[3], (planes,), jnp.float32),
        "bn2_b": 0.1 * jax.random.normal(keys[4], (planes,), jnp.float32),
        "conv2_w": 0.1 * jax.random.normal(keys[5], (planes, planes, 3, 3), jnp.float32),
        "bn3_g": 1.0 + 0.1 * jax.random.normal(keys[6], (planes,), jnp.float32),
        "bn3_b": 0.1 * jax.random.normal(keys[7], (planes,), jnp.float32),
        "conv3_w": 0.1 * jax.random.normal(keys[8], (c3, planes, 1, 1), jnp.float32),
        "shortcut_w": 0.1 * jax.random.normal(keys[9], (c3, Cin, 1, 1), jnp.float32),
        "fc1_w": 0.3 * jax.random.normal(keys[10], (squeeze, c3, 1, 1), jnp.float32),
        "fc1_b": 0.1 * jax.random.normal(keys[11], (squeeze,), jnp.float32),
        "fc2_w": 0.3 * jax.random.normal(keys[12], (c3, squeeze, 1, 1), jnp.float32),
        "fc2_b": 0.1 * jax.random.normal(keys[13], (c3,), jnp.float32),
    }
    x = jax.random.normal(keys[14], (N, Cin, H, W), jnp.float32)

    packed = pack_params(params, width=W, cin=Cin, stride=1)   # pack once, reuse per call
    out = jax.block_until_ready(preact_bottleneck_forward(x, packed))
    ref = jax.block_until_ready(reference_forward(x, params))

    assert out.shape == (N, c3, H, W)
    # Conv matmuls run with bf16 operands (f32 accumulation), so tolerances reflect
    # bf16 operand rounding relative to the f32 HIGHEST-precision reference.
    max_err = float(jnp.max(jnp.abs(out - ref)))
    rel_err = float(jnp.linalg.norm(out - ref) / (jnp.linalg.norm(ref) + 1e-12))
    assert max_err < 8e-2 and rel_err < 2e-2, \
        f"mismatch vs reference: max_err={max_err}, rel_err={rel_err}"

    print("KERNEL_OK")
</pallas_src>

<mosaic_0001>
module attributes {stable_mosaic.version = 11 : i64} {
  func.func @preact_bottleneck_kernel(%arg0: memref<16x256xf32, #tpu.memory_space<vmem>>, %arg1: memref<1x32xf32, #tpu.memory_space<vmem>>, %arg2: memref<1x32xf32, #tpu.memory_space<vmem>>, %arg3: memref<256x128xbf16, #tpu.memory_space<vmem>>, %arg4: memref<1x16xf32, #tpu.memory_space<vmem>>, %arg5: memref<1x16xf32, #tpu.memory_space<vmem>>, %arg6: memref<3x128x128xbf16, #tpu.memory_space<vmem>>, %arg7: memref<1x16xf32, #tpu.memory_space<vmem>>, %arg8: memref<1x16xf32, #tpu.memory_space<vmem>>, %arg9: memref<128x512xbf16, #tpu.memory_space<vmem>>, %arg10: memref<64x8xf32, #tpu.memory_space<vmem>>, %arg11: memref<1x8xf32, #tpu.memory_space<vmem>>, %arg12: memref<8x64xf32, #tpu.memory_space<vmem>>, %arg13: memref<1x64xf32, #tpu.memory_space<vmem>>, %arg14: memref<256x512xbf16, #tpu.memory_space<vmem>>, %arg15: memref<16x512xf32, #tpu.memory_space<vmem>>) attributes {dimension_semantics = [], scalar_prefetch = 0 : i64, scratch_operands = 0 : i64, tpu.core_type = #tpu.core_type<tc>} {
    %0 = tpu.iota {dimensions = array<i32: 0>} : vector<256x32xi32>
    %1 = tpu.iota {dimensions = array<i32: 1>} : vector<256x32xi32>
    %c32_i32 = arith.constant 32 : i32
    %c0_i32 = arith.constant 0 : i32
    %2 = arith.cmpi eq, %c32_i32, %c0_i32 : i32
    %c1_i32 = arith.constant 1 : i32
    %3 = arith.select %2, %c1_i32, %c32_i32 : i32
    %4 = vector.broadcast %3 : i32 to vector<256x32xi32>
    %5 = arith.remsi %0, %4 : vector<256x32xi32>
    %c0_i32_0 = arith.constant 0 : i32
    %6 = vector.broadcast %c0_i32_0 : i32 to vector<256x32xi32>
    %7 = arith.cmpi ne, %5, %6 : vector<256x32xi32>
    %c0_i32_1 = arith.constant 0 : i32
    %8 = vector.broadcast %c0_i32_1 : i32 to vector<256x32xi32>
    %9 = arith.cmpi slt, %5, %8 : vector<256x32xi32>
    %c0_i32_2 = arith.constant 0 : i32
    %10 = arith.cmpi slt, %3, %c0_i32_2 : i32
    %11 = vector.broadcast %10 : i1 to vector<256x32xi1>
    %12 = vector.broadcast %11 : vector<256x32xi1> to vector<256x32xi1>
    %13 = arith.xori %9, %12 : vector<256x32xi1>
    %14 = arith.andi %13, %7 : vector<256x32xi1>
    %15 = vector.broadcast %3 : i32 to vector<256x32xi32>
    %16 = arith.addi %5, %15 : vector<256x32xi32>
    %17 = arith.select %14, %16, %5 : vector<256x32xi1>, vector<256x32xi32>
    %18 = arith.cmpi eq, %17, %1 : vector<256x32xi32>
    %19 = arith.extui %18 : vector<256x32xi1> to vector<256x32xi32>
    %20 = arith.sitofp %19 : vector<256x32xi32> to vector<256x32xf32>
    %21 = tpu.iota {dimensions = array<i32: 0>} : vector<32x256xi32>
    %22 = tpu.iota {dimensions = array<i32: 1>} : vector<32x256xi32>
    %c32_i32_3 = arith.constant 32 : i32
    %c0_i32_4 = arith.constant 0 : i32
    %23 = arith.cmpi eq, %c32_i32_3, %c0_i32_4 : i32
    %c1_i32_5 = arith.constant 1 : i32
    %24 = arith.select %23, %c1_i32_5, %c32_i32_3 : i32
    %25 = vector.broadcast %24 : i32 to vector<32x256xi32>
    %26 = arith.remsi %22, %25 : vector<32x256xi32>
    %c0_i32_6 = arith.constant 0 : i32
    %27 = vector.broadcast %c0_i32_6 : i32 to vector<32x256xi32>
    %28 = arith.cmpi ne, %26, %27 : vector<32x256xi32>
    %c0_i32_7 = arith.constant 0 : i32
    %29 = vector.broadcast %c0_i32_7 : i32 to vector<32x256xi32>
    %30 = arith.cmpi slt, %26, %29 : vector<32x256xi32>
    %c0_i32_8 = arith.constant 0 : i32
    %31 = arith.cmpi slt, %24, %c0_i32_8 : i32
    %32 = vector.broadcast %31 : i1 to vector<32x256xi1>
    %33 = vector.broadcast %32 : vector<32x256xi1> to vector<32x256xi1>
    %34 = arith.xori %30, %33 : vector<32x256xi1>
    %35 = arith.andi %34, %28 : vector<32x256xi1>
    %36 = vector.broadcast %24 : i32 to vector<32x256xi32>
    %37 = arith.addi %26, %36 : vector<32x256xi32>
    %38 = arith.select %35, %37, %26 : vector<32x256xi1>, vector<32x256xi32>
    %39 = arith.cmpi eq, %21, %38 : vector<32x256xi32>
    %40 = arith.extui %39 : vector<32x256xi1> to vector<32x256xi32>
    %41 = arith.sitofp %40 : vector<32x256xi32> to vector<32x256xf32>
    %42 = tpu.iota {dimensions = array<i32: 0>} : vector<128x16xi32>
    %43 = tpu.iota {dimensions = array<i32: 1>} : vector<128x16xi32>
    %c16_i32 = arith.constant 16 : i32
    %c0_i32_9 = arith.constant 0 : i32
    %44 = arith.cmpi eq, %c16_i32, %c0_i32_9 : i32
    %c1_i32_10 = arith.constant 1 : i32
    %45 = arith.select %44, %c1_i32_10, %c16_i32 : i32
    %46 = vector.broadcast %45 : i32 to vector<128x16xi32>
    %47 = arith.remsi %42, %46 : vector<128x16xi32>
    %c0_i32_11 = arith.constant 0 : i32
    %48 = vector.broadcast %c0_i32_11 : i32 to vector<128x16xi32>
    %49 = arith.cmpi ne, %47, %48 : vector<128x16xi32>
    %c0_i32_12 = arith.constant 0 : i32
    %50 = vector.broadcast %c0_i32_12 : i32 to vector<128x16xi32>
    %51 = arith.cmpi slt, %47, %50 : vector<128x16xi32>
    %c0_i32_13 = arith.constant 0 : i32
    %52 = arith.cmpi slt, %45, %c0_i32_13 : i32
    %53 = vector.broadcast %52 : i1 to vector<128x16xi1>
    %54 = vector.broadcast %53 : vector<128x16xi1> to vector<128x16xi1>
    %55 = arith.xori %51, %54 : vector<128x16xi1>
    %56 = arith.andi %55, %49 : vector<128x16xi1>
    %57 = vector.broadcast %45 : i32 to vector<128x16xi32>
    %58 = arith.addi %47, %57 : vector<128x16xi32>
    %59 = arith.select %56, %58, %47 : vector<128x16xi1>, vector<128x16xi32>
    %60 = arith.cmpi eq, %59, %43 : vector<128x16xi32>
    %61 = arith.extui %60 : vector<128x16xi1> to vector<128x16xi32>
    %62 = arith.sitofp %61 : vector<128x16xi32> to vector<128x16xf32>
    %63 = tpu.iota {dimensions = array<i32: 0>} : vector<16x128xi32>
    %64 = tpu.iota {dimensions = array<i32: 1>} : vector<16x128xi32>
    %c16_i32_14 = arith.constant 16 : i32
    %c0_i32_15 = arith.constant 0 : i32
    %65 = arith.cmpi eq, %c16_i32_14, %c0_i32_15 : i32
    %c1_i32_16 = arith.constant 1 : i32
    %66 = arith.select %65, %c1_i32_16, %c16_i32_14 : i32
    %67 = vector.broadcast %66 : i32 to vector<16x128xi32>
    %68 = arith.remsi %64, %67 : vector<16x128xi32>
    %c0_i32_17 = arith.constant 0 : i32
    %69 = vector.broadcast %c0_i32_17 : i32 to vector<16x128xi32>
    %70 = arith.cmpi ne, %68, %69 : vector<16x128xi32>
    %c0_i32_18 = arith.constant 0 : i32
    %71 = vector.broadcast %c0_i32_18 : i32 to vector<16x128xi32>
    %72 = arith.cmpi slt, %68, %71 : vector<16x128xi32>
    %c0_i32_19 = arith.constant 0 : i32
    %73 = arith.cmpi slt, %66, %c0_i32_19 : i32
    %74 = vector.broadcast %73 : i1 to vector<16x128xi1>
    %75 = vector.broadcast %74 : vector<16x128xi1> to vector<16x128xi1>
    %76 = arith.xori %72, %75 : vector<16x128xi1>
    %77 = arith.andi %76, %70 : vector<16x128xi1>
    %78 = vector.broadcast %66 : i32 to vector<16x128xi32>
    %79 = arith.addi %68, %78 : vector<16x128xi32>
    %80 = arith.select %77, %79, %68 : vector<16x128xi1>, vector<16x128xi32>
    %81 = arith.cmpi eq, %63, %80 : vector<16x128xi32>
    %82 = arith.extui %81 : vector<16x128xi1> to vector<16x128xi32>
    %83 = arith.sitofp %82 : vector<16x128xi32> to vector<16x128xf32>
    %84 = tpu.iota {dimensions = array<i32: 0>} : vector<512x64xi32>
    %85 = tpu.iota {dimensions = array<i32: 1>} : vector<512x64xi32>
    %c64_i32 = arith.constant 64 : i32
    %c0_i32_20 = arith.constant 0 : i32
    %86 = arith.cmpi eq, %c64_i32, %c0_i32_20 : i32
    %c1_i32_21 = arith.constant 1 : i32
    %87 = arith.select %86, %c1_i32_21, %c64_i32 : i32
    %88 = vector.broadcast %87 : i32 to vector<512x64xi32>
    %89 = arith.remsi %84, %88 : vector<512x64xi32>
    %c0_i32_22 = arith.constant 0 : i32
    %90 = vector.broadcast %c0_i32_22 : i32 to vector<512x64xi32>
    %91 = arith.cmpi ne, %89, %90 : vector<512x64xi32>
    %c0_i32_23 = arith.constant 0 : i32
    %92 = vector.broadcast %c0_i32_23 : i32 to vector<512x64xi32>
    %93 = arith.cmpi slt, %89, %92 : vector<512x64xi32>
    %c0_i32_24 = arith.constant 0 : i32
    %94 = arith.cmpi slt, %87, %c0_i32_24 : i32
    %95 = vector.broadcast %94 : i1 to vector<512x64xi1>
    %96 = vector.broadcast %95 : vector<512x64xi1> to vector<512x64xi1>
    %97 = arith.xori %93, %96 : vector<512x64xi1>
    %98 = arith.andi %97, %91 : vector<512x64xi1>
    %99 = vector.broadcast %87 : i32 to vector<512x64xi32>
    %100 = arith.addi %89, %99 : vector<512x64xi32>
    %101 = arith.select %98, %100, %89 : vector<512x64xi1>, vector<512x64xi32>
    %102 = arith.cmpi eq, %101, %85 : vector<512x64xi32>
    %103 = arith.extui %102 : vector<512x64xi1> to vector<512x64xi32>
    %104 = arith.sitofp %103 : vector<512x64xi32> to vector<512x64xf32>
    %105 = tpu.iota {dimensions = array<i32: 0>} : vector<64x512xi32>
    %106 = tpu.iota {dimensions = array<i32: 1>} : vector<64x512xi32>
    %c64_i32_25 = arith.constant 64 : i32
    %c0_i32_26 = arith.constant 0 : i32
    %107 = arith.cmpi eq, %c64_i32_25, %c0_i32_26 : i32
    %c1_i32_27 = arith.constant 1 : i32
    %108 = arith.select %107, %c1_i32_27, %c64_i32_25 : i32
    %109 = vector.broadcast %108 : i32 to vector<64x512xi32>
    %110 = arith.remsi %106, %109 : vector<64x512xi32>
    %c0_i32_28 = arith.constant 0 : i32
    %111 = vector.broadcast %c0_i32_28 : i32 to vector<64x512xi32>
    %112 = arith.cmpi ne, %110, %111 : vector<64x512xi32>
    %c0_i32_29 = arith.constant 0 : i32
    %113 = vector.broadcast %c0_i32_29 : i32 to vector<64x512xi32>
    %114 = arith.cmpi slt, %110, %113 : vector<64x512xi32>
    %c0_i32_30 = arith.constant 0 : i32
    %115 = arith.cmpi slt, %108, %c0_i32_30 : i32
    %116 = vector.broadcast %115 : i1 to vector<64x512xi1>
    %117 = vector.broadcast %116 : vector<64x512xi1> to vector<64x512xi1>
    %118 = arith.xori %114, %117 : vector<64x512xi1>
    %119 = arith.andi %118, %112 : vector<64x512xi1>
    %120 = vector.broadcast %108 : i32 to vector<64x512xi32>
    %121 = arith.addi %110, %120 : vector<64x512xi32>
    %122 = arith.select %119, %121, %110 : vector<64x512xi1>, vector<64x512xi32>
    %123 = arith.cmpi eq, %105, %122 : vector<64x512xi32>
    %124 = arith.extui %123 : vector<64x512xi1> to vector<64x512xi32>
    %125 = arith.sitofp %124 : vector<64x512xi32> to vector<64x512xf32>
    %c0 = arith.constant 0 : index
    %c0_31 = arith.constant 0 : index
    %126 = vector.load %arg0[%c0, %c0_31] : memref<16x256xf32, #tpu.memory_space<vmem>>, vector<16x256xf32>
    %c0_32 = arith.constant 0 : index
    %c0_33 = arith.constant 0 : index
    %127 = vector.load %arg1[%c0_32, %c0_33] : memref<1x32xf32, #tpu.memory_space<vmem>>, vector<1x32xf32>
    %c0_34 = arith.constant 0 : index
    %c0_35 = arith.constant 0 : index
    %128 = vector.load %arg2[%c0_34, %c0_35] : memref<1x32xf32, #tpu.memory_space<vmem>>, vector<1x32xf32>
    %cst = arith.constant dense<0.000000e+00> : vector<256xf32>
    %129 = vector.multi_reduction <add>, %126, %cst [0] : vector<16x256xf32> to vector<256xf32>
    %130 = vector.shape_cast %129 : vector<256xf32> to vector<1x256xf32>
    %cst_36 = arith.constant dense<0.000000e+00> : vector<1x32xf32>
    %131 = tpu.matmul %130, %20, %cst_36 {dimension_numbers = #tpu.dot_dimension_numbers<[1], [0], [0], [1], [0, 0, 1, 1], [], []>} : vector<1x256xf32>, vector<256x32xf32>, vector<1x32xf32> -> vector<1x32xf32>
    %132 = arith.mulf %126, %126 : vector<16x256xf32>
    %cst_37 = arith.constant dense<0.000000e+00> : vector<256xf32>
    %133 = vector.multi_reduction <add>, %132, %cst_37 [0] : vector<16x256xf32> to vector<256xf32>
    %134 = vector.shape_cast %133 : vector<256xf32> to vector<1x256xf32>
    %cst_38 = arith.constant dense<0.000000e+00> : vector<1x32xf32>
    %135 = tpu.matmul %134, %20, %cst_38 {dimension_numbers = #tpu.dot_dimension_numbers<[1], [0], [0], [1], [0, 0, 1, 1], [], []>} : vector<1x256xf32>, vector<256x32xf32>, vector<1x32xf32> -> vector<1x32xf32>
    %cst_39 = arith.constant 1.280000e+02 : f32
    %136 = vector.broadcast %cst_39 : f32 to vector<1x32xf32>
    %137 = arith.divf %131, %136 : vector<1x32xf32>
    %cst_40 = arith.constant 1.280000e+02 : f32
    %138 = vector.broadcast %cst_40 : f32 to vector<1x32xf32>
    %139 = arith.divf %135, %138 : vector<1x32xf32>
    %140 = arith.mulf %137, %137 : vector<1x32xf32>
    %141 = arith.subf %139, %140 : vector<1x32xf32>
    %cst_41 = arith.constant 0.000000e+00 : f32
    %142 = vector.broadcast %cst_41 : f32 to vector<1x32xf32>
    %143 = arith.maximumf %141, %142 : vector<1x32xf32>
    %cst_42 = arith.constant 9.99999974E-6 : f32
    %144 = vector.broadcast %cst_42 : f32 to vector<1x32xf32>
    %145 = arith.addf %143, %144 : vector<1x32xf32>
    %146 = math.rsqrt %145 : vector<1x32xf32>
    %147 = arith.mulf %127, %146 : vector<1x32xf32>
    %148 = arith.mulf %137, %147 : vector<1x32xf32>
    %149 = arith.subf %128, %148 : vector<1x32xf32>
    %cst_43 = arith.constant dense<0.000000e+00> : vector<1x256xf32>
    %150 = tpu.matmul %147, %41, %cst_43 {dimension_numbers = #tpu.dot_dimension_numbers<[1], [0], [0], [1], [0, 0, 1, 1], [], []>} : vector<1x32xf32>, vector<32x256xf32>, vector<1x256xf32> -> vector<1x256xf32>
    %cst_44 = arith.constant dense<0.000000e+00> : vector<1x256xf32>
    %151 = tpu.matmul %149, %41, %cst_44 {dimension_numbers = #tpu.dot_dimension_numbers<[1], [0], [0], [1], [0, 0, 1, 1], [], []>} : vector<1x32xf32>, vector<32x256xf32>, vector<1x256xf32> -> vector<1x256xf32>
    %152 = vector.broadcast %150 : vector<1x256xf32> to vector<16x256xf32>
    %153 = arith.mulf %126, %152 : vector<16x256xf32>
    %154 = vector.broadcast %151 : vector<1x256xf32> to vector<16x256xf32>
    %155 = arith.addf %153, %154 : vector<16x256xf32>
    %cst_45 = arith.constant 0.000000e+00 : f32
    %156 = vector.broadcast %cst_45 : f32 to vector<16x256xf32>
    %157 = arith.maximumf %155, %156 : vector<16x256xf32>
    %158 = arith.truncf %157 : vector<16x256xf32> to vector<16x256xbf16>
    %c0_46 = arith.constant 0 : index
    %c0_47 = arith.constant 0 : index
    %159 = vector.load %arg14[%c0_46, %c0_47] : memref<256x512xbf16, #tpu.memory_space<vmem>>, vector<256x512xbf16>
    %cst_48 = arith.constant dense<0.000000e+00> : vector<16x512xf32>
    %160 = tpu.matmul %158, %159, %cst_48 {dimension_numbers = #tpu.dot_dimension_numbers<[1], [0], [0], [1], [0, 0, 1, 1], [], []>} : vector<16x256xbf16>, vector<256x512xbf16>, vector<16x512xf32> -> vector<16x512xf32>
    %c0_49 = arith.constant 0 : index
    %c0_50 = arith.constant 0 : index
    %161 = vector.load %arg3[%c0_49, %c0_50] : memref<256x128xbf16, #tpu.memory_space<vmem>>, vector<256x128xbf16>
    %cst_51 = arith.constant dense<0.000000e+00> : vector<16x128xf32>
    %162 = tpu.matmul %158, %161, %cst_51 {dimension_numbers = #tpu.dot_dimension_numbers<[1], [0], [0], [1], [0, 0, 1, 1], [], []>} : vector<16x256xbf16>, vector<256x128xbf16>, vector<16x128xf32> -> vector<16x128xf32>
    %c0_52 = arith.constant 0 : index
    %c0_53 = arith.constant 0 : index
    %163 = vector.load %arg4[%c0_52, %c0_53] : memref<1x16xf32, #tpu.memory_space<vmem>>, vector<1x16xf32>
    %c0_54 = arith.constant 0 : index
    %c0_55 = arith.constant 0 : index
    %164 = vector.load %arg5[%c0_54, %c0_55] : memref<1x16xf32, #tpu.memory_space<vmem>>, vector<1x16xf32>
    %cst_56 = arith.constant dense<0.000000e+00> : vector<128xf32>
    %165 = vector.multi_reduction <add>, %162, %cst_56 [0] : vector<16x128xf32> to vector<128xf32>
    %166 = vector.shape_cast %165 : vector<128xf32> to vector<1x128xf32>
    %cst_57 = arith.constant dense<0.000000e+00> : vector<1x16xf32>
    %167 = tpu.matmul %166, %62, %cst_57 {dimension_numbers = #tpu.dot_dimension_numbers<[1], [0], [0], [1], [0, 0, 1, 1], [], []>} : vector<1x128xf32>, vector<128x16xf32>, vector<1x16xf32> -> vector<1x16xf32>
    %168 = arith.mulf %162, %162 : vector<16x128xf32>
    %cst_58 = arith.constant dense<0.000000e+00> : vector<128xf32>
    %169 = vector.multi_reduction <add>, %168, %cst_58 [0] : vector<16x128xf32> to vector<128xf32>
    %170 = vector.shape_cast %169 : vector<128xf32> to vector<1x128xf32>
    %cst_59 = arith.constant dense<0.000000e+00> : vector<1x16xf32>
    %171 = tpu.matmul %170, %62, %cst_59 {dimension_numbers = #tpu.dot_dimension_numbers<[1], [0], [0], [1], [0, 0, 1, 1], [], []>} : vector<1x128xf32>, vector<128x16xf32>, vector<1x16xf32> -> vector<1x16xf32>
    %cst_60 = arith.constant 1.280000e+02 : f32
    %172 = vector.broadcast %cst_60 : f32 to vector<1x16xf32>
    %173 = arith.divf %167, %172 : vector<1x16xf32>
    %cst_61 = arith.constant 1.280000e+02 : f32
    %174 = vector.broadcast %cst_61 : f32 to vector<1x16xf32>
    %175 = arith.divf %171, %174 : vector<1x16xf32>
    %176 = arith.mulf %173, %173 : vector<1x16xf32>
    %177 = arith.subf %175, %176 : vector<1x16xf32>
    %cst_62 = arith.constant 0.000000e+00 : f32
    %178 = vector.broadcast %cst_62 : f32 to vector<1x16xf32>
    %179 = arith.maximumf %177, %178 : vector<1x16xf32>
    %cst_63 = arith.constant 9.99999974E-6 : f32
    %180 = vector.broadcast %cst_63 : f32 to vector<1x16xf32>
    %181 = arith.addf %179, %180 : vector<1x16xf32>
    %182 = math.rsqrt %181 : vector<1x16xf32>
    %183 = arith.mulf %163, %182 : vector<1x16xf32>
    %184 = arith.mulf %173, %183 : vector<1x16xf32>
    %185 = arith.subf %164, %184 : vector<1x16xf32>
    %cst_64 = arith.constant dense<0.000000e+00> : vector<1x128xf32>
    %186 = tpu.matmul %183, %83, %cst_64 {dimension_numbers = #tpu.dot_dimension_numbers<[1], [0], [0], [1], [0, 0, 1, 1], [], []>} : vector<1x16xf32>, vector<16x128xf32>, vector<1x128xf32> -> vector<1x128xf32>
    %cst_65 = arith.constant dense<0.000000e+00> : vector<1x128xf32>
    %187 = tpu.matmul %185, %83, %cst_65 {dimension_numbers = #tpu.dot_dimension_numbers<[1], [0], [0], [1], [0, 0, 1, 1], [], []>} : vector<1x16xf32>, vector<16x128xf32>, vector<1x128xf32> -> vector<1x128xf32>
    %188 = vector.broadcast %186 : vector<1x128xf32> to vector<16x128xf32>
    %189 = arith.mulf %162, %188 : vector<16x128xf32>
    %190 = vector.broadcast %187 : vector<1x128xf32> to vector<16x128xf32>
    %191 = arith.addf %189, %190 : vector<16x128xf32>
    %cst_66 = arith.constant 0.000000e+00 : f32
    %192 = vector.broadcast %cst_66 : f32 to vector<16x128xf32>
    %193 = arith.maximumf %191, %192 : vector<16x128xf32>
    %194 = tpu.iota {dimensions = array<i32: 0>} : vector<16x1xi32>
    %c8_i32 = arith.constant 8 : i32
    %c0_i32_67 = arith.constant 0 : i32
    %195 = arith.cmpi eq, %c8_i32, %c0_i32_67 : i32
    %c1_i32_68 = arith.constant 1 : i32
    %196 = arith.select %195, %c1_i32_68, %c8_i32 : i32
    %197 = vector.broadcast %196 : i32 to vector<16x1xi32>
    %198 = arith.remsi %194, %197 : vector<16x1xi32>
    %c0_i32_69 = arith.constant 0 : i32
    %199 = vector.broadcast %c0_i32_69 : i32 to vector<16x1xi32>
    %200 = arith.cmpi ne, %198, %199 : vector<16x1xi32>
    %c0_i32_70 = arith.constant 0 : i32
    %201 = vector.broadcast %c0_i32_70 : i32 to vector<16x1xi32>
    %202 = arith.cmpi slt, %198, %201 : vector<16x1xi32>
    %c0_i32_71 = arith.constant 0 : i32
    %203 = arith.cmpi slt, %196, %c0_i32_71 : i32
    %204 = vector.broadcast %203 : i1 to vector<16x1xi1>
    %205 = vector.broadcast %204 : vector<16x1xi1> to vector<16x1xi1>
    %206 = arith.xori %202, %205 : vector<16x1xi1>
    %207 = arith.andi %206, %200 : vector<16x1xi1>
    %208 = vector.broadcast %196 : i32 to vector<16x1xi32>
    %209 = arith.addi %198, %208 : vector<16x1xi32>
    %210 = arith.select %207, %209, %198 : vector<16x1xi1>, vector<16x1xi32>
    %c0_i32_72 = arith.constant 0 : i32
    %211 = vector.broadcast %c0_i32_72 : i32 to vector<16x1xi32>
    %212 = arith.cmpi eq, %210, %211 : vector<16x1xi32>
    %c8_i32_73 = arith.constant 8 : i32
    %c0_i32_74 = arith.constant 0 : i32
    %213 = arith.cmpi eq, %c8_i32_73, %c0_i32_74 : i32
    %c1_i32_75 = arith.constant 1 : i32
    %214 = arith.select %213, %c1_i32_75, %c8_i32_73 : i32
    %215 = vector.broadcast %214 : i32 to vector<16x1xi32>
    %216 = arith.remsi %194, %215 : vector<16x1xi32>
    %c0_i32_76 = arith.constant 0 : i32
    %217 = vector.broadcast %c0_i32_76 : i32 to vector<16x1xi32>
    %218 = arith.cmpi ne, %216, %217 : vector<16x1xi32>
    %c0_i32_77 = arith.constant 0 : i32
    %219 = vector.broadcast %c0_i32_77 : i32 to vector<16x1xi32>
    %220 = arith.cmpi slt, %216, %219 : vector<16x1xi32>
    %c0_i32_78 = arith.constant 0 : i32
    %221 = arith.cmpi slt, %214, %c0_i32_78 : i32
    %222 = vector.broadcast %221 : i1 to vector<16x1xi1>
    %223 = vector.broadcast %222 : vector<16x1xi1> to vector<16x1xi1>
    %224 = arith.xori %220, %223 : vector<16x1xi1>
    %225 = arith.andi %224, %218 : vector<16x1xi1>
    %226 = vector.broadcast %214 : i32 to vector<16x1xi32>
    %227 = arith.addi %216, %226 : vector<16x1xi32>
    %228 = arith.select %225, %227, %216 : vector<16x1xi1>, vector<16x1xi32>
    %c7_i32 = arith.constant 7 : i32
    %229 = vector.broadcast %c7_i32 : i32 to vector<16x1xi32>
    %230 = arith.cmpi eq, %228, %229 : vector<16x1xi32>
    %c1_i32_79 = arith.constant 1 : i32
    %231 = tpu.dynamic_rotate %193 by %c1_i32_79 dim 0 : vector<16x128xf32>, i32 -> vector<16x128xf32>
    %cst_80 = arith.constant 0.000000e+00 : f32
    %232 = vector.shape_cast %212 : vector<16x1xi1> to vector<16x1xi1>
    %233 = vector.broadcast %232 : vector<16x1xi1> to vector<16x128xi1>
    %234 = vector.broadcast %cst_80 : f32 to vector<16x128xf32>
    %235 = arith.select %233, %234, %231 : vector<16x128xi1>, vector<16x128xf32>
    %c15_i32 = arith.constant 15 : i32
    %236 = tpu.dynamic_rotate %193 by %c15_i32 dim 0 : vector<16x128xf32>, i32 -> vector<16x128xf32>
    %cst_81 = arith.constant 0.000000e+00 : f32
    %237 = vector.shape_cast %230 : vector<16x1xi1> to vector<16x1xi1>
    %238 = vector.broadcast %237 : vector<16x1xi1> to vector<16x128xi1>
    %239 = vector.broadcast %cst_81 : f32 to vector<16x128xf32>
    %240 = arith.select %238, %239, %236 : vector<16x128xi1>, vector<16x128xf32>
    %241 = arith.truncf %235 : vector<16x128xf32> to vector<16x128xbf16>
    %c0_82 = arith.constant 0 : index
    %c0_83 = arith.constant 0 : index
    %c0_84 = arith.constant 0 : index
    %242 = vector.load %arg6[%c0_82, %c0_83, %c0_84] : memref<3x128x128xbf16, #tpu.memory_space<vmem>>, vector<1x128x128xbf16>
    %243 = vector.shape_cast %242 : vector<1x128x128xbf16> to vector<128x128xbf16>
    %cst_85 = arith.constant dense<0.000000e+00> : vector<16x128xf32>
    %244 = tpu.matmul %241, %243, %cst_85 {dimension_numbers = #tpu.dot_dimension_numbers<[1], [0], [0], [1], [0, 0, 1, 1], [], []>} : vector<16x128xbf16>, vector<128x128xbf16>, vector<16x128xf32> -> vector<16x128xf32>
    %245 = arith.truncf %193 : vector<16x128xf32> to vector<16x128xbf16>
    %c1 = arith.constant 1 : index
    %c0_86 = arith.constant 0 : index
    %c0_87 = arith.constant 0 : index
    %246 = vector.load %arg6[%c1, %c0_86, %c0_87] : memref<3x128x128xbf16, #tpu.memory_space<vmem>>, vector<1x128x128xbf16>
    %247 = vector.shape_cast %246 : vector<1x128x128xbf16> to vector<128x128xbf16>
    %cst_88 = arith.constant dense<0.000000e+00> : vector<16x128xf32>
    %248 = tpu.matmul %245, %247, %cst_88 {dimension_numbers = #tpu.dot_dimension_numbers<[1], [0], [0], [1], [0, 0, 1, 1], [], []>} : vector<16x128xbf16>, vector<128x128xbf16>, vector<16x128xf32> -> vector<16x128xf32>
    %249 = arith.addf %244, %248 : vector<16x128xf32>
    %250 = arith.truncf %240 : vector<16x128xf32> to vector<16x128xbf16>
    %c2 = arith.constant 2 : index
    %c0_89 = arith.constant 0 : index
    %c0_90 = arith.constant 0 : index
    %251 = vector.load %arg6[%c2, %c0_89, %c0_90] : memref<3x128x128xbf16, #tpu.memory_space<vmem>>, vector<1x128x128xbf16>
    %252 = vector.shape_cast %251 : vector<1x128x128xbf16> to vector<128x128xbf16>
    %cst_91 = arith.constant dense<0.000000e+00> : vector<16x128xf32>
    %253 = tpu.matmul %250, %252, %cst_91 {dimension_numbers = #tpu.dot_dimension_numbers<[1], [0], [0], [1], [0, 0, 1, 1], [], []>} : vector<16x128xbf16>, vector<128x128xbf16>, vector<16x128xf32> -> vector<16x128xf32>
    %254 = arith.addf %249, %253 : vector<16x128xf32>
    %c0_92 = arith.constant 0 : index
    %c0_93 = arith.constant 0 : index
    %255 = vector.load %arg7[%c0_92, %c0_93] : memref<1x16xf32, #tpu.memory_space<vmem>>, vector<1x16xf32>
    %c0_94 = arith.constant 0 : index
    %c0_95 = arith.constant 0 : index
    %256 = vector.load %arg8[%c0_94, %c0_95] : memref<1x16xf32, #tpu.memory_space<vmem>>, vector<1x16xf32>
    %cst_96 = arith.constant dense<0.000000e+00> : vector<128xf32>
    %257 = vector.multi_reduction <add>, %254, %cst_96 [0] : vector<16x128xf32> to vector<128xf32>
    %258 = vector.shape_cast %257 : vector<128xf32> to vector<1x128xf32>
    %cst_97 = arith.constant dense<0.000000e+00> : vector<1x16xf32>
    %259 = tpu.matmul %258, %62, %cst_97 {dimension_numbers = #tpu.dot_dimension_numbers<[1], [0], [0], [1], [0, 0, 1, 1], [], []>} : vector<1x128xf32>, vector<128x16xf32>, vector<1x16xf32> -> vector<1x16xf32>
    %260 = arith.mulf %254, %254 : vector<16x128xf32>
    %cst_98 = arith.constant dense<0.000000e+00> : vector<128xf32>
    %261 = vector.multi_reduction <add>, %260, %cst_98 [0] : vector<16x128xf32> to vector<128xf32>
    %262 = vector.shape_cast %261 : vector<128xf32> to vector<1x128xf32>
    %cst_99 = arith.constant dense<0.000000e+00> : vector<1x16xf32>
    %263 = tpu.matmul %262, %62, %cst_99 {dimension_numbers = #tpu.dot_dimension_numbers<[1], [0], [0], [1], [0, 0, 1, 1], [], []>} : vector<1x128xf32>, vector<128x16xf32>, vector<1x16xf32> -> vector<1x16xf32>
    %cst_100 = arith.constant 1.280000e+02 : f32
    %264 = vector.broadcast %cst_100 : f32 to vector<1x16xf32>
    %265 = arith.divf %259, %264 : vector<1x16xf32>
    %cst_101 = arith.constant 1.280000e+02 : f32
    %266 = vector.broadcast %cst_101 : f32 to vector<1x16xf32>
    %267 = arith.divf %263, %266 : vector<1x16xf32>
    %268 = arith.mulf %265, %265 : vector<1x16xf32>
    %269 = arith.subf %267, %268 : vector<1x16xf32>
    %cst_102 = arith.constant 0.000000e+00 : f32
    %270 = vector.broadcast %cst_102 : f32 to vector<1x16xf32>
    %271 = arith.maximumf %269, %270 : vector<1x16xf32>
    %cst_103 = arith.constant 9.99999974E-6 : f32
    %272 = vector.broadcast %cst_103 : f32 to vector<1x16xf32>
    %273 = arith.addf %271, %272 : vector<1x16xf32>
    %274 = math.rsqrt %273 : vector<1x16xf32>
    %275 = arith.mulf %255, %274 : vector<1x16xf32>
    %276 = arith.mulf %265, %275 : vector<1x16xf32>
    %277 = arith.subf %256, %276 : vector<1x16xf32>
    %cst_104 = arith.constant dense<0.000000e+00> : vector<1x128xf32>
    %278 = tpu.matmul %275, %83, %cst_104 {dimension_numbers = #tpu.dot_dimension_numbers<[1], [0], [0], [1], [0, 0, 1, 1], [], []>} : vector<1x16xf32>, vector<16x128xf32>, vector<1x128xf32> -> vector<1x128xf32>
    %cst_105 = arith.constant dense<0.000000e+00> : vector<1x128xf32>
    %279 = tpu.matmul %277, %83, %cst_105 {dimension_numbers = #tpu.dot_dimension_numbers<[1], [0], [0], [1], [0, 0, 1, 1], [], []>} : vector<1x16xf32>, vector<16x128xf32>, vector<1x128xf32> -> vector<1x128xf32>
    %280 = vector.broadcast %278 : vector<1x128xf32> to vector<16x128xf32>
    %281 = arith.mulf %254, %280 : vector<16x128xf32>
    %282 = vector.broadcast %279 : vector<1x128xf32> to vector<16x128xf32>
    %283 = arith.addf %281, %282 : vector<16x128xf32>
    %cst_106 = arith.constant 0.000000e+00 : f32
    %284 = vector.broadcast %cst_106 : f32 to vector<16x128xf32>
    %285 = arith.maximumf %283, %284 : vector<16x128xf32>
    %286 = arith.truncf %285 : vector<16x128xf32> to vector<16x128xbf16>
    %c0_107 = arith.constant 0 : index
    %c0_108 = arith.constant 0 : index
    %287 = vector.load %arg9[%c0_107, %c0_108] : memref<128x512xbf16, #tpu.memory_space<vmem>>, vector<128x512xbf16>
    %cst_109 = arith.constant dense<0.000000e+00> : vector<16x512xf32>
    %288 = tpu.matmul %286, %287, %cst_109 {dimension_numbers = #tpu.dot_dimension_numbers<[1], [0], [0], [1], [0, 0, 1, 1], [], []>} : vector<16x128xbf16>, vector<128x512xbf16>, vector<16x512xf32> -> vector<16x512xf32>
    %289 = vector.shape_cast %288 : vector<16x512xf32> to vector<2x8x512xf32>
    %cst_110 = arith.constant dense<0.000000e+00> : vector<2x512xf32>
    %290 = vector.multi_reduction <add>, %289, %cst_110 [1] : vector<2x8x512xf32> to vector<2x512xf32>
    %cst_111 = arith.constant dense<0.000000e+00> : vector<2x64xf32>
    %291 = tpu.matmul %290, %104, %cst_111 {dimension_numbers = #tpu.dot_dimension_numbers<[1], [0], [0], [1], [0, 0, 1, 1], [], []>} : vector<2x512xf32>, vector<512x64xf32>, vector<2x64xf32> -> vector<2x64xf32>
    %cst_112 = arith.constant 1.562500e-02 : f32
    %292 = vector.broadcast %cst_112 : f32 to vector<2x64xf32>
    %293 = arith.mulf %291, %292 : vector<2x64xf32>
    %c0_113 = arith.constant 0 : index
    %c0_114 = arith.constant 0 : index
    %294 = vector.load %arg10[%c0_113, %c0_114] : memref<64x8xf32, #tpu.memory_space<vmem>>, vector<64x8xf32>
    %cst_115 = arith.constant dense<0.000000e+00> : vector<2x8xf32>
    %295 = tpu.matmul %293, %294, %cst_115 {dimension_numbers = #tpu.dot_dimension_numbers<[1], [0], [0], [1], [0, 0, 1, 1], [], []>} : vector<2x64xf32>, vector<64x8xf32>, vector<2x8xf32> -> vector<2x8xf32>
    %c0_116 = arith.constant 0 : index
    %c0_117 = arith.constant 0 : index
    %296 = vector.load %arg11[%c0_116, %c0_117] : memref<1x8xf32, #tpu.memory_space<vmem>>, vector<1x8xf32>
    %297 = vector.broadcast %296 : vector<1x8xf32> to vector<2x8xf32>
    %298 = arith.addf %295, %297 : vector<2x8xf32>
    %cst_118 = arith.constant 0.000000e+00 : f32
    %299 = vector.broadcast %cst_118 : f32 to vector<2x8xf32>
    %300 = arith.maximumf %298, %299 : vector<2x8xf32>
    %c0_119 = arith.constant 0 : index
    %c0_120 = arith.constant 0 : index
    %301 = vector.load %arg12[%c0_119, %c0_120] : memref<8x64xf32, #tpu.memory_space<vmem>>, vector<8x64xf32>
    %cst_121 = arith.constant dense<0.000000e+00> : vector<2x64xf32>
    %302 = tpu.matmul %300, %301, %cst_121 {dimension_numbers = #tpu.dot_dimension_numbers<[1], [0], [0], [1], [0, 0, 1, 1], [], []>} : vector<2x8xf32>, vector<8x64xf32>, vector<2x64xf32> -> vector<2x64xf32>
    %c0_122 = arith.constant 0 : index
    %c0_123 = arith.constant 0 : index
    %303 = vector.load %arg13[%c0_122, %c0_123] : memref<1x64xf32, #tpu.memory_space<vmem>>, vector<1x64xf32>
    %304 = vector.broadcast %303 : vector<1x64xf32> to vector<2x64xf32>
    %305 = arith.addf %302, %304 : vector<2x64xf32>
    %306 = math.tanh %305 : vector<2x64xf32>
    %cst_124 = arith.constant dense<0.000000e+00> : vector<2x512xf32>
    %307 = tpu.matmul %306, %125, %cst_124 {dimension_numbers = #tpu.dot_dimension_numbers<[1], [0], [0], [1], [0, 0, 1, 1], [], []>} : vector<2x64xf32>, vector<64x512xf32>, vector<2x512xf32> -> vector<2x512xf32>
    %308 = vector.shape_cast %307 : vector<2x512xf32> to vector<2x1x512xf32>
    %309 = vector.broadcast %308 : vector<2x1x512xf32> to vector<2x8x512xf32>
    %310 = arith.mulf %289, %309 : vector<2x8x512xf32>
    %311 = vector.shape_cast %310 : vector<2x8x512xf32> to vector<16x512xf32>
    %312 = arith.addf %311, %160 : vector<16x512xf32>
    %c0_125 = arith.constant 0 : index
    %c0_126 = arith.constant 0 : index
    %313 = vector.load %arg15[%c0_125, %c0_126] : memref<16x512xf32, #tpu.memory_space<vmem>>, vector<16x512xf32>
    tpu.vector_store %arg15[%c0_125, %c0_126], %312 {strides = array<i32>} : memref<16x512xf32, #tpu.memory_space<vmem>>, vector<16x512xf32>,
    return
  }
}

</mosaic_0001>

<bundles_post_ra>
// kernel: tpu_custom_call.1
= control target key start
LH: loop header
LB: loop body
LE: loop exit
PB: predicated region body
PF: predicated region fallthrough
CT: control target
= control target key end

     0   :  { %20 = vsyncpa [#allocation3], 0  ;;  %s8013_s0 = inlined_call_operand.vmem [shape: f32[16,256], index: 0, kind: input, shape index: {}]   ;;  %s8014_s1 = inlined_call_operand.vmem [shape: f32[1,32], index: 1, kind: input, shape index: {}]   ;;  %s8015_s2 = inlined_call_operand.vmem [shape: f32[1,32], index: 2, kind: input, shape index: {}]   ;;  %s8016_s3 = inlined_call_operand.hbm [shape: bf16[256,128], index: 3, kind: input, shape index: {}]   ;;  %s8017_s4 = inlined_call_operand.vmem [shape: f32[1,16], index: 4, kind: input, shape index: {}]   ;;  %s8018_s5 = inlined_call_operand.vmem [shape: f32[1,16], index: 5, kind: input, shape index: {}]   ;;  %s8019_s6 = inlined_call_operand.hbm [shape: bf16[3,128,128], index: 6, kind: input, shape index: {}]   ;;  %s8020_s7 = inlined_call_operand.vmem [shape: f32[1,16], index: 7, kind: input, shape index: {}]   ;;  %s8021_s8 = inlined_call_operand.vmem [shape: f32[1,16], index: 8, kind: input, shape index: {}]   ;;  %s8022_s9 = inlined_call_operand.hbm [shape: bf16[128,512], index: 9, kind: input, shape index: {}]   ;;  %s8023_s10 = inlined_call_operand.vmem [shape: f32[64,8], index: 10, kind: input, shape index: {}]   ;;  %s8024_s11 = inlined_call_operand.vmem [shape: f32[1,8], index: 11, kind: input, shape index: {}]   ;;  %s8025_s12 = inlined_call_operand.vmem [shape: f32[8,64], index: 12, kind: input, shape index: {}]   ;;  %s8026_s13 = inlined_call_operand.vmem [shape: f32[1,64], index: 13, kind: input, shape index: {}]   ;;  %s8027_s14 = inlined_call_operand.hbm [shape: bf16[256,512], index: 14, kind: input, shape index: {}]   ;;  %s8028_s15 = inlined_call_operand.hbm [shape: f32[16,512], index: 15, kind: output, shape index: {}]  }
   0x1   :  { %21 = vsyncpa [#allocation6], 0 }
   0x2   :  { %22 = vsyncpa [#allocation9], 0 }
   0x3   :  { %23 = vsyncpa [#allocation4], 0  ;;  %s6437_s18 = smov [#allocation5]   ;;  %s6438_s20 = smov [#allocation2]  }
   0x4   :  { %s51_s19 = sshll.u32 %s6437_s18, 4  ;;  %s35_s21 = sshll.u32 %s6438_s20, 4  ;;  %s52_s19 = int_to_ptr.vmem [resolvable:$true] %s51_s19  ;;  %s36_s21 = int_to_ptr.vmem [resolvable:$true] %s35_s21 }
   0x5   :  { %s6337_s22 = scalar_lea.vmem %s52_s19, 3072  ;;  %p6342_p1 = scmp.lt.s32.totalorder %s52_s19, %s52_s19 }
   0x6   :  { %p6338_p0 = scmp.ne.s32.totalorder %s52_s19, %s6337_s22  ;;  %p6343_p2 = scmp.lt.s32.totalorder %s6337_s22, %s6337_s22 }
   0x8   :  { %p6344_p3 = por %p6343_p2, %p6342_p1 }
   0xa   :  { %p6345_p4 = pnand %p6344_p3, %p6338_p0 }
   0xc   :  { %6348 = shalt.err (!%p6345_p4)
}
   0xd   :  { %s6439_s23 = smov 64   ;;  %s6440_s24 = smov 4  }
   0xe   :  { %57 = dma.hbm_to_vmem [thread:$0]  %s8019_s6, 3072, %s52_s19, [#allocation6], %s6439_s23, %s6439_s23, %s6440_s24  }
   0xf   :  { %s6357_s27 = scalar_lea.vmem %s36_s21, 2048  ;;  %p6362_p6 = scmp.lt.s32.totalorder %s36_s21, %s36_s21 }
  0x10   :  { %p6358_p5 = scmp.ne.s32.totalorder %s36_s21, %s6357_s27  ;;  %p6363_p7 = scmp.lt.s32.totalorder %s6357_s27, %s6357_s27 }
  0x12   :  { %p6364_p8 = por %p6363_p7, %p6362_p6 }
  0x14   :  { %p6365_p9 = pnand %p6364_p8, %p6358_p5 }
  0x16   :  { %6368 = shalt.err (!%p6365_p9)
}
  0x17   :  { %41 = dma.hbm_to_vmem [thread:$0]  %s8016_s3, 2048, %s36_s21, [#allocation3], %s6439_s23, %s6439_s23, %s6440_s24  }
  0x18   :  { %s6441_s30 = smov [#allocation7]  }
  0x19   :  { %s67_s16 = sshll.u32 %s6441_s30, 4  ;;  %s68_s16 = int_to_ptr.vmem [resolvable:$true] %s67_s16 }
  0x1a   :  { %s6377_s17 = scalar_lea.vmem %s68_s16, 4096  ;;  %p6382_p11 = scmp.lt.s32.totalorder %s68_s16, %s68_s16 }
  0x1b   :  { %p6378_p10 = scmp.ne.s32.totalorder %s68_s16, %s6377_s17  ;;  %p6383_p12 = scmp.lt.s32.totalorder %s6377_s17, %s6377_s17 }
  0x1d   :  { %p6384_p13 = por %p6383_p12, %p6382_p11 }
  0x1f   :  { %p6385_p0 = pnand %p6384_p13, %p6378_p10 }
  0x21   :  { %6388 = shalt.err (!%p6385_p0)
}
  0x22   :  { %s6442_s6 = smov 256   ;;  %s6443_s18 = smov 16  }
  0x23   :  { %73 = dma.hbm_to_vmem [thread:$0]  %s8022_s9, 4096, %s68_s16, [#allocation6], %s6442_s6, %s6442_s6, %s6443_s18  }
  0x24   :  { %s6444_s22 = smov [#allocation8]  }
  0x25   :  { %s87_s25 = sshll.u32 %s6444_s22, 4  ;;  %s88_s25 = int_to_ptr.vmem [resolvable:$true] %s87_s25 }
  0x26   :  { %s6397_s3 = scalar_lea.vmem %s88_s25, 8192  ;;  %p6402_p2 = scmp.lt.s32.totalorder %s88_s25, %s88_s25 }
  0x27   :  { %p6398_p1 = scmp.ne.s32.totalorder %s88_s25, %s6397_s3  ;;  %p6403_p3 = scmp.lt.s32.totalorder %s6397_s3, %s6397_s3 }
  0x29   :  { %p6404_p4 = por %p6403_p3, %p6402_p2 }
  0x2b   :  { %p6405_p5 = pnand %p6404_p4, %p6398_p1 }
  0x2d   :  { %6408 = shalt.err (!%p6405_p5)
}
  0x2e   :  { %93 = dma.hbm_to_vmem [thread:$0]  %s8027_s14, 8192, %s88_s25, [#allocation9], %s6442_s6, %s6442_s6, %s6443_s18  }
  0x2f   :  { %6429 = dma.done.wait [#allocation3], 2048  }
  0x30   :  { %6430 = vsyncadd [#allocation3], 4294965248 }
  0x31   :  { %6431 = dma.done.wait [#allocation6], 7168  }
  0x32   :  { %6432 = vsyncadd [#allocation6], 4294960128  ;;  %v107_v0 = vlaneseq }
  0x33   :  { %6433 = dma.done.wait [#allocation9], 8192  }
  0x34   :  { %6434 = vsyncadd [#allocation9], 4294959104  ;;  %v6545_v1 = vshrl.u32 %v107_v0, 7  ;;  %v6547_v2 = vand.u32 127, %v107_v0  ;;  %v8031_v18 = vmov 1.0   ;;  %v6765_v0 = vld [vmem:[%s8013_s0 + $0x8] sm:$0xff] }
  0x35   :  { %v6811_v19 = vld [vmem:[%s8013_s0 + $0x10] sm:$0xff] }
  0x36   :  { %v6550_v3 = vadd.s32 248, %v6545_v1  ;;  %v6553_v4 = vadd.s32 120, %v6545_v1  ;;  %v6556_v5 = vadd.s32 240, %v6545_v1  ;;  %v6559_v6 = vadd.s32 112, %v6545_v1 }
  0x37   :  { %v6562_v7 = vadd.s32 232, %v6545_v1  ;;  %v6565_v8 = vadd.s32 104, %v6545_v1  ;;  %v6568_v9 = vadd.s32 224, %v6545_v1  ;;  %v6571_v10 = vadd.s32 96, %v6545_v1 }
  0x38   :  { %v363_v11 = vand.u32 31, %v6550_v3  ;;  %v251_v12 = vand.u32 31, %v6553_v4  ;;  %v356_v13 = vand.u32 31, %v6556_v5  ;;  %v244_v14 = vand.u32 31, %v6559_v6 }
  0x39   :  { %v349_v15 = vand.u32 31, %v6562_v7  ;;  %v237_v16 = vand.u32 31, %v6565_v8  ;;  %v342_v17 = vand.u32 31, %v6568_v9  ;;  %v230_v20 = vand.u32 31, %v6571_v10 }
  0x3a   :  { %vm557_vm0 = vcmp.eq.s32.totalorder %v363_v11, %v6547_v2  ;;  %vm541_vm1 = vcmp.eq.s32.totalorder %v251_v12, %v6547_v2  ;;  %vm556_vm2 = vcmp.eq.s32.totalorder %v356_v13, %v6547_v2  ;;  %vm6586_vm3 = vcmp.eq.s32.totalorder %v244_v14, %v6547_v2  ;;  %v6785_v14 = vld [vmem:[%s8013_s0 + $0x18] sm:$0xff] }
  0x3b   :  { %5589 = vmatprep.subr.msk.mxu0 %vm557_vm0, %v8031_v18  ;;  %5624 = vmatprep.subr.msk.mxu1 %vm557_vm0, %v8031_v18  ;;  %v6592_v21 = vadd.s32 216, %v6545_v1  ;;  %vm6597_vm4 = vcmp.eq.s32.totalorder %v349_v15, %v6547_v2  ;;  %v6602_v23 = vadd.s32 88, %v6545_v1  ;;  %v6605_v24 = vadd.s32 208, %v6545_v1  ;;  %v6790_v15 = vld [vmem:[%s8013_s0] sm:$0xff] }
  0x3c   :  { %5590 = vmatpush3.msk.msra.mxu0 %vm541_vm1, %v8031_v18  ;;  %5625 = vmatpush3.msk.msra.mxu1 %vm541_vm1, %v8031_v18  ;;  %v6608_v25 = vadd.s32 80, %v6545_v1  ;;  %vm6613_vm5 = vcmp.eq.s32.totalorder %v237_v16, %v6547_v2  ;;  %v6619_v28 = vadd.s32 200, %v6545_v1  ;;  %v6622_v29 = vadd.s32 72, %v6545_v1 }
  0x3d   :  { %5591 = vmatprep.subr.msk.mxu0 %vm556_vm2, %v8031_v18  ;;  %5626 = vmatprep.subr.msk.mxu1 %vm556_vm2, %v8031_v18  ;;  %v335_v27 = vand.u32 31, %v6592_v21  ;;  %vm554_vm6 = vcmp.eq.s32.totalorder %v342_v17, %v6547_v2  ;;  %v223_v30 = vand.u32 31, %v6602_v23  ;;  %v328_v31 = vand.u32 31, %v6605_v24 }
  0x3e   :  { %5592 = vmatpush3.msk.msra.mxu0 %vm6586_vm3, %v8031_v18  ;;  %5627 = vmatpush3.msk.msra.mxu1 %vm6586_vm3, %v8031_v18  ;;  %v6634_v32 = vadd.s32 192, %v6545_v1  ;;  %vm538_vm7 = vcmp.eq.s32.totalorder %v230_v20, %v6547_v2  ;;  %v216_v33 = vand.u32 31, %v6608_v25  ;;  %v6645_v34 = vadd.s32 64, %v6545_v1 }
  0x3f   :  { %5593 = vmatprep.subr.msk.mxu0 %vm6597_vm4, %v8031_v18  ;;  %5628 = vmatprep.subr.msk.mxu1 %vm6597_vm4, %v8031_v18  ;;  %vm553_vm8 = vcmp.eq.s32.totalorder %v335_v27, %v6547_v2  ;;  %v321_v35 = vand.u32 31, %v6619_v28  ;;  %vm6658_vm9 = vcmp.eq.s32.totalorder %v223_v30, %v6547_v2  ;;  %v209_v37 = vand.u32 31, %v6622_v29 }
  0x40   :  { %5594 = vmatpush3.msk.msra.mxu0 %vm6613_vm5, %v8031_v18  ;;  %5629 = vmatpush3.msk.msra.mxu1 %vm6613_vm5, %v8031_v18  ;;  %v6664_v38 = vadd.s32 184, %v6545_v1  ;;  %vm6669_vm10 = vcmp.eq.s32.totalorder %v328_v31, %v6547_v2  ;;  %v314_v40 = vand.u32 31, %v6634_v32  ;;  %v6675_v41 = vadd.s32 56, %v6545_v1 }
  0x41   :  { %5595 = vmatprep.subr.msk.mxu0 %vm554_vm6, %v8031_v18  ;;  %5630 = vmatprep.subr.msk.mxu1 %vm554_vm6, %v8031_v18  ;;  %v6678_v42 = vadd.s32 176, %v6545_v1  ;;  %vm6683_vm11 = vcmp.eq.s32.totalorder %v216_v33, %v6547_v2  ;;  %v202_v44 = vand.u32 31, %v6645_v34  ;;  %v6689_v45 = vadd.s32 48, %v6545_v1 }
  0x42   :  { %5596 = vmatpush3.msk.msra.mxu0 %vm538_vm7, %v8031_v18  ;;  %5631 = vmatpush3.msk.msra.mxu1 %vm538_vm7, %v8031_v18  ;;  %v6692_v46 = vadd.s32 168, %v6545_v1  ;;  %vm551_vm12 = vcmp.eq.s32.totalorder %v321_v35, %v6547_v2  ;;  %v307_v47 = vand.u32 31, %v6664_v38  ;;  %v6703_v48 = vadd.s32 40, %v6545_v1 }
  0x43   :  { %5597 = vmatprep.subr.msk.mxu0 %vm553_vm8, %v8031_v18  ;;  %5632 = vmatprep.subr.msk.mxu1 %vm553_vm8, %v8031_v18  ;;  %v6706_v49 = vadd.s32 160, %v6545_v1  ;;  %vm535_vm13 = vcmp.eq.s32.totalorder %v209_v37, %v6547_v2  ;;  %v195_v50 = vand.u32 31, %v6675_v41  ;;  %v6717_v51 = vadd.s32 32, %v6545_v1 }
  0x44   :  { %5598 = vmatpush3.msk.msra.mxu0 %vm6658_vm9, %v8031_v18  ;;  %5633 = vmatpush3.msk.msra.mxu1 %vm6658_vm9, %v8031_v18  ;;  %vm550_vm14 = vcmp.eq.s32.totalorder %v314_v40, %v6547_v2  ;;  %v300_v52 = vand.u32 31, %v6678_v42  ;;  %vm6730_vm15 = vcmp.eq.s32.totalorder %v202_v44, %v6547_v2  ;;  %v188_v54 = vand.u32 31, %v6689_v45 }
  0x45   :  { %5599 = vmatprep.subr.msk.mxu0 %vm6669_vm10, %v8031_v18  ;;  %5634 = vmatprep.subr.msk.mxu1 %vm6669_vm10, %v8031_v18  ;;  %v293_v55 = vand.u32 31, %v6692_v46  ;;  %v6737_v56 = vadd.s32 152, %v6545_v1  ;;  %vm6742_vm0 = vcmp.eq.s32.totalorder %v307_v47, %v6547_v2  ;;  %v181_v58 = vand.u32 31, %v6703_v48 }
  0x46   :  { %5600 = vmatpush3.msk.msra.mxu0 %vm6683_vm11, %v8031_v18  ;;  %5635 = vmatpush3.msk.msra.mxu1 %vm6683_vm11, %v8031_v18  ;;  %v286_v59 = vand.u32 31, %v6706_v49  ;;  %vm6751_vm1 = vcmp.eq.s32.totalorder %v195_v50, %v6547_v2  ;;  %v174_v61 = vand.u32 31, %v6717_v51  ;;  %v6757_v62 = vadd.s32 24, %v6545_v1 }
  0x47   :  { %5601 = vmatprep.subr.msk.mxu0 %vm551_vm12, %v8031_v18  ;;  %5636 = vmatprep.subr.msk.mxu1 %vm551_vm12, %v8031_v18  ;;  %8075 = vst [vmem:[#allocation15_spill] sm:$0xff] %v6737_v56  ;;  %v6760_v63 = vadd.s32 144, %v6545_v1  ;;  %vm6774_vm2 = vcmp.eq.s32.totalorder %v300_v52, %v6547_v2  ;;  %v279_v12 = vand.u32 31, %v6737_v56  ;;  %v6780_v13 = vadd.s32 16, %v6545_v1 }
  0x48   :  { %5602 = vmatpush3.msk.msra.mxu0 %vm535_vm13, %v8031_v18  ;;  %5637 = vmatpush3.msk.msra.mxu1 %vm535_vm13, %v8031_v18  ;;  %8080 = vst [vmem:[#allocation16_spill] sm:$0xff] %v6757_v62  ;;  %vm6799_vm3 = vcmp.eq.s32.totalorder %v188_v54, %v6547_v2  ;;  %vm6804_vm4 = vcmp.eq.s32.totalorder %v293_v55, %v6547_v2  ;;  %v6830_v26 = vadd.s32 136, %v6545_v1  ;;  %v6833_v27 = vadd.s32 8, %v6545_v1 }
  0x49   :  { %5603 = vmatprep.subr.msk.mxu0 %vm550_vm14, %v8031_v18  ;;  %5638 = vmatprep.subr.msk.mxu1 %vm550_vm14, %v8031_v18  ;;  %8081 = vst [vmem:[#allocation17_spill] sm:$0xff] %v6760_v63  ;;  %8084 = vst [vmem:[#allocation18_spill] sm:$0xff] %v6780_v13  ;;  %vm6820_vm5 = vcmp.eq.s32.totalorder %v181_v58, %v6547_v2  ;;  %vm6825_vm6 = vcmp.eq.s32.totalorder %v286_v59, %v6547_v2  ;;  %v167_v31 = vand.u32 31, %v6757_v62 }
  0x4a   :  { %5604 = vmatpush3.msk.msra.mxu0 %vm6730_vm15, %v8031_v18  ;;  %5639 = vmatpush3.msk.msra.mxu1 %vm6730_vm15, %v8031_v18  ;;  %8093 = vst [vmem:[#allocation19_spill] sm:$0xff] %v6830_v26  ;;  %vm6842_vm7 = vcmp.eq.s32.totalorder %v174_v61, %v6547_v2  ;;  %v272_v33 = vand.u32 31, %v6760_v63  ;;  %v6849_v35 = vadd.s32 128, %v6545_v1  ;;  %vm6858_vm8 = vcmp.eq.s32.totalorder %v279_v12, %v6547_v2 }
  0x4b   :  { %5605 = vmatprep.subr.msk.mxu0 %vm6742_vm0, %v8031_v18  ;;  %5640 = vmatprep.subr.msk.mxu1 %vm6742_vm0, %v8031_v18  ;;  %v160_v37 = vand.u32 31, %v6780_v13  ;;  %v2080_v39 = vadd.f32 %v6785_v14, %v6765_v0  ;;  %v2158_v40 = vmul.f32 %v6765_v0, %v6765_v0  ;;  %v146_v43 = vand.u32 31, %v6545_v1 }
  0x4c   :  { %5606 = vmatpush3.msk.msra.mxu0 %vm6751_vm1, %v8031_v18  ;;  %5641 = vmatpush3.msk.msra.mxu1 %vm6751_vm1, %v8031_v18  ;;  %8096 = vst [vmem:[#allocation20_spill] sm:$0xff] %v6849_v35  ;;  %v2160_v44 = vmul.f32 %v6785_v14, %v6785_v14  ;;  %v2073_v47 = vadd.f32 %v6811_v19, %v6790_v15  ;;  %v265_v52 = vand.u32 31, %v6830_v26  ;;  %v153_v53 = vand.u32 31, %v6833_v27 }
  0x4d   :  { %5607 = vmatprep.subr.msk.mxu0 %vm6774_vm2, %v8031_v18  ;;  %5642 = vmatprep.subr.msk.mxu1 %vm6774_vm2, %v8031_v18  ;;  %v2157_v50 = vmul.f32 %v6790_v15, %v6790_v15  ;;  %v2081_v54 = vrot.slane %v2080_v39, 4  ;;  %v2159_v55 = vmul.f32 %v6811_v19, %v6811_v19  ;;  %vm529_vm9 = vcmp.eq.s32.totalorder %v167_v31, %v6547_v2 }
  0x4e   :  { %5608 = vmatpush3.msk.msra.mxu0 %vm6799_vm3, %v8031_v18  ;;  %5643 = vmatpush3.msk.msra.mxu1 %vm6799_vm3, %v8031_v18  ;;  %v258_v57 = vand.u32 31, %v6849_v35  ;;  %v2168_v58 = vadd.f32 %v2160_v44, %v2158_v40  ;;  %v2074_v59 = vrot.slane %v2073_v47, 4  ;;  %vm544_vm10 = vcmp.eq.s32.totalorder %v272_v33, %v6547_v2 }
  0x4f   :  { %5609 = vmatprep.subr.msk.mxu0 %vm6804_vm4, %v8031_v18  ;;  %5644 = vmatprep.subr.msk.mxu1 %vm6804_vm4, %v8031_v18  ;;  %v2082_v60 = vadd.f32 %v2081_v54, %v2080_v39  ;;  %v2161_v61 = vadd.f32 %v2159_v55, %v2157_v50  ;;  %vm528_vm11 = vcmp.eq.s32.totalorder %v160_v37, %v6547_v2 }
  0x50   :  { %5610 = vmatpush3.msk.msra.mxu0 %vm6820_vm5, %v8031_v18  ;;  %5645 = vmatpush3.msk.msra.mxu1 %vm6820_vm5, %v8031_v18  ;;  %v2169_v11 = vrot.slane %v2168_v58, 4  ;;  %v2075_v12 = vadd.f32 %v2074_v59, %v2073_v47  ;;  %vm543_vm12 = vcmp.eq.s32.totalorder %v265_v52, %v6547_v2  ;;  %vm527_vm13 = vcmp.eq.s32.totalorder %v153_v53, %v6547_v2 }
  0x51   :  { %5611 = vmatprep.subr.msk.mxu0 %vm6825_vm6, %v8031_v18  ;;  %5646 = vmatprep.subr.msk.mxu1 %vm6825_vm6, %v8031_v18  ;;  %v2083_v16 = vrot.slane %v2082_v60, 2  ;;  %v2162_v17 = vrot.slane %v2161_v61, 4  ;;  %vm542_vm14 = vcmp.eq.s32.totalorder %v258_v57, %v6547_v2  ;;  %vm526_vm15 = vcmp.eq.s32.totalorder %v146_v43, %v6547_v2 }
  0x52   :  { %5612 = vmatpush3.msk.msra.mxu0 %vm6842_vm7, %v8031_v18  ;;  %5647 = vmatpush3.msk.msra.mxu1 %vm6842_vm7, %v8031_v18  ;;  %v2170_v20 = vadd.f32 %v2169_v11, %v2168_v58  ;;  %v2076_v22 = vrot.slane %v2075_v12, 2  ;;  %v6931_v57 = vadd.s32 128, %v6547_v2  ;;  %v6934_v58 = vand.u32 31, %v6547_v2  ;;  %v6139_v11 = vld [vmem:[#allocation8 + $0xe4] ss:$16 sps:$4 sm:$0xff]  }
  0x53   :  { %5613 = vmatprep.subr.msk.mxu0 %vm6858_vm8, %v8031_v18  ;;  %5648 = vmatprep.subr.msk.mxu1 %vm6858_vm8, %v8031_v18  ;;  %v2084_v30 = vadd.f32 %v2083_v16, %v2082_v60  ;;  %v2163_v31 = vadd.f32 %v2162_v17, %v2161_v61  ;;  %v8033_v59 = vmov 0.0   ;;  %v6137_v61 = vld [vmem:[#allocation8 + $0xe0] ss:$16 sps:$4 sm:$0xff]   ;;  %v6151_v17 = vld [vmem:[#allocation8 + $0xa4] ss:$16 sps:$4 sm:$0xff]   ;;  %vm2256_vm8 = vcmask 261120  }
  0x54   :  { %5614 = vmatpush3.msk.msra.mxu0 %vm529_vm9, %v8031_v18  ;;  %5649 = vmatpush3.msk.msra.mxu1 %vm529_vm9, %v8031_v18  ;;  %v2171_v33 = vrot.slane %v2170_v20, 2  ;;  %v2077_v36 = vadd.f32 %v2076_v22, %v2075_v12  ;;  %8099 = vst [vmem:[#allocation21_spill] sm:$0xff] %v6931_v57  ;;  %v6938_v60 = vand.u32 31, %v6931_v57  ;;  %vm653_vm0 = vcmp.eq.s32.totalorder %v6757_v62, %v6934_v58  ;;  %v6145_v12 = vld [vmem:[#allocation8 + $0xc4] ss:$16 sps:$4 sm:$0xff]  }
  0x55   :  { %5615 = vmatprep.subr.msk.mxu0 %vm544_vm10, %v8031_v18  ;;  %5650 = vmatprep.subr.msk.mxu1 %vm544_vm10, %v8031_v18  ;;  %v2085_v37 = vrot.slane %v2084_v30, 1  ;;  %v2164_v39 = vrot.slane %v2163_v31, 2  ;;  %vm651_vm3 = vcmp.eq.s32.totalorder %v6780_v13, %v6934_v58  ;;  %vm649_vm5 = vcmp.eq.s32.totalorder %v6833_v27, %v6934_v58  ;;  %v6143_v16 = vld [vmem:[#allocation8 + $0xc0] ss:$16 sps:$4 sm:$0xff]   ;;  %v6157_v22 = vld [vmem:[#allocation8 + $0x84] ss:$16 sps:$4 sm:$0xff]  }
  0x56   :  { %5616 = vmatpush3.msk.msra.mxu0 %vm528_vm11, %v8031_v18  ;;  %5651 = vmatpush3.msk.msra.mxu1 %vm528_vm11, %v8031_v18  ;;  %v2172_v40 = vadd.f32 %v2171_v33, %v2170_v20  ;;  %v2078_v44 = vrot.slane %v2077_v36, 1  ;;  %vm654_vm1 = vcmp.eq.s32.totalorder %v6757_v62, %v6938_v60  ;;  %vm652_vm2 = vcmp.eq.s32.totalorder %v6780_v13, %v6938_v60  ;;  %v6149_v20 = vld [vmem:[#allocation8 + $0xa0] ss:$16 sps:$4 sm:$0xff]  }
  0x57   :  { %5617 = vmatprep.subr.msk.mxu0 %vm543_vm12, %v8031_v18  ;;  %5652 = vmatprep.subr.msk.mxu1 %vm543_vm12, %v8031_v18  ;;  %v2086_v47 = vadd.f32 %v2085_v37, %v2084_v30  ;;  %v2165_v43 = vadd.f32 %v2164_v39, %v2163_v31  ;;  %vm650_vm4 = vcmp.eq.s32.totalorder %v6833_v27, %v6938_v60  ;;  %v6155_v30 = vld [vmem:[#allocation8 + $0x80] ss:$16 sps:$4 sm:$0xff]   ;;  %v6163_v31 = vld [vmem:[#allocation8 + $0x64] ss:$16 sps:$4 sm:$0xff]  }
  0x58   :  { %5618 = vmatpush3.msk.msra.mxu0 %vm527_vm13, %v8031_v18  ;;  %5653 = vmatpush3.msk.msra.mxu1 %vm527_vm13, %v8031_v18  ;;  %v2173_v50 = vrot.slane %v2172_v40, 1  ;;  %v2079_v52 = vadd.f32 %v2078_v44, %v2077_v36  ;;  %vm648_vm6 = vcmp.eq.s32.totalorder %v6545_v1, %v6938_v60  ;;  %vm647_vm7 = vcmp.eq.s32.totalorder %v6545_v1, %v6934_v58  ;;  %v6161_v33 = vld [vmem:[#allocation8 + $0x60] ss:$16 sps:$4 sm:$0xff]   ;;  %v6169_v36 = vld [vmem:[#allocation8 + $0x44] ss:$16 sps:$4 sm:$0xff]  }
  0x59   :  { %5619 = vmatprep.subr.msk.mxu0 %vm542_vm14, %v8031_v18  ;;  %5654 = vmatprep.subr.msk.mxu1 %vm542_vm14, %v8031_v18  ;;  %v2166_v53 = vrot.slane %v2165_v43, 1  ;;  %v6167_v37 = vld [vmem:[#allocation8 + $0x40] ss:$16 sps:$4 sm:$0xff]   ;;  %v6175_v39 = vld [vmem:[#allocation8 + $0x24] ss:$16 sps:$4 sm:$0xff]  }
  0x5a   :  { %5620 = vmatpush3.msk.msra.mxu0 %vm526_vm15, %v8031_v18  ;;  %5655 = vmatpush3.msk.msra.mxu1 %vm526_vm15, %v8031_v18  ;;  %v2174_v54 = vadd.f32 %v2173_v50, %v2172_v40  ;;  %v6173_v40 = vld [vmem:[#allocation8 + $0x20] ss:$16 sps:$4 sm:$0xff]   ;;  %v6181_v44 = vld [vmem:[#allocation8 + $0x4] ss:$16 sps:$4 sm:$0xff]   ;;  %v6158_v60 = vld [vmem:[#allocation8 + $0x88] ss:$16 sps:$4 sm:$0xff]  }
  0x5b   :  { %2151 = vmatprep.mubr.f32.mxu0 %v2086_v47  ;;  %v2167_v55 = vadd.f32 %v2166_v53, %v2165_v43  ;;  %5243 = vmatprep.subr.msk.mxu1 %vm654_vm1, %v8031_v18  ;;  %v6179_v47 = vld [vmem:[#allocation8] ss:$16 sps:$4 sm:$0xff]   ;;  %v6187_v43 = vld [vmem:[#allocation8 + $0x1e4] ss:$16 sps:$4 sm:$0xff]   ;;  %v6172_v58 = vld [vmem:[#allocation8 + $0x4c] ss:$16 sps:$4 sm:$0xff]  }
  0x5c   :  { %2152 = vmatmul.mubr.f32.vlgmr.msra.gmra.mxu0 %v2079_v52  ;;  %2239 = vmatprep.mubr.f32.mxu1 %v2174_v54  ;;  %v6185_v50 = vld [vmem:[#allocation8 + $0x1e0] ss:$16 sps:$4 sm:$0xff]   ;;  %v6193_v52 = vld [vmem:[#allocation8 + $0x1c4] ss:$16 sps:$4 sm:$0xff]  }
  0x5d   :  { %2240 = vmatmul.mubr.f32.vlgmr.msra.gmra.mxu1 %v2167_v55  ;;  %2819 = vmatprep.subr.bf16.mxu0 %v6139_v11  ;;  %v6191_v53 = vld [vmem:[#allocation8 + $0x1c0] ss:$16 sps:$4 sm:$0xff]   ;;  %v6199_v54 = vld [vmem:[#allocation8 + $0x1a4] ss:$16 sps:$4 sm:$0xff]  }
  0x5e   :  { %2324 = vmatprep.mubr.f32.mxu1 %v8033_v59  ;;  %5244 = vmatpush1.msk.msra.mxu1 %vm653_vm0, %v8031_v18  ;;  %v6197_v55 = vld [vmem:[#allocation8 + $0x1a0] ss:$16 sps:$4 sm:$0xff]  }
  0x5f   :  { %5245 = vmatprep.subr.msk.mxu1 %vm652_vm2, %v8031_v18  ;;  %2820 = vmatpush1.bf16.msra.mxu0 %v6137_v61  ;;  %v6205_v61 = vld [vmem:[#allocation8 + $0x184] ss:$16 sps:$4 sm:$0xff]   ;;  %v6203_v11 = vld [vmem:[#allocation8 + $0x180] ss:$16 sps:$4 sm:$0xff]  }
  0x60   :  { %5246 = vmatpush1.msk.msra.mxu1 %vm651_vm3, %v8031_v18  ;;  %2821 = vmatprep.subr.bf16.mxu0 %v6145_v12 }
  0x61   :  { %5247 = vmatprep.subr.msk.mxu1 %vm650_vm4, %v8031_v18 }
  0x62   :  { %5248 = vmatpush1.msk.msra.mxu1 %vm649_vm5, %v8031_v18 }
  0x63   :  { %5249 = vmatprep.subr.msk.mxu1 %vm648_vm6, %v8031_v18  ;;  %2822 = vmatpush1.bf16.msra.mxu0 %v6143_v16 }
  0x64   :  { %5250 = vmatpush1.msk.msra.mxu1 %vm647_vm7, %v8031_v18  ;;  %2823 = vmatprep.subr.bf16.mxu0 %v6151_v17 }
  0x65   :  { %5252 = vmatprep.subr.msk.mxu1 %vm654_vm1, %v8031_v18 }
  0x67   :  { %2824 = vmatpush1.bf16.msra.mxu0 %v6149_v20 }
  0x68   :  { %2825 = vmatprep.subr.bf16.mxu0 %v6157_v22 }
  0x6b   :  { %2826 = vmatpush1.bf16.msra.mxu0 %v6155_v30 }
  0x6c   :  { %2827 = vmatprep.subr.bf16.mxu0 %v6163_v31 }
  0x6f   :  { %2828 = vmatpush1.bf16.msra.mxu0 %v6161_v33 }
  0x70   :  { %2829 = vmatprep.subr.bf16.mxu0 %v6169_v36 }
  0x73   :  { %2830 = vmatpush1.bf16.msra.mxu0 %v6167_v37 }
  0x74   :  { %2831 = vmatprep.subr.bf16.mxu0 %v6175_v39 }
  0x77   :  { %2832 = vmatpush1.bf16.msra.mxu0 %v6173_v40 }
  0x78   :  { %2833 = vmatprep.subr.bf16.mxu0 %v6181_v44  ;;  %v2071_v44 = vld [vmem:[%s8014_s1] sm:$0x1] }
  0x7b   :  { %2834 = vmatpush1.bf16.msra.mxu0 %v6179_v47 }
  0x7c   :  { %2835 = vmatprep.subr.bf16.mxu0 %v6187_v43 }
  0x7f   :  { %2836 = vmatpush2.bf16.msra.mxu0 %v6185_v50 }
  0x80   :  { %2837 = vmatprep.subr.bf16.mxu0 %v6193_v52  ;;  %v2072_v52 = vld [vmem:[%s8015_s2] sm:$0x1] }
  0x83   :  { %2838 = vmatpush2.bf16.msra.mxu0 %v6191_v53  ;;  %v6142_v53 = vld [vmem:[#allocation8 + $0xec] ss:$16 sps:$4 sm:$0xff]  }
  0x84   :  { %2839 = vmatprep.subr.bf16.mxu0 %v6199_v54  ;;  %v6140_v54 = vld [vmem:[#allocation8 + $0xe8] ss:$16 sps:$4 sm:$0xff]  }
  0x87   :  { %2840 = vmatpush2.bf16.msra.mxu0 %v6197_v55 }
  0x88   :  { %2841 = vmatprep.subr.bf16.mxu0 %v6205_v61  ;;  %v6148_v61 = vld [vmem:[#allocation8 + $0xcc] ss:$16 sps:$4 sm:$0xff]  }
  0x8b   :  { %2842 = vmatpush2.bf16.msra.mxu0 %v6203_v11  ;;  %v6146_v11 = vld [vmem:[#allocation8 + $0xc8] ss:$16 sps:$4 sm:$0xff]  }
 0x11c   :  { %v5621_v12 = vpop.f32.mrf.mxu0 }
 0x11d   :  { %v5656_v17 = vpop.f32.mrf.mxu1 }
 0x11e   :  { %v5622_v16 = vpop.f32.mrf.mxu0 }
 0x11f   :  { %v5623_v20 = vadd.f32 %v5622_v16, %v5621_v12  ;;  %v5657_v30 = vpop.f32.mrf.mxu1  ;;  %v6154_v12 = vld [vmem:[#allocation8 + $0xac] ss:$16 sps:$4 sm:$0xff]   ;;  %v6152_v16 = vld [vmem:[#allocation8 + $0xa8] ss:$16 sps:$4 sm:$0xff]  }
 0x120   :  { %v5658_v31 = vadd.f32 %v5657_v30, %v5656_v17  ;;  %v6160_v17 = vld [vmem:[#allocation8 + $0x8c] ss:$16 sps:$4 sm:$0xff]   ;;  %v6170_v30 = vld [vmem:[#allocation8 + $0x48] ss:$16 sps:$4 sm:$0xff]  }
 0x121   :  { %v2246_v22 = vmul.f32 0.0078125, %v5623_v20  ;;  %v6166_v20 = vld [vmem:[#allocation8 + $0x6c] ss:$16 sps:$4 sm:$0xff]  }
 0x122   :  { %v2247_v36 = vmul.f32 0.0078125, %v5658_v31  ;;  %v6178_v31 = vld [vmem:[#allocation8 + $0x2c] ss:$16 sps:$4 sm:$0xff]  }
 0x123   :  { %v2248_v33 = vmul.f32 %v2246_v22, %v2246_v22 }
 0x125   :  { %v2249_v37 = vsub.f32 %v2247_v36, %v2248_v33  ;;  %v6176_v33 = vld [vmem:[#allocation8 + $0x28] ss:$16 sps:$4 sm:$0xff]   ;;  %v6184_v36 = vld [vmem:[#allocation8 + $0xc] ss:$16 sps:$4 sm:$0xff]  }
 0x127   :  { %v2250_v39 = vmax.f32 %v2249_v37, 0.0  ;;  %v6182_v37 = vld [vmem:[#allocation8 + $0x8] ss:$16 sps:$4 sm:$0xff]  }
 0x129   :  { %v2251_v40 = vadd.f32 1e-05, %v2250_v39  ;;  %v6190_v39 = vld [vmem:[#allocation8 + $0x1ec] ss:$16 sps:$4 sm:$0xff]  }
 0x12b   :  { %6321 = vrsqrt.f32 %v2251_v40  ;;  %v6188_v40 = vld [vmem:[#allocation8 + $0x1e8] ss:$16 sps:$4 sm:$0xff]  }
 0x138   :  { %v6322_v47 = vpop.eup %6321 }
 0x139   :  { %v2253_v43 = vmul.f32 %v6322_v47, %v2071_v44  ;;  %v6196_v44 = vld [vmem:[#allocation8 + $0x1cc] ss:$16 sps:$4 sm:$0xff]   ;;  %v6194_v47 = vld [vmem:[#allocation8 + $0x1c8] ss:$16 sps:$4 sm:$0xff]  }
 0x13b   :  { %5251 = vmatmul.mubr.msk.f32.vlgmr.msra.gmra.mxu1 %vm2256_vm8, %v2253_v43  ;;  %v2254_v50 = vmul.f32 %v2253_v43, %v2246_v22  ;;  %v6164_v22 = vld [vmem:[#allocation8 + $0x68] ss:$16 sps:$4 sm:$0xff]   ;;  %v6202_v43 = vld [vmem:[#allocation8 + $0x1ac] ss:$16 sps:$4 sm:$0xff]  }
 0x13c   :  { %5253 = vmatpush1.msk.msra.mxu1 %vm653_vm0, %v8031_v18  ;;  %2398 = vmatprep.mubr.f32.mxu1 %v8033_v59 }
 0x13d   :  { %5254 = vmatprep.subr.msk.mxu1 %vm652_vm2, %v8031_v18  ;;  %v2255_v55 = vsub.f32 %v2072_v52, %v2254_v50  ;;  %v6200_v50 = vld [vmem:[#allocation8 + $0x1a8] ss:$16 sps:$4 sm:$0xff]   ;;  %v6208_v52 = vld [vmem:[#allocation8 + $0x18c] ss:$16 sps:$4 sm:$0xff]  }
 0x13e   :  { %5255 = vmatpush1.msk.msra.mxu1 %vm651_vm3, %v8031_v18 }
 0x13f   :  { %5256 = vmatprep.subr.msk.mxu1 %vm650_vm4, %v8031_v18 }
 0x140   :  { %5257 = vmatpush1.msk.msra.mxu1 %vm649_vm5, %v8031_v18 }
 0x141   :  { %5258 = vmatprep.subr.msk.mxu1 %vm648_vm6, %v8031_v18 }
 0x142   :  { %5259 = vmatpush1.msk.msra.mxu1 %vm647_vm7, %v8031_v18 }
 0x143   :  { %5260 = vmatmul.mubr.msk.f32.vlgmr.msra.gmra.mxu1 %vm2256_vm8, %v2255_v55  ;;  %2862 = vmatprep.subr.bf16.mxu1 %v6142_v53  ;;  %v6206_v53 = vld [vmem:[#allocation8 + $0x188] ss:$16 sps:$4 sm:$0xff]   ;;  %v6209_v55 = vld [vmem:[#allocation8 + $0x160] ss:$16 sps:$4 sm:$0xff]  }
 0x144   :  { %2863 = vmatpush1.bf16.msra.mxu1 %v6140_v54  ;;  %v6211_v54 = vld [vmem:[#allocation8 + $0x164] ss:$16 sps:$4 sm:$0xff]  }
 0x145   :  { %2864 = vmatprep.subr.bf16.mxu1 %v6148_v61  ;;  %v6214_v61 = vld [vmem:[#allocation8 + $0x16c] ss:$16 sps:$4 sm:$0xff]   ;;  %2843 = vmatprep.subr.bf16.mxu0 %v6211_v54 }
 0x146   :  { %2844 = vmatpush2.bf16.msra.mxu0 %v6209_v55 }
 0x148   :  { %2865 = vmatpush1.bf16.msra.mxu1 %v6146_v11  ;;  %v6212_v11 = vld [vmem:[#allocation8 + $0x168] ss:$16 sps:$4 sm:$0xff]  }
 0x149   :  { %2866 = vmatprep.subr.bf16.mxu1 %v6154_v12  ;;  %v6215_v12 = vld [vmem:[#allocation8 + $0x140] ss:$16 sps:$4 sm:$0xff]  }
 0x14c   :  { %2867 = vmatpush1.bf16.msra.mxu1 %v6152_v16  ;;  %v6217_v16 = vld [vmem:[#allocation8 + $0x144] ss:$16 sps:$4 sm:$0xff]  }
 0x14d   :  { %2868 = vmatprep.subr.bf16.mxu1 %v6160_v17  ;;  %2845 = vmatprep.subr.bf16.mxu0 %v6217_v16  ;;  %v6220_v17 = vld [vmem:[#allocation8 + $0x14c] ss:$16 sps:$4 sm:$0xff]  }
 0x14e   :  { %2846 = vmatpush2.bf16.msra.mxu0 %v6215_v12 }
 0x150   :  { %2869 = vmatpush1.bf16.msra.mxu1 %v6158_v60  ;;  %v6218_v60 = vld [vmem:[#allocation8 + $0x148] ss:$16 sps:$4 sm:$0xff]  }
 0x151   :  { %2870 = vmatprep.subr.bf16.mxu1 %v6166_v20  ;;  %v6223_v20 = vld [vmem:[#allocation8 + $0x124] ss:$16 sps:$4 sm:$0xff]  }
 0x152   :  { %2847 = vmatprep.subr.bf16.mxu0 %v6223_v20 }
 0x154   :  { %2871 = vmatpush1.bf16.msra.mxu1 %v6164_v22  ;;  %v6221_v22 = vld [vmem:[#allocation8 + $0x120] ss:$16 sps:$4 sm:$0xff]  }
 0x155   :  { %2872 = vmatprep.subr.bf16.mxu1 %v6172_v58  ;;  %v6226_v58 = vld [vmem:[#allocation8 + $0x12c] ss:$16 sps:$4 sm:$0xff]   ;;  %2848 = vmatpush2.bf16.msra.mxu0 %v6221_v22 }
 0x158   :  { %2873 = vmatpush1.bf16.msra.mxu1 %v6170_v30  ;;  %v6224_v30 = vld [vmem:[#allocation8 + $0x128] ss:$16 sps:$4 sm:$0xff]  }
 0x159   :  { %2874 = vmatprep.subr.bf16.mxu1 %v6178_v31  ;;  %v6229_v31 = vld [vmem:[#allocation8 + $0x104] ss:$16 sps:$4 sm:$0xff]  }
 0x15a   :  { %2849 = vmatprep.subr.bf16.mxu0 %v6229_v31 }
 0x15c   :  { %2875 = vmatpush1.bf16.msra.mxu1 %v6176_v33  ;;  %v6227_v33 = vld [vmem:[#allocation8 + $0x100] ss:$16 sps:$4 sm:$0xff]  }
 0x15d   :  { %2876 = vmatprep.subr.bf16.mxu1 %v6184_v36  ;;  %v6230_v36 = vld [vmem:[#allocation8 + $0x108] ss:$16 sps:$4 sm:$0xff]   ;;  %2850 = vmatpush2.bf16.msra.mxu0 %v6227_v33 }
 0x160   :  { %2877 = vmatpush1.bf16.msra.mxu1 %v6182_v37  ;;  %v6232_v37 = vld [vmem:[#allocation8 + $0x10c] ss:$16 sps:$4 sm:$0xff]  }
 0x161   :  { %2878 = vmatprep.subr.bf16.mxu1 %v6190_v39  ;;  %v6233_v39 = vld [vmem:[#allocation2 + $0x78] sm:$0xff]  }
 0x162   :  { %5659 = vmatprep.subr.bf16.mxu0 %v6233_v39  ;;  %v6238_v39 = vld [vmem:[#allocation2 + $0x28] sm:$0xff]  }
 0x164   :  { %2879 = vmatpush2.bf16.msra.mxu1 %v6188_v40 }
 0x165   :  { %2880 = vmatprep.subr.bf16.mxu1 %v6196_v44  ;;  %v7025_v44 = vsub.s32 0, %v6545_v1 }
 0x168   :  { %2881 = vmatpush2.bf16.msra.mxu1 %v6194_v47 }
 0x169   :  { %2882 = vmatprep.subr.bf16.mxu1 %v6202_v43 }
 0x16c   :  { %2883 = vmatpush2.bf16.msra.mxu1 %v6200_v50 }
 0x16d   :  { %2884 = vmatprep.subr.bf16.mxu1 %v6208_v52 }
 0x170   :  { %2885 = vmatpush2.bf16.msra.mxu1 %v6206_v53 }
 0x171   :  { %2886 = vmatprep.subr.bf16.mxu1 %v6214_v61 }
 0x174   :  { %2887 = vmatpush2.bf16.msra.mxu1 %v6212_v11 }
 0x175   :  { %2888 = vmatprep.subr.bf16.mxu1 %v6220_v17 }
 0x178   :  { %2889 = vmatpush2.bf16.msra.mxu1 %v6218_v60 }
 0x179   :  { %2890 = vmatprep.subr.bf16.mxu1 %v6226_v58 }
 0x17c   :  { %2891 = vmatpush2.bf16.msra.mxu1 %v6224_v30 }
 0x17d   :  { %2892 = vmatprep.subr.bf16.mxu1 %v6232_v37  ;;  %v6235_v37 = vld [vmem:[#allocation2 + $0x70] sm:$0xff]  }
 0x180   :  { %2893 = vmatpush2.bf16.msra.mxu1 %v6230_v36  ;;  %v6234_v36 = vld [vmem:[#allocation2 + $0x38] sm:$0xff]  }
 0x181   :  { %5869 = vmatprep.subr.mxu1 %v8033_v59 }
 0x1fb   :  { %v2326_v40 = vpop.f32.mrf.mxu1 }
 0x1fc   :  { %v2408_v43 = vrot.slane %v2326_v40, %v7025_v44  ;;  %v6239_v40 = vld [vmem:[#allocation2 + $0x60] sm:$0xff]  }
 0x1fd   :  { %v2328_v47 = vpop.f32.mrf.mxu1 }
 0x1fe   :  { %v2412_v50 = vrot.slane %v2328_v47, %v7025_v44  ;;  %v2413_v53 = vmul.f32 %v2408_v43, %v6790_v15  ;;  %v2415_v54 = vmul.f32 %v2408_v43, %v6811_v19  ;;  %v6240_v47 = vld [vmem:[#allocation2 + $0x20] sm:$0xff]   ;;  %v6241_v43 = vld [vmem:[#allocation2 + $0x58] sm:$0xff]  }
 0x200   :  { %v2414_v61 = vmul.f32 %v2412_v50, %v6765_v0  ;;  %v2416_v12 = vmul.f32 %v2412_v50, %v6785_v14  ;;  %v6236_v0 = vld [vmem:[#allocation2 + $0x30] sm:$0xff]   ;;  %v6237_v14 = vld [vmem:[#allocation2 + $0x68] sm:$0xff]   ;;  %v6242_v50 = vld [vmem:[#allocation2 + $0x18] sm:$0xff]  }
 0x203   :  { %v2400_v52 = vpop.f32.mrf.mxu1 }
 0x204   :  { %v2420_v55 = vrot.slane %v2400_v52, %v7025_v44  ;;  %v6243_v52 = vld [vmem:[#allocation2 + $0x50] sm:$0xff]  }
 0x205   :  { %v2402_v11 = vpop.f32.mrf.mxu1 }
 0x206   :  { %v2425_v16 = vadd.f32 %v2420_v55, %v2413_v53  ;;  %v2427_v17 = vadd.f32 %v2420_v55, %v2415_v54  ;;  %v2424_v60 = vrot.slane %v2402_v11, %v7025_v44  ;;  %v6244_v53 = vld [vmem:[#allocation2 + $0x10] sm:$0xff]   ;;  %v6245_v54 = vld [vmem:[#allocation2 + $0x48] sm:$0xff]   ;;  %v6248_v11 = vld [vmem:[#allocation2] sm:$0xff]  }
 0x207   :  { %v6246_v55 = vld [vmem:[#allocation2 + $0x8] sm:$0xff]  }
 0x208   :  { %v2426_v20 = vadd.f32 %v2424_v60, %v2414_v61  ;;  %v2428_v22 = vadd.f32 %v2424_v60, %v2416_v12  ;;  %v2429_v58 = vmax.f32 %v2425_v16, 0.0  ;;  %v2431_v30 = vmax.f32 %v2427_v17, 0.0  ;;  %v6247_v61 = vld [vmem:[#allocation2 + $0x40] sm:$0xff]  }
 0x209   :  { %v780_v12 = vand.u32 15, %v6553_v4  ;;  %v773_v16 = vand.u32 15, %v6559_v6  ;;  %v766_v17 = vand.u32 15, %v6565_v8 }
 0x20a   :  { %v2430_v31 = vmax.f32 %v2426_v20, 0.0  ;;  %v2432_v33 = vmax.f32 %v2428_v22, 0.0  ;;  %v2433_v19 = vpack.c.bf16 %v2431_v30, %v2429_v58  ;;  %v759_v22 = vand.u32 15, %v6571_v10 }
 0x20b   :  { %vm7040_vm9 = vcmp.eq.s32.totalorder %v780_v12, %v6547_v2  ;;  %vm7045_vm10 = vcmp.eq.s32.totalorder %v773_v16, %v6547_v2  ;;  %vm7059_vm11 = vcmp.eq.s32.totalorder %v766_v17, %v6547_v2  ;;  %v8126_v12 = vmov 0 }
 0x20c   :  { %v2434_v15 = vpack.c.bf16 %v2432_v33, %v2430_v31  ;;  %vm7072_vm12 = vcmp.eq.s32.totalorder %v759_v22, %v6547_v2  ;;  %v752_v31 = vand.u32 15, %v6602_v23  ;;  %v682_v16 = vand.u32 15, %v6833_v27 }
 0x20d   :  { %v675_v17 = vand.u32 15, %v6545_v1  ;;  %v8128_v22 = vmov 0 }
 0x20e   :  { %2851 = vmatprep.mubr.bf16.mxu0 %v2434_v15  ;;  %2894 = vmatprep.mubr.bf16.mxu1 %v2434_v15  ;;  %vm7094_vm13 = vcmp.eq.s32.totalorder %v752_v31, %v6547_v2  ;;  %vm7234_vm7 = vcmp.eq.s32.totalorder %v682_v16, %v6547_v2  ;;  %v8130_v31 = vmov 0 }
 0x20f   :  { %2852 = vmatmul.mubr.bf16.vlgmr.msra.gmra.mxu0 %v2433_v19  ;;  %2895 = vmatmul.mubr.bf16.vlgmr.msra.gmra.mxu1 %v2433_v19  ;;  %v8129_v22 = vsel %vm7234_vm7, 4294967295, %v8128_v22  ;;  %vm7240_vm8 = vcmp.eq.s32.totalorder %v675_v17, %v6547_v2 }
 0x210   :  { %5660 = vmatpush3.bf16.msra.mxu0 %v6234_v36  ;;  %3065 = vmatprep.mubr.bf16.mxu0 %v2434_v15  ;;  %v745_v15 = vand.u32 15, %v6608_v25  ;;  %v8131_v31 = vsel %vm7240_vm8, 4294967295, %v8130_v31 }
 0x211   :  { %5661 = vmatprep.subr.bf16.mxu0 %v6235_v37  ;;  %5870 = vmatpush3.msk.msra.mxu1 %vm7040_vm9, %v8031_v18 }
 0x212   :  { %5871 = vmatprep.subr.mxu1 %v8033_v59  ;;  %vm7107_vm14 = vcmp.eq.s32.totalorder %v745_v15, %v6547_v2 }
 0x213   :  { %5872 = vmatpush3.msk.msra.mxu1 %vm7045_vm10, %v8031_v18 }
 0x214   :  { %5662 = vmatpush3.bf16.msra.mxu0 %v6236_v0  ;;  %5873 = vmatprep.subr.mxu1 %v8033_v59  ;;  %v731_v0 = vand.u32 15, %v6645_v34 }
 0x215   :  { %5663 = vmatprep.subr.bf16.mxu0 %v6237_v14  ;;  %5874 = vmatpush3.msk.msra.mxu1 %vm7059_vm11, %v8031_v18 }
 0x216   :  { %5875 = vmatprep.subr.mxu1 %v8033_v59  ;;  %vm7135_vm0 = vcmp.eq.s32.totalorder %v731_v0, %v6547_v2 }
 0x217   :  { %5876 = vmatpush3.msk.msra.mxu1 %vm7072_vm12, %v8031_v18 }
 0x218   :  { %5664 = vmatpush3.bf16.msra.mxu0 %v6238_v39  ;;  %5877 = vmatprep.subr.mxu1 %v8033_v59  ;;  %v724_v39 = vand.u32 15, %v6675_v41 }
 0x219   :  { %5665 = vmatprep.subr.bf16.mxu0 %v6239_v40  ;;  %5878 = vmatpush3.msk.msra.mxu1 %vm7094_vm13, %v8031_v18 }
 0x21a   :  { %5879 = vmatprep.subr.mxu1 %v8033_v59  ;;  %vm7149_vm1 = vcmp.eq.s32.totalorder %v724_v39, %v6547_v2 }
 0x21b   :  { %5880 = vmatpush3.msk.msra.mxu1 %vm7107_vm14, %v8031_v18 }
 0x21c   :  { %5666 = vmatpush3.bf16.msra.mxu0 %v6240_v47  ;;  %5881 = vmatprep.subr.mxu1 %v8033_v59  ;;  %v717_v47 = vand.u32 15, %v6689_v45 }
 0x21d   :  { %5667 = vmatprep.subr.bf16.mxu0 %v6241_v43  ;;  %v8118_v43 = vmov 0 }
 0x21e   :  { %vm7163_vm2 = vcmp.eq.s32.totalorder %v717_v47, %v6547_v2 }
 0x21f   :  { %v8119_v43 = vsel %vm7163_vm2, 4294967295, %v8118_v43 }
 0x220   :  { %5668 = vmatpush3.bf16.msra.mxu0 %v6242_v50  ;;  %v710_v50 = vand.u32 15, %v6703_v48 }
 0x221   :  { %5669 = vmatprep.subr.bf16.mxu0 %v6243_v52  ;;  %v8120_v52 = vmov 0 }
 0x222   :  { %vm7177_vm3 = vcmp.eq.s32.totalorder %v710_v50, %v6547_v2 }
 0x223   :  { %v8121_v52 = vsel %vm7177_vm3, 4294967295, %v8120_v52 }
 0x224   :  { %5670 = vmatpush3.bf16.msra.mxu0 %v6244_v53  ;;  %v703_v53 = vand.u32 15, %v6717_v51 }
 0x225   :  { %5671 = vmatprep.subr.bf16.mxu0 %v6245_v54  ;;  %v8122_v54 = vmov 0 }
 0x226   :  { %vm7191_vm4 = vcmp.eq.s32.totalorder %v703_v53, %v6547_v2 }
 0x227   :  { %v8123_v54 = vsel %vm7191_vm4, 4294967295, %v8122_v54 }
 0x228   :  { %5672 = vmatpush3.bf16.msra.mxu0 %v6246_v55  ;;  %v696_v55 = vand.u32 15, %v6757_v62  ;;  %v8136_v62 = vmov 0.0  }
 0x229   :  { %5673 = vmatprep.subr.bf16.mxu0 %v6247_v61  ;;  %v8124_v61 = vmov 0 }
 0x22a   :  { %vm7205_vm5 = vcmp.eq.s32.totalorder %v696_v55, %v6547_v2 }
 0x22b   :  { %v8125_v61 = vsel %vm7205_vm5, 4294967295, %v8124_v61 }
 0x22c   :  { %5674 = vmatpush3.bf16.msra.mxu0 %v6248_v11  ;;  %v689_v11 = vand.u32 15, %v6780_v13 }
 0x22d   :  { %5904 = vmatprep.subr.mxu0 %v8033_v59 }
 0x22e   :  { %vm7219_vm6 = vcmp.eq.s32.totalorder %v689_v11, %v6547_v2 }
 0x22f   :  { %3066 = vmatmul.mubr.bf16.vlgmr.msra.gmra.mxu0 %v2433_v19  ;;  %v738_v19 = vand.u32 15, %v6622_v29  ;;  %v8127_v12 = vsel %vm7219_vm6, 4294967295, %v8126_v12 }
 0x230   :  { %5905 = vmatpush3.msk.msra.mxu0 %vm7040_vm9, %v8031_v18 }
 0x231   :  { %5906 = vmatprep.subr.mxu0 %v8033_v59  ;;  %vm7121_vm15 = vcmp.eq.s32.totalorder %v738_v19, %v6547_v2 }
 0x232   :  { %5907 = vmatpush3.msk.msra.mxu0 %vm7045_vm10, %v8031_v18  ;;  %5882 = vmatpush3.msk.msra.mxu1 %vm7121_vm15, %v8031_v18 }
 0x233   :  { %5908 = vmatprep.subr.mxu0 %v8033_v59  ;;  %5883 = vmatprep.subr.mxu1 %v8033_v59 }
 0x234   :  { %5909 = vmatpush3.msk.msra.mxu0 %vm7059_vm11, %v8031_v18  ;;  %5884 = vmatpush3.msk.msra.mxu1 %vm7135_vm0, %v8031_v18 }
 0x235   :  { %5910 = vmatprep.subr.mxu0 %v8033_v59  ;;  %5885 = vmatprep.subr.mxu1 %v8033_v59 }
 0x236   :  { %5911 = vmatpush3.msk.msra.mxu0 %vm7072_vm12, %v8031_v18  ;;  %5886 = vmatpush3.msk.msra.mxu1 %vm7149_vm1, %v8031_v18 }
 0x237   :  { %5912 = vmatprep.subr.mxu0 %v8033_v59  ;;  %5887 = vmatprep.subr.mxu1 %v8033_v59 }
 0x238   :  { %5913 = vmatpush3.msk.msra.mxu0 %vm7094_vm13, %v8031_v18  ;;  %5888 = vmatpush3.msk.msra.mxu1 %vm7163_vm2, %v8031_v18 }
 0x239   :  { %5914 = vmatprep.subr.mxu0 %v8033_v59  ;;  %5889 = vmatprep.subr.mxu1 %v8033_v59 }
 0x23a   :  { %5915 = vmatpush3.msk.msra.mxu0 %vm7107_vm14, %v8031_v18  ;;  %5890 = vmatpush3.msk.msra.mxu1 %vm7177_vm3, %v8031_v18 }
 0x23b   :  { %5916 = vmatprep.subr.mxu0 %v8033_v59  ;;  %5891 = vmatprep.subr.mxu1 %v8033_v59 }
 0x23c   :  { %5917 = vmatpush3.msk.msra.mxu0 %vm7121_vm15, %v8031_v18  ;;  %5892 = vmatpush3.msk.msra.mxu1 %vm7191_vm4, %v8031_v18 }
 0x23d   :  { %5918 = vmatprep.subr.mxu0 %v8033_v59  ;;  %5893 = vmatprep.subr.mxu1 %v8033_v59 }
 0x23e   :  { %5919 = vmatpush3.msk.msra.mxu0 %vm7135_vm0, %v8031_v18  ;;  %5894 = vmatpush3.msk.msra.mxu1 %vm7205_vm5, %v8031_v18 }
 0x23f   :  { %5920 = vmatprep.subr.mxu0 %v8033_v59  ;;  %5895 = vmatprep.subr.mxu1 %v8033_v59 }
 0x240   :  { %5921 = vmatpush3.msk.msra.mxu0 %vm7149_vm1, %v8031_v18  ;;  %5896 = vmatpush3.msk.msra.mxu1 %vm7219_vm6, %v8031_v18 }
 0x241   :  { %5922 = vmatprep.subr.mxu0 %v8033_v59  ;;  %5897 = vmatprep.subr.mxu1 %v8033_v59 }
 0x242   :  { %5923 = vmatpush3.msk.msra.mxu0 %vm7163_vm2, %v8031_v18  ;;  %5898 = vmatpush3.msk.msra.mxu1 %vm7234_vm7, %v8031_v18 }
 0x243   :  { %5924 = vmatprep.subr.mxu0 %v8033_v59  ;;  %5899 = vmatprep.subr.mxu1 %v8033_v59 }
 0x244   :  { %5925 = vmatpush3.msk.msra.mxu0 %vm7177_vm3, %v8031_v18  ;;  %5900 = vmatpush3.msk.msra.mxu1 %vm7240_vm8, %v8031_v18 }
 0x245   :  { %5926 = vmatprep.subr.mxu0 %v8033_v59  ;;  %5939 = vmatprep.subr.mxu1 %v8033_v59 }
 0x246   :  { %5927 = vmatpush3.msk.msra.mxu0 %vm7191_vm4, %v8031_v18 }
 0x247   :  { %5928 = vmatprep.subr.mxu0 %v8033_v59 }
 0x248   :  { %5929 = vmatpush3.msk.msra.mxu0 %vm7205_vm5, %v8031_v18  ;;  %vm8048_vm5 = vmmov 0  }
 0x249   :  { %5930 = vmatprep.subr.mxu0 %v8033_v59  ;;  %5901 = vmatprep.mubr.msk.f32.mxu1 %vm8048_vm5, %v8033_v59 }
 0x24a   :  { %5931 = vmatpush3.msk.msra.mxu0 %vm7219_vm6, %v8031_v18  ;;  %5936 = vmatprep.mubr.msk.f32.mxu0 %vm8048_vm5, %v8033_v59  ;;  %vm8146_vm6 = vmmov 0  }
 0x24b   :  { %5932 = vmatprep.subr.mxu0 %v8033_v59 }
 0x24c   :  { %5933 = vmatpush3.msk.msra.mxu0 %vm7234_vm7, %v8031_v18 }
 0x24d   :  { %5934 = vmatprep.subr.mxu0 %v8033_v59 }
 0x24e   :  { %5935 = vmatpush3.msk.msra.mxu0 %vm7240_vm8, %v8031_v18 }
 0x24f   :  { %5973 = vmatprep.subr.bf16.mxu0 %v8033_v59 }
 0x2cf   :  { %v7264_v15 = vpop.f32.mrf.mxu0 }
 0x2d0   :  { %8132 = vst [vmem:[#allocation22_spill] sm:$0xff] %v7264_v15 }
 0x2d1   :  { %v7266_v19 = vpop.f32.mrf.mxu0 }
 0x2d2   :  { %8133 = vst [vmem:[#allocation23_spill] sm:$0xff] %v7266_v19 }
 0x2d3   :  { %v7268_v0 = vpop.f32.mrf.mxu0 }
 0x2d4   :  { %8134 = vst [vmem:[#allocation24_spill] sm:$0xff] %v7268_v0 }
 0x2d5   :  { %v7270_v39 = vpop.f32.mrf.mxu0 }
 0x2d6   :  { %8135 = vst [vmem:[#allocation25_spill] sm:$0xff] %v7270_v39 }
 0x2ef   :  { %v5675_v47 = vpop.f32.mrf.mxu0 }
 0x2f1   :  { %v5676_v50 = vpop.f32.mrf.mxu0 }
 0x2f2   :  { %v7272_v55 = vadd.f32 %v5676_v50, %v5675_v47 }
 0x2f3   :  { %v5678_v53 = vpop.f32.mrf.mxu0 }
 0x2f4   :  { %v3153_v17 = vmul.f32 %v7272_v55, %v7272_v55 }
 0x2f5   :  { %v5679_v11 = vpop.f32.mrf.mxu0 }
 0x2f6   :  { %v7274_v16 = vadd.f32 %v5679_v11, %v5678_v53 }
 0x2f8   :  { %v3076_v18 = vadd.f32 %v7274_v16, %v7272_v55  ;;  %v3154_v59 = vmul.f32 %v7274_v16, %v7274_v16 }
 0x2fa   :  { %v3077_v0 = vrot.slane %v3076_v18, 4  ;;  %v3155_v19 = vadd.f32 %v3154_v59, %v3153_v17  ;;  %v8137_v59 = vmov 0 }
 0x2fc   :  { %v3078_v39 = vadd.f32 %v3077_v0, %v3076_v18  ;;  %v3156_v15 = vrot.slane %v3155_v19, 4  ;;  %v915_v18 = vand.u32 15, %v6547_v2 }
 0x2fe   :  { %v3079_v57 = vrot.slane %v3078_v39, 2  ;;  %v3157_v35 = vadd.f32 %v3156_v15, %v3155_v19  ;;  %vm7288_vm8 = vcmp.eq.s32.totalorder %v6833_v27, %v915_v18  ;;  %vm7293_vm7 = vcmp.eq.s32.totalorder %v6545_v1, %v915_v18  ;;  %v6257_v15 = vld [vmem:[#allocation5 + $0x20] sm:$0xff]   ;;  %v7309_v19 = vpop.f32.mrf.mxu1 }
 0x2ff   :  { %v8138_v59 = vsel %vm7288_vm8, 4294967295, %v8137_v59  ;;  %8142 = vst [vmem:[#allocation26_spill] sm:$0xff] %v7309_v19  ;;  %v3074_v19 = vld [vmem:[%s8017_s4] sm:$0x1] }
 0x300   :  { %v3080_v47 = vadd.f32 %v3079_v57, %v3078_v39  ;;  %v3158_v50 = vrot.slane %v3157_v35, 2  ;;  %v6255_v57 = vld [vmem:[#allocation5 + $0x28] sm:$0xff]   ;;  %v7311_v0 = vpop.f32.mrf.mxu1 }
 0x301   :  { %8143 = vst [vmem:[#allocation27_spill] sm:$0xff] %v7311_v0 }
 0x302   :  { %v3081_v26 = vrot.slane %v3080_v47, 1  ;;  %v3159_v53 = vadd.f32 %v3158_v50, %v3157_v35  ;;  %v6253_v35 = vld [vmem:[#allocation5 + $0x30] sm:$0xff]   ;;  %v7313_v39 = vpop.f32.mrf.mxu1 }
 0x303   :  { %8144 = vst [vmem:[#allocation28_spill] sm:$0xff] %v7313_v39 }
 0x304   :  { %v3082_v11 = vadd.f32 %v3081_v26, %v3080_v47  ;;  %v3160_v13 = vrot.slane %v3159_v53, 1  ;;  %v8139_v26 = vmov 0  ;;  %v7315_v17 = vpop.f32.mrf.mxu1 }
 0x305   :  { %v8140_v26 = vsel %vm7293_vm7, 4294967295, %v8139_v26  ;;  %8145 = vst [vmem:[#allocation29_spill] sm:$0xff] %v7315_v17 }
 0x306   :  { %5902 = vmatmul.mubr.f32.vlgmr.msra.gmra.mxu1 %v3082_v11  ;;  %v3161_v63 = vadd.f32 %v3160_v13, %v3159_v53  ;;  %v8141_v13 = vmov 1.0  }
 0x307   :  { %5943 = vmatprep.mubr.msk.f32.mxu1 %vm8048_vm5, %v8136_v62  ;;  %5940 = vmatpush3.msk.msra.mxu1 %vm7288_vm8, %v8141_v13 }
 0x308   :  { %5937 = vmatmul.mubr.f32.vlgmr.msra.gmra.mxu0 %v3161_v63  ;;  %5941 = vmatprep.subr.mxu1 %v8136_v62  ;;  %v6251_v63 = vld [vmem:[#allocation5 + $0x38] sm:$0xff]  }
 0x309   :  { %5989 = vmatprep.mubr.msk.bf16.mxu0 %vm8048_vm5, %v8136_v62  ;;  %5942 = vmatpush3.msk.msra.mxu1 %vm7293_vm7, %v8141_v13  ;;  %vm8052_vm5 = vcmask 130048  }
 0x30a   :  { %5946 = vmatprep.subr.mxu1 %v8136_v62  ;;  %5974 = vmatpush3.bf16.msra.mxu0 %v6251_v63 }
 0x30b   :  { %5975 = vmatprep.subr.bf16.mxu0 %v8136_v62 }
 0x30e   :  { %5976 = vmatpush3.bf16.msra.mxu0 %v6253_v35 }
 0x30f   :  { %5977 = vmatprep.subr.bf16.mxu0 %v8136_v62 }
 0x312   :  { %5978 = vmatpush3.bf16.msra.mxu0 %v6255_v57 }
 0x313   :  { %5979 = vmatprep.subr.bf16.mxu0 %v8136_v62 }
 0x316   :  { %5980 = vmatpush3.bf16.msra.mxu0 %v6257_v15 }
 0x317   :  { %5981 = vmatprep.subr.bf16.mxu0 %v8136_v62 }
 0x3c6   :  { %v3149_v47 = vpop.f32.mrf.mxu1 }
 0x3c7   :  { %v3232_v50 = vmul.f32 0.0078125, %v3149_v47  ;;  %v3075_v47 = vld [vmem:[%s8018_s5] sm:$0x1] }
 0x3c8   :  { %v5903_v53 = vpop.f32.mrf.mxu1  ;;  %v3228_v11 = vpop.f32.mrf.mxu0 }
 0x3c9   :  { %v3234_v18 = vmul.f32 %v3232_v50, %v3232_v50  ;;  %v3233_v63 = vmul.f32 0.0078125, %v3228_v11 }
 0x3ca   :  { %v5938_v35 = vpop.f32.mrf.mxu0 }
 0x3cb   :  { %v3235_v57 = vsub.f32 %v3233_v63, %v3234_v18  ;;  %v6258_v18 = vld [vmem:[#allocation5 + $0x50] sm:$0xff]   ;;  %v6259_v63 = vld [vmem:[#allocation5 + $0x18] sm:$0xff]   ;;  %v6260_v35 = vld [vmem:[#allocation5 + $0x48] sm:$0xff]  }
 0x3cc   :  { %5982 = vmatpush3.bf16.msra.mxu0 %v6259_v63 }
 0x3cd   :  { %v3236_v56 = vmax.f32 %v3235_v57, 0.0  ;;  %5983 = vmatprep.subr.bf16.mxu0 %v8136_v62  ;;  %v6261_v57 = vld [vmem:[#allocation5 + $0x10] sm:$0xff]  }
 0x3cf   :  { %v3237_v15 = vadd.f32 1e-05, %v3236_v56  ;;  %v6249_v56 = vld [vmem:[#allocation5 + $0x78] sm:$0xff]  }
 0x3d0   :  { %5984 = vmatpush3.bf16.msra.mxu0 %v6261_v57  ;;  %v3414_v57 = vand.u32 7, %v6833_v27 }
 0x3d1   :  { %6323 = vrsqrt.f32 %v3237_v15  ;;  %5985 = vmatprep.subr.bf16.mxu0 %v8136_v62  ;;  %v6262_v15 = vld [vmem:[#allocation5 + $0x40] sm:$0xff]  }
 0x3de   :  { %v6324_v0 = vpop.eup %6323 }
 0x3df   :  { %v3239_v39 = vmul.f32 %v6324_v0, %v3074_v19  ;;  %v6250_v19 = vld [vmem:[#allocation5 + $0x70] sm:$0xff]   ;;  %v6252_v0 = vld [vmem:[#allocation5 + $0x68] sm:$0xff]  }
 0x3e1   :  { %5944 = vmatmul.mubr.msk.f32.vlgmr.msra.gmra.mxu1 %vm8052_vm5, %v3239_v39  ;;  %v3240_v53 = vmul.f32 %v3239_v39, %v3232_v50  ;;  %v6254_v39 = vld [vmem:[#allocation5 + $0x60] sm:$0xff]   ;;  %v6256_v50 = vld [vmem:[#allocation5 + $0x58] sm:$0xff]  }
 0x3e2   :  { %5947 = vmatpush3.msk.msra.mxu1 %vm7288_vm8, %v8141_v13  ;;  %5950 = vmatprep.mubr.msk.f32.mxu1 %vm8146_vm6, %v8136_v62 }
 0x3e3   :  { %5948 = vmatprep.subr.mxu1 %v8136_v62  ;;  %v3241_v11 = vsub.f32 %v3075_v47, %v3240_v53  ;;  %v6263_v47 = vld [vmem:[#allocation5 + $0x8] sm:$0xff]   ;;  %v6264_v53 = vld [vmem:[#allocation5] sm:$0xff]  }
 0x3e4   :  { %5949 = vmatpush3.msk.msra.mxu1 %vm7293_vm7, %v8141_v13  ;;  %5986 = vmatpush3.bf16.msra.mxu0 %v6263_v47  ;;  %vm5585_vm7 = vcmp.ne.s32.totalorder %v3414_v57, 0 }
 0x3e5   :  { %5951 = vmatmul.mubr.msk.f32.vlgmr.msra.gmra.mxu1 %vm8052_vm5, %v3241_v11  ;;  %5953 = vmatprep.subr.bf16.mxu1 %v8136_v62  ;;  %vm3433_vm5 = vcmp.lt.s32.totalorder %v6545_v1, 1 }
 0x3e6   :  { %5954 = vmatpush3.bf16.msra.mxu1 %v6249_v56  ;;  %5969 = vmatprep.mubr.msk.bf16.mxu1 %vm8146_vm6, %v8136_v62 }
 0x3e7   :  { %5955 = vmatprep.subr.bf16.mxu1 %v8136_v62  ;;  %5987 = vmatprep.subr.bf16.mxu0 %v8136_v62 }
 0x3e8   :  { %5988 = vmatpush3.bf16.msra.mxu0 %v6264_v53 }
 0x3e9   :  { %6013 = vmatprep.subr.mxu0 %v8136_v62 }
 0x3ea   :  { %5956 = vmatpush3.bf16.msra.mxu1 %v6250_v19 }
 0x3eb   :  { %5957 = vmatprep.subr.bf16.mxu1 %v8136_v62 }
 0x3ee   :  { %5958 = vmatpush3.bf16.msra.mxu1 %v6252_v0 }
 0x3ef   :  { %5959 = vmatprep.subr.bf16.mxu1 %v8136_v62 }
 0x3f2   :  { %5960 = vmatpush3.bf16.msra.mxu1 %v6254_v39 }
 0x3f3   :  { %5961 = vmatprep.subr.bf16.mxu1 %v8136_v62 }
 0x3f6   :  { %5962 = vmatpush3.bf16.msra.mxu1 %v6256_v50 }
 0x3f7   :  { %5963 = vmatprep.subr.bf16.mxu1 %v8136_v62 }
 0x3fa   :  { %5964 = vmatpush3.bf16.msra.mxu1 %v6258_v18 }
 0x3fb   :  { %5965 = vmatprep.subr.bf16.mxu1 %v8136_v62 }
 0x3fe   :  { %5966 = vmatpush3.bf16.msra.mxu1 %v6260_v35  ;;  %v3407_v35 = vand.u32 7, %v6545_v1 }
 0x3ff   :  { %5967 = vmatprep.subr.bf16.mxu1 %v8136_v62 }
 0x400   :  { %vm5586_vm8 = vcmp.ne.s32.totalorder %v3407_v35, 0 }
 0x401   :  { %vm5397_vm4 = vmpackc.low %vm5585_vm7, %vm5586_vm8  ;;  %vm5587_vm7 = vcmp.ne.s32.totalorder %v3414_v57, 7  ;;  %vm5588_vm8 = vcmp.ne.s32.totalorder %v3407_v35, 7 }
 0x402   :  { %5968 = vmatpush3.bf16.msra.mxu1 %v6262_v15 }
 0x403   :  { %5993 = vmatprep.subr.bf16.mxu1 %v8136_v62 }
 0x4a1   :  { %v3312_v56 = vpop.f32.mrf.mxu1 }
 0x4a2   :  { %v3392_v11 = vrot.slane %v3312_v56, %v7025_v44  ;;  %v6265_v56 = vld [vmem:[#allocation5 + $0xb8] sm:$0xff]  }
 0x4a3   :  { %v5945_v19 = vpop.f32.mrf.mxu1 }
 0x4a4   :  { %v3393_v39 = vmul.f32 %v7272_v55, %v3392_v11  ;;  %v3394_v50 = vmul.f32 %v7274_v16, %v3392_v11 }
 0x4a5   :  { %v3385_v0 = vpop.f32.mrf.mxu1 }
 0x4a6   :  { %v3398_v18 = vrot.slane %v3385_v0, %v7025_v44 }
 0x4a7   :  { %v5952_v63 = vpop.f32.mrf.mxu1 }
 0x4a8   :  { %v3399_v15 = vadd.f32 %v3398_v18, %v3393_v39  ;;  %v3400_v47 = vadd.f32 %v3398_v18, %v3394_v50  ;;  %v6266_v50 = vld [vmem:[#allocation5 + $0xb0] sm:$0xff]   ;;  %v6267_v18 = vld [vmem:[#allocation5 + $0xa8] sm:$0xff]   ;;  %v6268_v63 = vld [vmem:[#allocation5 + $0xa0] sm:$0xff]  }
 0x4aa   :  { %v7355_v53 = vmax.f32 %v3399_v15, 0.0  ;;  %v7357_v17 = vmax.f32 %v3400_v47, 0.0  ;;  %v6269_v15 = vld [vmem:[#allocation5 + $0x98] sm:$0xff]   ;;  %v6270_v47 = vld [vmem:[#allocation5 + $0x90] sm:$0xff]  }
 0x4ac   :  { %v3431_v55 = vrot.slane %v7355_v53, 7  ;;  %v3432_v16 = vrot.slane %v7357_v17, 7  ;;  %v3470_v11 = vpack.c.bf16 %v7357_v17, %v7355_v53 }
 0x4ae   :  { %v3434_v19 = vsel %vm3433_vm5, %v3431_v55, %v3432_v16  ;;  %v3435_v0 = vsel %vm3433_vm5, %v3432_v16, %v3431_v55  ;;  %5970 = vmatmul.mubr.bf16.vlgmr.msra.gmra.mxu1 %v3470_v11  ;;  %v6271_v55 = vld [vmem:[#allocation5 + $0x88] sm:$0xff]   ;;  %v3442_v16 = vrot.slane %v7355_v53, 1  ;;  %v6272_v11 = vld [vmem:[#allocation5 + $0x80] sm:$0xff]   ;;  %vm8147_vm5 = vnez %v8123_v54 }
 0x4af   :  { %v5398_v39 = vpack.c.bf16 %v3434_v19, %v3435_v0  ;;  %5994 = vmatpush3.bf16.msra.mxu1 %v6265_v56  ;;  %6009 = vmatprep.mubr.msk.bf16.mxu1 %vm8146_vm6, %v8136_v62  ;;  %v3443_v56 = vrot.slane %v7357_v17, 1 }
 0x4b0   :  { %5995 = vmatprep.subr.bf16.mxu1 %v8136_v62 }
 0x4b1   :  { %5990 = vmatmul.mubr.msk.bf16.vlgmr.msra.gmra.mxu0 %vm5397_vm4, %v5398_v39  ;;  %vm3444_vm4 = vcmp.lt.s32.totalorder %v6545_v1, 7 }
 0x4b2   :  { %6014 = vmatpush3.msk.msra.mxu0 %vm7040_vm9, %v8141_v13  ;;  %6045 = vmatprep.mubr.msk.f32.mxu0 %vm8146_vm6, %v8136_v62  ;;  %v3445_v17 = vsel %vm3444_vm4, %v3442_v16, %v3443_v56  ;;  %v3446_v53 = vsel %vm3444_vm4, %v3443_v56, %v3442_v16  ;;  %vm8150_vm4 = vnez %v8129_v22 }
 0x4b3   :  { %6015 = vmatprep.subr.mxu0 %v8136_v62  ;;  %5996 = vmatpush3.bf16.msra.mxu1 %v6266_v50  ;;  %v5411_v57 = vpack.c.bf16 %v3446_v53, %v3445_v17 }
 0x4b4   :  { %6016 = vmatpush3.msk.msra.mxu0 %vm7045_vm10, %v8141_v13  ;;  %5997 = vmatprep.subr.bf16.mxu1 %v8136_v62 }
 0x4b5   :  { %6017 = vmatprep.subr.mxu0 %v8136_v62 }
 0x4b6   :  { %6018 = vmatpush3.msk.msra.mxu0 %vm7059_vm11, %v8141_v13 }
 0x4b7   :  { %6019 = vmatprep.subr.mxu0 %v8136_v62  ;;  %5998 = vmatpush3.bf16.msra.mxu1 %v6267_v18 }
 0x4b8   :  { %6020 = vmatpush3.msk.msra.mxu0 %vm7072_vm12, %v8141_v13  ;;  %5999 = vmatprep.subr.bf16.mxu1 %v8136_v62 }
 0x4b9   :  { %6021 = vmatprep.subr.mxu0 %v8136_v62 }
 0x4ba   :  { %6022 = vmatpush3.msk.msra.mxu0 %vm7094_vm13, %v8141_v13 }
 0x4bb   :  { %6023 = vmatprep.subr.mxu0 %v8136_v62  ;;  %6000 = vmatpush3.bf16.msra.mxu1 %v6268_v63 }
 0x4bc   :  { %6024 = vmatpush3.msk.msra.mxu0 %vm7107_vm14, %v8141_v13  ;;  %6001 = vmatprep.subr.bf16.mxu1 %v8136_v62 }
 0x4bd   :  { %6025 = vmatprep.subr.mxu0 %v8136_v62 }
 0x4be   :  { %6026 = vmatpush3.msk.msra.mxu0 %vm7121_vm15, %v8141_v13 }
 0x4bf   :  { %6027 = vmatprep.subr.mxu0 %v8136_v62  ;;  %6002 = vmatpush3.bf16.msra.mxu1 %v6269_v15 }
 0x4c0   :  { %6028 = vmatpush3.msk.msra.mxu0 %vm7135_vm0, %v8141_v13  ;;  %6003 = vmatprep.subr.bf16.mxu1 %v8136_v62 }
 0x4c1   :  { %6029 = vmatprep.subr.mxu0 %v8136_v62 }
 0x4c2   :  { %6030 = vmatpush3.msk.msra.mxu0 %vm7149_vm1, %v8141_v13 }
 0x4c3   :  { %6031 = vmatprep.subr.mxu0 %v8136_v62  ;;  %6004 = vmatpush3.bf16.msra.mxu1 %v6270_v47 }
 0x4c4   :  { %6032 = vmatpush3.msk.msra.mxu0 %vm7163_vm2, %v8141_v13  ;;  %6005 = vmatprep.subr.bf16.mxu1 %v8136_v62  ;;  %vm8149_vm2 = vnez %v8127_v12 }
 0x4c5   :  { %6033 = vmatprep.subr.mxu0 %v8136_v62 }
 0x4c6   :  { %6034 = vmatpush3.msk.msra.mxu0 %vm7177_vm3, %v8141_v13  ;;  %vm8148_vm3 = vnez %v8125_v61 }
 0x4c7   :  { %6035 = vmatprep.subr.mxu0 %v8136_v62  ;;  %6006 = vmatpush3.bf16.msra.mxu1 %v6271_v55 }
 0x4c8   :  { %6036 = vmatpush3.msk.msra.mxu0 %vm8147_vm5, %v8141_v13  ;;  %6007 = vmatprep.subr.bf16.mxu1 %v8136_v62  ;;  %vm5410_vm5 = vmpackc.low %vm5587_vm7, %vm5588_vm8  ;;  %vm8151_vm7 = vnez %v8131_v31 }
 0x4c9   :  { %6037 = vmatprep.subr.mxu0 %v8136_v62 }
 0x4ca   :  { %6038 = vmatpush3.msk.msra.mxu0 %vm8148_vm3, %v8141_v13 }
 0x4cb   :  { %6039 = vmatprep.subr.mxu0 %v8136_v62  ;;  %6008 = vmatpush3.bf16.msra.mxu1 %v6272_v11 }
 0x4cc   :  { %6040 = vmatpush3.msk.msra.mxu0 %vm8149_vm2, %v8141_v13  ;;  %6048 = vmatprep.subr.mxu1 %v8136_v62 }
 0x4cd   :  { %6041 = vmatprep.subr.mxu0 %v8136_v62 }
 0x4ce   :  { %6042 = vmatpush3.msk.msra.mxu0 %vm8150_vm4, %v8141_v13  ;;  %6010 = vmatmul.mubr.msk.bf16.vlgmr.msra.gmra.mxu1 %vm5410_vm5, %v5411_v57 }
 0x4cf   :  { %6043 = vmatprep.subr.mxu0 %v8136_v62  ;;  %6049 = vmatpush3.msk.msra.mxu1 %vm7040_vm9, %v8141_v13  ;;  %vm8152_vm9 = vnez %v8119_v43 }
 0x4d0   :  { %6044 = vmatpush3.msk.msra.mxu0 %vm8151_vm7, %v8141_v13  ;;  %6050 = vmatprep.subr.mxu1 %v8136_v62 }
 0x4d1   :  { %6080 = vmatprep.mubr.msk.f32.mxu1 %vm8146_vm6, %v8136_v62  ;;  %6051 = vmatpush3.msk.msra.mxu1 %vm7045_vm10, %v8141_v13  ;;  %vm8153_vm10 = vnez %v8121_v52 }
 0x4d2   :  { %6083 = vmatprep.subr.mxu0 %v8136_v62  ;;  %6052 = vmatprep.subr.mxu1 %v8136_v62 }
 0x4d3   :  { %6053 = vmatpush3.msk.msra.mxu1 %vm7059_vm11, %v8141_v13  ;;  %vm8154_vm11 = vnez %v8123_v54 }
 0x4d4   :  { %6054 = vmatprep.subr.mxu1 %v8136_v62 }
 0x4d5   :  { %6055 = vmatpush3.msk.msra.mxu1 %vm7072_vm12, %v8141_v13  ;;  %vm8155_vm12 = vnez %v8138_v59  ;;  %v6287_v59 = vld [vmem:[#allocation7 + $0xa4] ss:$16 sps:$4 sm:$0xff]  }
 0x4d6   :  { %6056 = vmatprep.subr.mxu1 %v8136_v62 }
 0x4d7   :  { %6057 = vmatpush3.msk.msra.mxu1 %vm7094_vm13, %v8141_v13  ;;  %vm8156_vm13 = vnez %v8140_v26  ;;  %v6305_v26 = vld [vmem:[#allocation7 + $0x44] ss:$16 sps:$4 sm:$0xff]  }
 0x4d8   :  { %6058 = vmatprep.subr.mxu1 %v8136_v62 }
 0x4d9   :  { %6059 = vmatpush3.msk.msra.mxu1 %vm7107_vm14, %v8141_v13  ;;  %vm8157_vm14 = vcmask 130048  }
 0x4da   :  { %6060 = vmatprep.subr.mxu1 %v8136_v62 }
 0x4db   :  { %6061 = vmatpush3.msk.msra.mxu1 %vm7121_vm15, %v8141_v13  ;;  %vm8158_vm15 = vmmov %vm8157_vm14 }
 0x4dc   :  { %6062 = vmatprep.subr.mxu1 %v8136_v62 }
 0x4dd   :  { %6063 = vmatpush3.msk.msra.mxu1 %vm7135_vm0, %v8141_v13 }
 0x4de   :  { %6064 = vmatprep.subr.mxu1 %v8136_v62 }
 0x4df   :  { %6065 = vmatpush3.msk.msra.mxu1 %vm7149_vm1, %v8141_v13 }
 0x4e0   :  { %6066 = vmatprep.subr.mxu1 %v8136_v62 }
 0x4e1   :  { %6067 = vmatpush3.msk.msra.mxu1 %vm8152_vm9, %v8141_v13 }
 0x4e2   :  { %6068 = vmatprep.subr.mxu1 %v8136_v62 }
 0x4e3   :  { %6069 = vmatpush3.msk.msra.mxu1 %vm8153_vm10, %v8141_v13 }
 0x4e4   :  { %6070 = vmatprep.subr.mxu1 %v8136_v62 }
 0x4e5   :  { %6071 = vmatpush3.msk.msra.mxu1 %vm8154_vm11, %v8141_v13 }
 0x4e6   :  { %6072 = vmatprep.subr.mxu1 %v8136_v62 }
 0x4e7   :  { %6073 = vmatpush3.msk.msra.mxu1 %vm8148_vm3, %v8141_v13 }
 0x4e8   :  { %6074 = vmatprep.subr.mxu1 %v8136_v62 }
 0x4e9   :  { %6075 = vmatpush3.msk.msra.mxu1 %vm8149_vm2, %v8141_v13 }
 0x4ea   :  { %6076 = vmatprep.subr.mxu1 %v8136_v62 }
 0x4eb   :  { %6077 = vmatpush3.msk.msra.mxu1 %vm8150_vm4, %v8141_v13 }
 0x4ec   :  { %6078 = vmatprep.subr.mxu1 %v8136_v62 }
 0x4ed   :  { %6079 = vmatpush3.msk.msra.mxu1 %vm8151_vm7, %v8141_v13 }
 0x56e   :  { %v3570_v60 = vpop.f32.mrf.mxu1 }
 0x570   :  { %v5971_v20 = vpop.f32.mrf.mxu1 }
 0x571   :  { %v3659_v58 = vpop.f32.mrf.mxu0  ;;  %v6278_v20 = vld [vmem:[#allocation7 + $0xec] ss:$16 sps:$4 sm:$0xff]  }
 0x572   :  { %v3573_v30 = vpop.f32.mrf.mxu1  ;;  %v3660_v43 = vadd.f32 %v3659_v58, %v3570_v60  ;;  %v6276_v60 = vld [vmem:[#allocation7 + $0xe8] ss:$16 sps:$4 sm:$0xff]   ;;  %v6284_v58 = vld [vmem:[#allocation7 + $0xcc] ss:$16 sps:$4 sm:$0xff]   ;;  %4339 = vmatprep.subr.bf16.mxu1 %v6278_v20  ;;  %v6293_v20 = vld [vmem:[#allocation7 + $0x84] ss:$16 sps:$4 sm:$0xff]  }
 0x573   :  { %v5991_v33 = vpop.f32.mrf.mxu0 }
 0x574   :  { %v5972_v36 = vpop.f32.mrf.mxu1  ;;  %v6290_v33 = vld [vmem:[#allocation7 + $0xac] ss:$16 sps:$4 sm:$0xff]  }
 0x575   :  { %v3662_v37 = vpop.f32.mrf.mxu0  ;;  %v6288_v36 = vld [vmem:[#allocation7 + $0xa8] ss:$16 sps:$4 sm:$0xff]  }
 0x576   :  { %v3663_v54 = vadd.f32 %v3662_v37, %v3573_v30  ;;  %v6282_v30 = vld [vmem:[#allocation7 + $0xc8] ss:$16 sps:$4 sm:$0xff]   ;;  %v6296_v37 = vld [vmem:[#allocation7 + $0x8c] ss:$16 sps:$4 sm:$0xff]  }
 0x577   :  { %v5992_v14 = vpop.f32.mrf.mxu0 }
 0x578   :  { %v6294_v14 = vld [vmem:[#allocation7 + $0x88] ss:$16 sps:$4 sm:$0xff]  }
 0x58e   :  { %v3766_v40 = vpop.f32.mrf.mxu1 }
 0x58f   :  { %v7516_v61 = vadd.f32 %v3766_v40, %v3660_v43  ;;  %v6302_v40 = vld [vmem:[#allocation7 + $0x6c] ss:$16 sps:$4 sm:$0xff]   ;;  %v6300_v43 = vld [vmem:[#allocation7 + $0x68] ss:$16 sps:$4 sm:$0xff]  }
 0x590   :  { %v6011_v52 = vpop.f32.mrf.mxu1 }
 0x591   :  { %v3854_v31 = vmul.f32 %v7516_v61, %v7516_v61 }
 0x592   :  { %v3769_v12 = vpop.f32.mrf.mxu1 }
 0x593   :  { %v7518_v22 = vadd.f32 %v3769_v12, %v3663_v54 }
 0x594   :  { %v6012_v35 = vpop.f32.mrf.mxu1 }
 0x595   :  { %v3777_v19 = vadd.f32 %v7518_v22, %v7516_v61  ;;  %v3855_v0 = vmul.f32 %v7518_v22, %v7518_v22 }
 0x597   :  { %v3778_v39 = vrot.slane %v3777_v19, 4  ;;  %v3856_v50 = vadd.f32 %v3855_v0, %v3854_v31 }
 0x599   :  { %v3779_v18 = vadd.f32 %v3778_v39, %v3777_v19  ;;  %v3857_v63 = vrot.slane %v3856_v50, 4 }
 0x59b   :  { %v3780_v15 = vrot.slane %v3779_v18, 2  ;;  %v3858_v47 = vadd.f32 %v3857_v63, %v3856_v50  ;;  %v3775_v63 = vld [vmem:[%s8020_s7] sm:$0x1] }
 0x59d   :  { %v3781_v55 = vadd.f32 %v3780_v15, %v3779_v18  ;;  %v3859_v16 = vrot.slane %v3858_v47, 2 }
 0x59f   :  { %v3782_v56 = vrot.slane %v3781_v55, 1  ;;  %v3860_v11 = vadd.f32 %v3859_v16, %v3858_v47 }
 0x5a1   :  { %v3783_v17 = vadd.f32 %v3782_v56, %v3781_v55  ;;  %v3861_v53 = vrot.slane %v3860_v11, 1  ;;  %v3776_v55 = vld [vmem:[%s8021_s8] sm:$0x1]  ;;  %v6275_v56 = vld [vmem:[#allocation7 + $0xe4] ss:$16 sps:$4 sm:$0xff]  }
 0x5a3   :  { %6046 = vmatmul.mubr.f32.vlgmr.msra.gmra.mxu0 %v3783_v17  ;;  %v3862_v57 = vadd.f32 %v3861_v53, %v3860_v11  ;;  %v6273_v11 = vld [vmem:[#allocation7 + $0xe0] ss:$16 sps:$4 sm:$0xff]   ;;  %v6281_v53 = vld [vmem:[#allocation7 + $0xc4] ss:$16 sps:$4 sm:$0xff]  }
 0x5a4   :  { %6084 = vmatpush3.msk.msra.mxu0 %vm8155_vm12, %v8141_v13  ;;  %6087 = vmatprep.mubr.msk.f32.mxu0 %vm8146_vm6, %v8136_v62 }
 0x5a5   :  { %6081 = vmatmul.mubr.f32.vlgmr.msra.gmra.mxu1 %v3862_v57  ;;  %6085 = vmatprep.subr.mxu0 %v8136_v62  ;;  %v6279_v57 = vld [vmem:[#allocation7 + $0xc0] ss:$16 sps:$4 sm:$0xff]  }
 0x5a6   :  { %6086 = vmatpush3.msk.msra.mxu0 %vm8156_vm13, %v8141_v13  ;;  %4340 = vmatpush1.bf16.msra.mxu1 %v6276_v60  ;;  %v6285_v60 = vld [vmem:[#allocation7 + $0xa0] ss:$16 sps:$4 sm:$0xff]  }
 0x5a7   :  { %6090 = vmatprep.subr.mxu0 %v8136_v62  ;;  %4341 = vmatprep.subr.bf16.mxu1 %v6284_v58  ;;  %v6291_v58 = vld [vmem:[#allocation7 + $0x80] ss:$16 sps:$4 sm:$0xff]  }
 0x5aa   :  { %4342 = vmatpush1.bf16.msra.mxu1 %v6282_v30  ;;  %v6299_v30 = vld [vmem:[#allocation7 + $0x64] ss:$16 sps:$4 sm:$0xff]  }
 0x5ab   :  { %4343 = vmatprep.subr.bf16.mxu1 %v6290_v33  ;;  %v6297_v33 = vld [vmem:[#allocation7 + $0x60] ss:$16 sps:$4 sm:$0xff]  }
 0x5ae   :  { %4344 = vmatpush1.bf16.msra.mxu1 %v6288_v36  ;;  %v6308_v36 = vld [vmem:[#allocation7 + $0x4c] ss:$16 sps:$4 sm:$0xff]  }
 0x5af   :  { %4345 = vmatprep.subr.bf16.mxu1 %v6296_v37  ;;  %v6303_v37 = vld [vmem:[#allocation7 + $0x40] ss:$16 sps:$4 sm:$0xff]  }
 0x5b2   :  { %4346 = vmatpush1.bf16.msra.mxu1 %v6294_v14  ;;  %v6306_v14 = vld [vmem:[#allocation7 + $0x48] ss:$16 sps:$4 sm:$0xff]  }
 0x5b3   :  { %4347 = vmatprep.subr.bf16.mxu1 %v6302_v40  ;;  %v6311_v40 = vld [vmem:[#allocation7 + $0x24] ss:$16 sps:$4 sm:$0xff]  }
 0x5b6   :  { %4348 = vmatpush1.bf16.msra.mxu1 %v6300_v43  ;;  %v6314_v43 = vld [vmem:[#allocation7 + $0x2c] ss:$16 sps:$4 sm:$0xff]  }
 0x5b7   :  { %4349 = vmatprep.subr.bf16.mxu1 %v6308_v36  ;;  %v957_v36 = vadd.s32 480, %v6545_v1 }
 0x5ba   :  { %4350 = vmatpush1.bf16.msra.mxu1 %v6306_v14 }
 0x5bb   :  { %4351 = vmatprep.subr.bf16.mxu1 %v6314_v43  ;;  %v941_v43 = vadd.s32 352, %v6545_v1 }
 0x663   :  { %v3850_v52 = vpop.f32.mrf.mxu0 }
 0x664   :  { %v3933_v54 = vmul.f32 0.0078125, %v3850_v52  ;;  %v6309_v52 = vld [vmem:[#allocation7 + $0x20] ss:$16 sps:$4 sm:$0xff]  }
 0x665   :  { %v6047_v12 = vpop.f32.mrf.mxu0  ;;  %v3929_v35 = vpop.f32.mrf.mxu1 }
 0x666   :  { %v3935_v31 = vmul.f32 %v3933_v54, %v3933_v54  ;;  %v3934_v19 = vmul.f32 0.0078125, %v3929_v35  ;;  %v6317_v12 = vld [vmem:[#allocation7 + $0x4] ss:$16 sps:$4 sm:$0xff]   ;;  %v6320_v35 = vld [vmem:[#allocation7 + $0xc] ss:$16 sps:$4 sm:$0xff]  }
 0x667   :  { %v6082_v0 = vpop.f32.mrf.mxu1 }
 0x668   :  { %v3936_v39 = vsub.f32 %v3934_v19, %v3935_v31  ;;  %v6315_v31 = vld [vmem:[#allocation7] ss:$16 sps:$4 sm:$0xff]   ;;  %v6318_v19 = vld [vmem:[#allocation7 + $0x8] ss:$16 sps:$4 sm:$0xff]   ;;  %v6448_v0 = vmov 0  }
 0x669   :  { %4371 = vmatprep.mubr.bf16.mxu1 %v6448_v0 }
 0x66a   :  { %v3937_v50 = vmax.f32 %v3936_v39, 0.0  ;;  %v1182_v39 = vand.u32 63, %v6550_v3 }
 0x66c   :  { %v3938_v18 = vadd.f32 1e-05, %v3937_v50  ;;  %v960_v50 = vadd.s32 504, %v6545_v1  ;;  %vm1760_vm0 = vcmp.eq.s32.totalorder %v1182_v39, %v6547_v2 }
 0x66e   :  { %6325 = vrsqrt.f32 %v3938_v18  ;;  %v1406_v18 = vand.u32 63, %v960_v50  ;;  %v1161_v50 = vand.u32 63, %v6568_v9  ;;  %v8177_v9 = vld [vmem:[#allocation17_spill] sm:$0xff] }
 0x670   :  { %vm1792_vm1 = vcmp.eq.s32.totalorder %v1406_v18, %v6547_v2  ;;  %v1385_v18 = vand.u32 63, %v957_v36  ;;  %v1014_v36 = vand.u32 63, %v6675_v41 }
 0x67b   :  { %v6326_v15 = vpop.eup %6325 }
 0x67c   :  { %v3940_v47 = vmul.f32 %v6326_v15, %v3775_v63 }
 0x67e   :  { %6088 = vmatmul.mubr.msk.f32.vlgmr.msra.gmra.mxu0 %vm8157_vm14, %v3940_v47  ;;  %v3941_v16 = vmul.f32 %v3940_v47, %v3933_v54  ;;  %v6312_v54 = vld [vmem:[#allocation7 + $0x28] ss:$16 sps:$4 sm:$0xff]   ;;  %vm1789_vm14 = vcmp.eq.s32.totalorder %v1385_v18, %v6547_v2  ;;  %v948_v18 = vadd.s32 408, %v6545_v1 }
 0x67f   :  { %6091 = vmatpush3.msk.msra.mxu0 %vm8155_vm12, %v8141_v13  ;;  %6094 = vmatprep.mubr.msk.f32.mxu0 %vm8146_vm6, %v8136_v62 }
 0x680   :  { %6092 = vmatprep.subr.mxu0 %v8136_v62  ;;  %v3942_v17 = vsub.f32 %v3776_v55, %v3941_v16  ;;  %4352 = vmatpush1.bf16.msra.mxu1 %v6312_v54  ;;  %v944_v55 = vadd.s32 376, %v6545_v1  ;;  %v1070_v16 = vand.u32 63, %v6553_v4  ;;  %v1168_v54 = vand.u32 63, %v6562_v7  ;;  %v8176_v7 = vld [vmem:[#allocation16_spill] sm:$0xff] }
 0x681   :  { %6093 = vmatpush3.msk.msra.mxu0 %vm8156_vm13, %v8141_v13  ;;  %4353 = vmatprep.subr.bf16.mxu1 %v6320_v35  ;;  %v956_v35 = vadd.s32 472, %v6545_v1  ;;  %vm1757_vm13 = vcmp.eq.s32.totalorder %v1161_v50, %v6547_v2  ;;  %v936_v4 = vadd.s32 312, %v6545_v1 }
 0x682   :  { %6095 = vmatmul.mubr.msk.f32.vlgmr.msra.gmra.mxu0 %vm8158_vm15, %v3942_v17  ;;  %4296 = vmatprep.subr.bf16.mxu0 %v6275_v56  ;;  %v1175_v56 = vand.u32 63, %v6556_v5  ;;  %vm7570_vm2 = vcmp.eq.s32.totalorder %v1070_v16, %v6547_v2  ;;  %v942_v5 = vadd.s32 360, %v6545_v1  ;;  %vm7617_vm9 = vcmp.eq.s32.totalorder %v1168_v54, %v6547_v2 }
 0x683   :  { %4297 = vmatpush1.bf16.msra.mxu0 %v6273_v11  ;;  %4328 = vmatprep.mubr.bf16.mxu0 %v6448_v0  ;;  %v959_v11 = vadd.s32 496, %v6545_v1  ;;  %v940_v0 = vadd.s32 344, %v6545_v1  ;;  %v1378_v16 = vand.u32 63, %v956_v35  ;;  %v1000_v54 = vand.u32 63, %v6703_v48 }
 0x684   :  { %4298 = vmatprep.subr.bf16.mxu0 %v6281_v53  ;;  %4354 = vmatpush1.bf16.msra.mxu1 %v6318_v19  ;;  %vm7576_vm3 = vcmp.eq.s32.totalorder %v1175_v56, %v6547_v2  ;;  %v1280_v19 = vand.u32 63, %v942_v5  ;;  %v1105_v35 = vand.u32 63, %v6706_v49  ;;  %v8175_v49 = vld [vmem:[#allocation15_spill] sm:$0xff] }
 0x685   :  { %5823 = vmatprep.subr.msk.mxu1 %vm1792_vm1, %v8141_v13  ;;  %v1266_v56 = vand.u32 63, %v940_v0  ;;  %v933_v0 = vadd.s32 288, %v6545_v1  ;;  %v1098_v39 = vand.u32 63, %v8175_v49 }
 0x686   :  { %vm1774_vm12 = vcmp.eq.s32.totalorder %v1280_v19, %v6547_v2  ;;  %v993_v19 = vand.u32 63, %v6717_v51 }
 0x687   :  { %4299 = vmatpush1.bf16.msra.mxu0 %v6279_v57 }
 0x688   :  { %4300 = vmatprep.subr.bf16.mxu0 %v6287_v59  ;;  %v943_v59 = vadd.s32 368, %v6545_v1 }
 0x68b   :  { %4301 = vmatpush1.bf16.msra.mxu0 %v6285_v60 }
 0x68c   :  { %4302 = vmatprep.subr.bf16.mxu0 %v6293_v20  ;;  %v1294_v20 = vand.u32 63, %v944_v55  ;;  %v1091_v55 = vand.u32 63, %v8177_v9 }
 0x68e   :  { %vm7584_vm5 = vcmp.eq.s32.totalorder %v1294_v20, %v6547_v2  ;;  %v953_v20 = vadd.s32 448, %v6545_v1 }
 0x68f   :  { %4303 = vmatpush1.bf16.msra.mxu0 %v6291_v58  ;;  %v958_v58 = vadd.s32 488, %v6545_v1 }
 0x690   :  { %4304 = vmatprep.subr.bf16.mxu0 %v6299_v30 }
 0x693   :  { %4305 = vmatpush1.bf16.msra.mxu0 %v6297_v33 }
 0x694   :  { %4306 = vmatprep.subr.bf16.mxu0 %v6305_v26  ;;  %v1063_v26 = vand.u32 63, %v6559_v6  ;;  %v1056_v6 = vand.u32 63, %v6565_v8  ;;  %v986_v8 = vand.u32 63, %v8176_v7 }
 0x696   :  { %vm7600_vm4 = vcmp.eq.s32.totalorder %v1063_v26, %v6547_v2  ;;  %vm1742_vm11 = vcmp.eq.s32.totalorder %v1056_v6, %v6547_v2  ;;  %v951_v26 = vadd.s32 432, %v6545_v1  ;;  %v949_v6 = vadd.s32 416, %v6545_v1 }
 0x697   :  { %4307 = vmatpush1.bf16.msra.mxu0 %v6303_v37 }
 0x698   :  { %4308 = vmatprep.subr.bf16.mxu0 %v6311_v40  ;;  %v1287_v40 = vand.u32 63, %v943_v59  ;;  %v1140_v59 = vand.u32 63, %v6619_v28  ;;  %v1357_v28 = vand.u32 63, %v953_v20  ;;  %v1329_v50 = vand.u32 63, %v949_v6  ;;  %v8180_v20 = vld [vmem:[#allocation20_spill] sm:$0xff] }
 0x69a   :  { %vm7605_vm7 = vcmp.eq.s32.totalorder %v1287_v40, %v6547_v2  ;;  %v1007_v40 = vand.u32 63, %v6689_v45 }
 0x69b   :  { %4309 = vmatpush1.bf16.msra.mxu0 %v6309_v52  ;;  %v950_v52 = vadd.s32 424, %v6545_v1 }
 0x69c   :  { %4310 = vmatprep.subr.bf16.mxu0 %v6317_v12  ;;  %v1392_v12 = vand.u32 63, %v958_v58  ;;  %v1028_v58 = vand.u32 63, %v6622_v29  ;;  %v937_v29 = vadd.s32 320, %v6545_v1 }
 0x69e   :  { %vm7622_vm10 = vcmp.eq.s32.totalorder %v1392_v12, %v6547_v2  ;;  %v1245_v5 = vand.u32 63, %v937_v29  ;;  %v934_v12 = vadd.s32 296, %v6545_v1 }
 0x69f   :  { %4311 = vmatpush1.bf16.msra.mxu0 %v6315_v31 }
 0x6a0   :  { %5788 = vmatprep.subr.msk.mxu0 %vm1760_vm0, %v8141_v13 }
 0x73e   :  { %v4012_v63 = vpop.f32.mrf.mxu0 }
 0x73f   :  { %v4092_v15 = vrot.slane %v4012_v63, %v7025_v44  ;;  %v955_v63 = vadd.s32 464, %v6545_v1 }
 0x740   :  { %v6089_v47 = vpop.f32.mrf.mxu0 }
 0x741   :  { %v4093_v17 = vmul.f32 %v4092_v15, %v7516_v61  ;;  %v4094_v53 = vmul.f32 %v4092_v15, %v7518_v22  ;;  %v1399_v22 = vand.u32 63, %v959_v11  ;;  %v1049_v15 = vand.u32 63, %v6571_v10 }
 0x742   :  { %v4085_v3 = vpop.f32.mrf.mxu0  ;;  %v1273_v47 = vand.u32 63, %v941_v43  ;;  %v1154_v10 = vand.u32 63, %v6592_v21  ;;  %v1147_v21 = vand.u32 63, %v6605_v24  ;;  %v1371_v11 = vand.u32 63, %v955_v63 }
 0x743   :  { %v4098_v57 = vrot.slane %v4085_v3, %v7025_v44  ;;  %vm7593_vm8 = vcmp.eq.s32.totalorder %v1399_v22, %v6547_v2  ;;  %v1042_v3 = vand.u32 63, %v6602_v23  ;;  %vm1741_vm15 = vcmp.eq.s32.totalorder %v1049_v15, %v6547_v2 }
 0x744   :  { %v6096_v60 = vpop.f32.mrf.mxu0  ;;  %vm1773_vm0 = vcmp.eq.s32.totalorder %v1273_v47, %v6547_v2  ;;  %vm1756_vm1 = vcmp.eq.s32.totalorder %v1154_v10, %v6547_v2  ;;  %v939_v23 = vadd.s32 336, %v6545_v1  ;;  %v954_v24 = vadd.s32 456, %v6545_v1 }
 0x745   :  { %v4099_v30 = vadd.f32 %v4098_v57, %v4093_v17  ;;  %v4100_v33 = vadd.f32 %v4098_v57, %v4094_v53  ;;  %v1035_v17 = vand.u32 63, %v6608_v25  ;;  %v938_v57 = vadd.s32 328, %v6545_v1 }
 0x746   :  { %v1259_v53 = vand.u32 63, %v939_v23  ;;  %v1364_v60 = vand.u32 63, %v954_v24  ;;  %v1133_v25 = vand.u32 63, %v6634_v32  ;;  %v1021_v32 = vand.u32 63, %v6645_v34  ;;  %v8179_v23 = vld [vmem:[#allocation19_spill] sm:$0xff] }
 0x747   :  { %v4101_v37 = vmax.f32 %v4099_v30, 0.0  ;;  %v4102_v14 = vmax.f32 %v4100_v33, 0.0  ;;  %v1252_v30 = vand.u32 63, %v938_v57  ;;  %v952_v33 = vadd.s32 440, %v6545_v1 }
 0x748   :  { %v1126_v61 = vand.u32 63, %v6664_v38  ;;  %v1119_v34 = vand.u32 63, %v6678_v42  ;;  %v1343_v38 = vand.u32 63, %v951_v26  ;;  %v1112_v42 = vand.u32 63, %v6692_v46 }
 0x749   :  { %v4103_v31 = vpack.c.bf16 %v4102_v14, %v4101_v37  ;;  %v1350_v22 = vand.u32 63, %v952_v33  ;;  %v1238_v37 = vand.u32 63, %v936_v4  ;;  %v935_v14 = vadd.s32 304, %v6545_v1 }
 0x74a   :  { %v1336_v46 = vand.u32 63, %v950_v52  ;;  %v1217_v63 = vand.u32 63, %v933_v0  ;;  %v932_v15 = vadd.s32 280, %v6545_v1  ;;  %v1322_v47 = vand.u32 63, %v948_v18 }
 0x74b   :  { %4329 = vmatmul.mubr.bf16.vlgmr.msra.gmra.mxu0 %v4103_v31  ;;  %4372 = vmatmul.mubr.bf16.vlgmr.msra.gmra.mxu1 %v4103_v31  ;;  %v1231_v43 = vand.u32 63, %v935_v14  ;;  %v1224_v31 = vand.u32 63, %v934_v12  ;;  %v947_v10 = vadd.s32 400, %v6545_v1  ;;  %v1084_v24 = vand.u32 63, %v8179_v23 }
 0x74c   :  { %5789 = vmatpush3.msk.msra.mxu0 %vm7570_vm2, %v8141_v13  ;;  %5824 = vmatpush3.msk.msra.mxu1 %vm7584_vm5, %v8141_v13  ;;  %vm1788_vm2 = vcmp.eq.s32.totalorder %v1378_v16, %v6547_v2  ;;  %vm1772_vm5 = vcmp.eq.s32.totalorder %v1266_v56, %v6547_v2  ;;  %v1210_v16 = vand.u32 63, %v932_v15  ;;  %v972_v57 = vand.u32 63, %v6833_v27 }
 0x74d   :  { %5790 = vmatprep.subr.msk.mxu0 %vm7576_vm3, %v8141_v13  ;;  %5825 = vmatprep.subr.msk.mxu1 %vm7593_vm8, %v8141_v13  ;;  %vm1740_vm3 = vcmp.eq.s32.totalorder %v1042_v3, %v6547_v2  ;;  %vm1755_vm8 = vcmp.eq.s32.totalorder %v1147_v21, %v6547_v2  ;;  %v8178_v3 = vld [vmem:[#allocation18_spill] sm:$0xff]  ;;  %v1315_v21 = vand.u32 63, %v947_v10  ;;  %v929_v33 = vadd.s32 256, %v6545_v1 }
 0x74e   :  { %5791 = vmatpush3.msk.msra.mxu0 %vm7600_vm4, %v8141_v13  ;;  %5826 = vmatpush3.msk.msra.mxu1 %vm7605_vm7, %v8141_v13  ;;  %vm1787_vm4 = vcmp.eq.s32.totalorder %v1371_v11, %v6547_v2  ;;  %vm1739_vm7 = vcmp.eq.s32.totalorder %v1035_v17, %v6547_v2  ;;  %v979_v56 = vand.u32 63, %v8178_v3  ;;  %v931_v11 = vadd.s32 272, %v6545_v1 }
 0x74f   :  { %5792 = vmatprep.subr.msk.mxu0 %vm7617_vm9, %v8141_v13  ;;  %5827 = vmatprep.subr.msk.mxu1 %vm7622_vm10, %v8141_v13  ;;  %vm1771_vm9 = vcmp.eq.s32.totalorder %v1259_v53, %v6547_v2  ;;  %vm1754_vm10 = vcmp.eq.s32.totalorder %v1140_v59, %v6547_v2  ;;  %v946_v17 = vadd.s32 392, %v6545_v1  ;;  %v930_v59 = vadd.s32 264, %v6545_v1 }
 0x750   :  { %5793 = vmatpush3.msk.msra.mxu0 %vm1742_vm11, %v8141_v13  ;;  %5828 = vmatpush3.msk.msra.mxu1 %vm1774_vm12, %v8141_v13  ;;  %vm1786_vm11 = vcmp.eq.s32.totalorder %v1364_v60, %v6547_v2  ;;  %vm1738_vm12 = vcmp.eq.s32.totalorder %v1028_v58, %v6547_v2  ;;  %v1203_v53 = vand.u32 63, %v931_v11  ;;  %v1077_v58 = vand.u32 63, %v8180_v20 }
 0x751   :  { %5794 = vmatprep.subr.msk.mxu0 %vm1757_vm13, %v8141_v13  ;;  %5829 = vmatprep.subr.msk.mxu1 %vm1789_vm14, %v8141_v13  ;;  %vm1770_vm13 = vcmp.eq.s32.totalorder %v1252_v30, %v6547_v2  ;;  %vm1753_vm14 = vcmp.eq.s32.totalorder %v1133_v25, %v6547_v2  ;;  %v1308_v60 = vand.u32 63, %v946_v17  ;;  %v945_v30 = vadd.s32 384, %v6545_v1 }
 0x752   :  { %5795 = vmatpush3.msk.msra.mxu0 %vm1741_vm15, %v8141_v13  ;;  %5830 = vmatpush3.msk.msra.mxu1 %vm1773_vm0, %v8141_v13  ;;  %vm1785_vm15 = vcmp.eq.s32.totalorder %v1357_v28, %v6547_v2  ;;  %vm1737_vm0 = vcmp.eq.s32.totalorder %v1021_v32, %v6547_v2  ;;  %v1196_v25 = vand.u32 63, %v930_v59  ;;  %v965_v28 = vand.u32 63, %v6545_v1 }
 0x753   :  { %5796 = vmatprep.subr.msk.mxu0 %vm1756_vm1, %v8141_v13  ;;  %5831 = vmatprep.subr.msk.mxu1 %vm1788_vm2, %v8141_v13  ;;  %vm1769_vm1 = vcmp.eq.s32.totalorder %v1245_v5, %v6547_v2  ;;  %vm1752_vm2 = vcmp.eq.s32.totalorder %v1126_v61, %v6547_v2  ;;  %v1301_v29 = vand.u32 63, %v945_v30  ;;  %v1189_v32 = vand.u32 63, %v929_v33 }
 0x754   :  { %5797 = vmatpush3.msk.msra.mxu0 %vm1740_vm3, %v8141_v13  ;;  %5832 = vmatpush3.msk.msra.mxu1 %vm1772_vm5, %v8141_v13  ;;  %vm1784_vm3 = vcmp.eq.s32.totalorder %v1350_v22, %v6547_v2  ;;  %vm1736_vm5 = vcmp.eq.s32.totalorder %v1014_v36, %v6547_v2 }
 0x755   :  { %5798 = vmatprep.subr.msk.mxu0 %vm1755_vm8, %v8141_v13  ;;  %5833 = vmatprep.subr.msk.mxu1 %vm1787_vm4, %v8141_v13  ;;  %vm1768_vm8 = vcmp.eq.s32.totalorder %v1238_v37, %v6547_v2  ;;  %vm1751_vm4 = vcmp.eq.s32.totalorder %v1119_v34, %v6547_v2 }
 0x756   :  { %5799 = vmatpush3.msk.msra.mxu0 %vm1739_vm7, %v8141_v13  ;;  %5834 = vmatpush3.msk.msra.mxu1 %vm1771_vm9, %v8141_v13  ;;  %vm1783_vm7 = vcmp.eq.s32.totalorder %v1343_v38, %v6547_v2  ;;  %vm1735_vm9 = vcmp.eq.s32.totalorder %v1007_v40, %v6547_v2 }
 0x757   :  { %5800 = vmatprep.subr.msk.mxu0 %vm1754_vm10, %v8141_v13  ;;  %5835 = vmatprep.subr.msk.mxu1 %vm1786_vm11, %v8141_v13  ;;  %vm1767_vm10 = vcmp.eq.s32.totalorder %v1231_v43, %v6547_v2  ;;  %vm1750_vm11 = vcmp.eq.s32.totalorder %v1112_v42, %v6547_v2 }
 0x758   :  { %5801 = vmatpush3.msk.msra.mxu0 %vm1738_vm12, %v8141_v13  ;;  %5836 = vmatpush3.msk.msra.mxu1 %vm1770_vm13, %v8141_v13  ;;  %vm1734_vm12 = vcmp.eq.s32.totalorder %v1000_v54, %v6547_v2  ;;  %vm1782_vm13 = vcmp.eq.s32.totalorder %v1336_v46, %v6547_v2 }
 0x759   :  { %5802 = vmatprep.subr.msk.mxu0 %vm1753_vm14, %v8141_v13  ;;  %5837 = vmatprep.subr.msk.mxu1 %vm1785_vm15, %v8141_v13  ;;  %vm1749_vm14 = vcmp.eq.s32.totalorder %v1105_v35, %v6547_v2  ;;  %vm1766_vm15 = vcmp.eq.s32.totalorder %v1224_v31, %v6547_v2 }
 0x75a   :  { %5803 = vmatpush3.msk.msra.mxu0 %vm1737_vm0, %v8141_v13  ;;  %5838 = vmatpush3.msk.msra.mxu1 %vm1769_vm1, %v8141_v13  ;;  %vm1733_vm0 = vcmp.eq.s32.totalorder %v993_v19, %v6547_v2  ;;  %vm1748_vm1 = vcmp.eq.s32.totalorder %v1098_v39, %v6547_v2 }
 0x75b   :  { %5804 = vmatprep.subr.msk.mxu0 %vm1752_vm2, %v8141_v13  ;;  %5839 = vmatprep.subr.msk.mxu1 %vm1784_vm3, %v8141_v13  ;;  %vm1781_vm2 = vcmp.eq.s32.totalorder %v1329_v50, %v6547_v2  ;;  %vm1765_vm3 = vcmp.eq.s32.totalorder %v1217_v63, %v6547_v2 }
 0x75c   :  { %5805 = vmatpush3.msk.msra.mxu0 %vm1736_vm5, %v8141_v13  ;;  %5840 = vmatpush3.msk.msra.mxu1 %vm1768_vm8, %v8141_v13  ;;  %vm1732_vm5 = vcmp.eq.s32.totalorder %v986_v8, %v6547_v2  ;;  %vm1780_vm8 = vcmp.eq.s32.totalorder %v1322_v47, %v6547_v2 }
 0x75d   :  { %5806 = vmatprep.subr.msk.mxu0 %vm1751_vm4, %v8141_v13  ;;  %5841 = vmatprep.subr.msk.mxu1 %vm1783_vm7, %v8141_v13  ;;  %vm1747_vm4 = vcmp.eq.s32.totalorder %v1091_v55, %v6547_v2  ;;  %vm1764_vm7 = vcmp.eq.s32.totalorder %v1210_v16, %v6547_v2 }
 0x75e   :  { %5807 = vmatpush3.msk.msra.mxu0 %vm1735_vm9, %v8141_v13  ;;  %5842 = vmatpush3.msk.msra.mxu1 %vm1767_vm10, %v8141_v13  ;;  %vm1731_vm9 = vcmp.eq.s32.totalorder %v979_v56, %v6547_v2  ;;  %vm1779_vm10 = vcmp.eq.s32.totalorder %v1315_v21, %v6547_v2 }
 0x75f   :  { %5808 = vmatprep.subr.msk.mxu0 %vm1750_vm11, %v8141_v13  ;;  %5843 = vmatprep.subr.msk.mxu1 %vm1782_vm13, %v8141_v13  ;;  %vm1746_vm11 = vcmp.eq.s32.totalorder %v1084_v24, %v6547_v2  ;;  %vm1730_vm13 = vcmp.eq.s32.totalorder %v972_v57, %v6547_v2 }
 0x760   :  { %5809 = vmatpush3.msk.msra.mxu0 %vm1734_vm12, %v8141_v13  ;;  %5844 = vmatpush3.msk.msra.mxu1 %vm1766_vm15, %v8141_v13  ;;  %vm1763_vm12 = vcmp.eq.s32.totalorder %v1203_v53, %v6547_v2  ;;  %vm1745_vm15 = vcmp.eq.s32.totalorder %v1077_v58, %v6547_v2 }
 0x761   :  { %5810 = vmatprep.subr.msk.mxu0 %vm1749_vm14, %v8141_v13  ;;  %5845 = vmatprep.subr.msk.mxu1 %vm1781_vm2, %v8141_v13  ;;  %vm1778_vm14 = vcmp.eq.s32.totalorder %v1308_v60, %v6547_v2  ;;  %vm1777_vm2 = vcmp.eq.s32.totalorder %v1301_v29, %v6547_v2 }
 0x762   :  { %5811 = vmatpush3.msk.msra.mxu0 %vm1733_vm0, %v8141_v13  ;;  %5846 = vmatpush3.msk.msra.mxu1 %vm1765_vm3, %v8141_v13  ;;  %vm1762_vm0 = vcmp.eq.s32.totalorder %v1196_v25, %v6547_v2  ;;  %vm1761_vm3 = vcmp.eq.s32.totalorder %v1189_v32, %v6547_v2 }
 0x763   :  { %5812 = vmatprep.subr.msk.mxu0 %vm1748_vm1, %v8141_v13  ;;  %5847 = vmatprep.subr.msk.mxu1 %vm1780_vm8, %v8141_v13  ;;  %vm1729_vm1 = vcmp.eq.s32.totalorder %v965_v28, %v6547_v2  ;;  %vm4686_vm8 = vcmask 64512  }
 0x764   :  { %5813 = vmatpush3.msk.msra.mxu0 %vm1732_vm5, %v8141_v13  ;;  %5848 = vmatpush3.msk.msra.mxu1 %vm1764_vm7, %v8141_v13  ;;  %vm4438_vm5 = vcmask 1041409  }
 0x765   :  { %5814 = vmatprep.subr.msk.mxu0 %vm1747_vm4, %v8141_v13  ;;  %5849 = vmatprep.subr.msk.mxu1 %vm1779_vm10, %v8141_v13 }
 0x766   :  { %5815 = vmatpush3.msk.msra.mxu0 %vm1731_vm9, %v8141_v13  ;;  %5850 = vmatpush3.msk.msra.mxu1 %vm1763_vm12, %v8141_v13 }
 0x767   :  { %5816 = vmatprep.subr.msk.mxu0 %vm1746_vm11, %v8141_v13  ;;  %5851 = vmatprep.subr.msk.mxu1 %vm1778_vm14, %v8141_v13 }
 0x768   :  { %5817 = vmatpush3.msk.msra.mxu0 %vm1730_vm13, %v8141_v13  ;;  %5852 = vmatpush3.msk.msra.mxu1 %vm1762_vm0, %v8141_v13 }
 0x769   :  { %5818 = vmatprep.subr.msk.mxu0 %vm1745_vm15, %v8141_v13  ;;  %5853 = vmatprep.subr.msk.mxu1 %vm1777_vm2, %v8141_v13 }
 0x76a   :  { %5819 = vmatpush3.msk.msra.mxu0 %vm1729_vm1, %v8141_v13  ;;  %5854 = vmatpush3.msk.msra.mxu1 %vm1761_vm3, %v8141_v13 }
 0x76b   :  { %6097 = vmatprep.subr.mxu0 %v8136_v62  ;;  %6116 = vmatprep.subr.mxu1 %v8136_v62 }
 0x80b   :  { %v7799_v4 = vpop.f32.mrf.mxu0  ;;  %v7801_v5 = vpop.f32.mrf.mxu1 }
 0x80c   :  { %v4382_v61 = vrot.slane %v7799_v4, 4  ;;  %v4394_v22 = vrot.slane %v7801_v5, 4 }
 0x80d   :  { %v7805_v26 = vpop.f32.mrf.mxu0  ;;  %v7807_v36 = vpop.f32.mrf.mxu1 }
 0x80e   :  { %v4383_v37 = vadd.f32 %v4382_v61, %v7799_v4  ;;  %v4395_v14 = vadd.f32 %v4394_v22, %v7801_v5  ;;  %v4388_v34 = vrot.slane %v7805_v26, 4  ;;  %v4400_v38 = vrot.slane %v7807_v36, 4 }
 0x80f   :  { %v7813_v40 = vpop.f32.mrf.mxu0  ;;  %v7815_v43 = vpop.f32.mrf.mxu1 }
 0x810   :  { %v4389_v42 = vadd.f32 %v4388_v34, %v7805_v26  ;;  %v4401_v52 = vadd.f32 %v4400_v38, %v7807_v36  ;;  %v4406_v54 = vrot.slane %v7813_v40, 4  ;;  %v4418_v12 = vrot.slane %v7815_v43, 4 }
 0x811   :  { %v7821_v46 = vpop.f32.mrf.mxu0  ;;  %v7823_v35 = vpop.f32.mrf.mxu1  ;;  %v4384_v31 = vrot.slane %v4383_v37, 2  ;;  %v4396_v6 = vrot.slane %v4395_v14, 2 }
 0x812   :  { %v4390_v19 = vrot.slane %v4389_v42, 2  ;;  %v4402_v0 = vrot.slane %v4401_v52, 2  ;;  %v4407_v49 = vadd.f32 %v4406_v54, %v7813_v40  ;;  %v4419_v39 = vadd.f32 %v4418_v12, %v7815_v43  ;;  %v4594_v12 = vld [vmem:[%s8023_s10 + $0x30] sm:$0xff] }
 0x813   :  { %v4412_v50 = vrot.slane %v7821_v46, 4  ;;  %v4424_v18 = vrot.slane %v7823_v35, 4  ;;  %v4385_v10 = vadd.f32 %v4384_v31, %v4383_v37  ;;  %v4397_v16 = vadd.f32 %v4396_v6, %v4395_v14  ;;  %v4593_v31 = vld [vmem:[%s8023_s10 + $0x28] sm:$0xff]  ;;  %v4592_v6 = vld [vmem:[%s8023_s10 + $0x20] sm:$0xff] }
 0x814   :  { %v4391_v63 = vadd.f32 %v4390_v19, %v4389_v42  ;;  %v4403_v8 = vadd.f32 %v4402_v0, %v4401_v52  ;;  %v4408_v15 = vrot.slane %v4407_v49, 2  ;;  %v4420_v47 = vrot.slane %v4419_v39, 2  ;;  %v4595_v42 = vld [vmem:[%s8023_s10 + $0x38] sm:$0xff]  ;;  %v4590_v0 = vld [vmem:[%s8023_s10 + $0x10] sm:$0xff] }
 0x815   :  { %v4413_v9 = vadd.f32 %v4412_v50, %v7821_v46  ;;  %v4425_v55 = vadd.f32 %v4424_v18, %v7823_v35  ;;  %v4386_v20 = vrot.slane %v4385_v10, 1  ;;  %v4398_v58 = vrot.slane %v4397_v16, 1  ;;  %v4591_v19 = vld [vmem:[%s8023_s10 + $0x18] sm:$0xff] }
 0x816   :  { %v4409_v56 = vadd.f32 %v4408_v15, %v4407_v49  ;;  %v4421_v21 = vadd.f32 %v4420_v47, %v4419_v39  ;;  %v4392_v24 = vrot.slane %v4391_v63, 1  ;;  %v4404_v17 = vrot.slane %v4403_v8, 1  ;;  %v4589_v49 = vld [vmem:[%s8023_s10 + $0x8] sm:$0xff]  ;;  %v4588_v39 = vld [vmem:[%s8023_s10] sm:$0xff] }
 0x817   :  { %v4414_v11 = vrot.slane %v4413_v9, 2  ;;  %v4426_v23 = vrot.slane %v4425_v55, 2  ;;  %v4387_v37 = vadd.f32 %v4386_v20, %v4385_v10  ;;  %v4399_v14 = vadd.f32 %v4398_v58, %v4397_v16  ;;  %v4678_v10 = vld [vmem:[%s8025_s12] sm:$0xff] }
 0x818   :  { %v4410_v53 = vrot.slane %v4409_v56, 1  ;;  %v4422_v57 = vrot.slane %v4421_v21, 1  ;;  %v4393_v33 = vadd.f32 %v4392_v24, %v4391_v63  ;;  %v4405_v61 = vadd.f32 %v4404_v17, %v4403_v8  ;;  %v5547_v16 = vld [vmem:[%s8024_s11] ss:$0 sm:$0xff]  ;;  %v8181_v24 = vld [vmem:[#allocation21_spill] sm:$0xff] }
 0x819   :  { %v4415_v59 = vadd.f32 %v4414_v11, %v4413_v9  ;;  %v4427_v60 = vadd.f32 %v4426_v23, %v4425_v55  ;;  %v7876_v17 = vand.u32 63, %v8181_v24 }
 0x81a   :  { %v4411_v28 = vadd.f32 %v4410_v53, %v4409_v56  ;;  %v4423_v29 = vadd.f32 %v4422_v57, %v4421_v21  ;;  %v1922_v53 = vadd.s32 384, %v6547_v2  ;;  %v1921_v57 = vadd.s32 256, %v6547_v2 }
 0x81b   :  { %v4416_v30 = vrot.slane %v4415_v59, 1  ;;  %v4428_v25 = vrot.slane %v4427_v60, 1  ;;  %vm2000_vm4 = vcmp.eq.s32.totalorder %v6675_v41, %v7876_v17  ;;  %vm1996_vm11 = vcmp.eq.s32.totalorder %v6689_v45, %v7876_v17 }
 0x81c   :  { %v4439_v52 = vsel %vm4438_vm5, %v4411_v28, %v4387_v37  ;;  %v4441_v54 = vsel %vm4438_vm5, %v4423_v29, %v4399_v14  ;;  %v7885_v20 = vand.u32 63, %v1921_v57  ;;  %vm1992_vm15 = vcmp.eq.s32.totalorder %v6703_v48, %v7876_v17 }
 0x81d   :  { %v4417_v32 = vadd.f32 %v4416_v30, %v4415_v59  ;;  %v4429_v22 = vadd.f32 %v4428_v25, %v4427_v60  ;;  %v7880_v59 = vand.u32 63, %v1922_v53  ;;  %v7883_v60 = vand.u32 63, %v6547_v2  ;;  %v5549_v2 = vld [vmem:[%s8026_s13] ss:$0 sm:$0xff]  ;;  %s6450_s13 = smov [#allocation10]  }
 0x81e   :  { %vm2001_vm10 = vcmp.eq.s32.totalorder %v6675_v41, %v7885_v20  ;;  %vm1997_vm14 = vcmp.eq.s32.totalorder %v6689_v45, %v7885_v20  ;;  %vm1993_vm2 = vcmp.eq.s32.totalorder %v6703_v48, %v7885_v20  ;;  %vm1988_vm3 = vcmp.eq.s32.totalorder %v6717_v51, %v7876_v17  ;;  %s5011_s6 = sshll.u32 %s6450_s13, 4  ;;  %s5012_s6 = int_to_ptr.vmem [resolvable:$true] %s5011_s6 }
 0x81f   :  { %v4440_v34 = vsel %vm4438_vm5, %v4417_v32, %v4393_v33  ;;  %v4442_v38 = vsel %vm4438_vm5, %v4429_v22, %v4405_v61  ;;  %vm2002_vm7 = vcmp.eq.s32.totalorder %v6675_v41, %v7880_v59  ;;  %vm1999_vm9 = vcmp.eq.s32.totalorder %v6675_v41, %v7883_v60  ;;  %s6409_s18 = scalar_lea.vmem %s5012_s6, 1024  ;;  %p6414_p7 = scmp.lt.s32.totalorder %s5012_s6, %s5012_s6 }
 0x820   :  { %4511 = vmatprep.mubr.f32.mxu0 %v4440_v34  ;;  %4581 = vmatprep.mubr.f32.mxu1 %v4442_v38  ;;  %vm1998_vm12 = vcmp.eq.s32.totalorder %v6689_v45, %v7880_v59  ;;  %vm1995_vm13 = vcmp.eq.s32.totalorder %v6689_v45, %v7883_v60  ;;  %vm1994_vm0 = vcmp.eq.s32.totalorder %v6703_v48, %v7880_v59  ;;  %v4948_v61 = vsub.s32 1, %v6545_v1  ;;  %p6410_p6 = scmp.ne.s32.totalorder %s5012_s6, %s6409_s18  ;;  %p6415_p8 = scmp.lt.s32.totalorder %s6409_s18, %s6409_s18 }
 0x821   :  { %4512 = vmatmul.mubr.f32.vlgmr.msra.gmra.mxu0 %v4439_v52  ;;  %4582 = vmatmul.mubr.f32.vlgmr.msra.gmra.mxu1 %v4441_v54  ;;  %vm1991_vm1 = vcmp.eq.s32.totalorder %v6703_v48, %v7883_v60  ;;  %vm1990_vm5 = vcmp.eq.s32.totalorder %v6717_v51, %v7880_v59  ;;  %v4952_v14 = vsub.s32 2, %v6545_v1  ;;  %v4956_v34 = vsub.s32 3, %v6545_v1 }
 0x822   :  { %6098 = vmatpush3.msra.mxu0 %v4595_v42  ;;  %6113 = vmatprep.mubr.msk.f32.mxu0 %vm8146_vm6, %v8136_v62  ;;  %p6416_p9 = por %p6415_p8, %p6414_p7 }
 0x823   :  { %6099 = vmatprep.subr.mxu0 %v8136_v62  ;;  %6118 = vmatprep.mubr.msk.f32.mxu1 %vm8146_vm6, %v8136_v62  ;;  %vm4603_vm6 = vcmask 523264  }
 0x824   :  { %6100 = vmatpush3.msra.mxu0 %v4594_v12  ;;  %6117 = vmatpush3.msra.mxu1 %v4678_v10  ;;  %p6417_p10 = pnand %p6416_p9, %p6410_p6 }
 0x825   :  { %6101 = vmatprep.subr.mxu0 %v8136_v62  ;;  %5551 = vmatprep.subr.msk.mxu1 %vm2000_vm4, %v8141_v13  ;;  %vm1989_vm4 = vcmp.eq.s32.totalorder %v6717_v51, %v7885_v20 }
 0x826   :  { %6102 = vmatpush3.msra.mxu0 %v4593_v31 }
 0x827   :  { %6103 = vmatprep.subr.mxu0 %v8136_v62 }
 0x828   :  { %6104 = vmatpush3.msra.mxu0 %v4592_v6 }
 0x829   :  { %6105 = vmatprep.subr.mxu0 %v8136_v62 }
 0x82a   :  { %6106 = vmatpush3.msra.mxu0 %v4591_v19 }
 0x82b   :  { %6107 = vmatprep.subr.mxu0 %v8136_v62 }
 0x82c   :  { %6108 = vmatpush3.msra.mxu0 %v4590_v0 }
 0x82d   :  { %6109 = vmatprep.subr.mxu0 %v8136_v62 }
 0x82e   :  { %6110 = vmatpush3.msra.mxu0 %v4589_v49 }
 0x82f   :  { %6111 = vmatprep.subr.mxu0 %v8136_v62 }
 0x830   :  { %6112 = vmatpush3.msra.mxu0 %v4588_v39 }
 0x831   :  { %5568 = vmatprep.subr.msk.mxu0 %vm2002_vm7, %v8141_v13  ;;  %vm1984_vm7 = vcmp.eq.s32.totalorder %v8176_v7, %v7876_v17 }
 0x8e1   :  { %v5820_v50 = vpop.f32.mrf.mxu0  ;;  %v5855_v18 = vpop.f32.mrf.mxu1 }
 0x8e3   :  { %v5821_v63 = vpop.f32.mrf.mxu0  ;;  %v5856_v8 = vpop.f32.mrf.mxu1 }
 0x8e4   :  { %v5822_v15 = vadd.f32 %v5821_v63, %v5820_v50  ;;  %v5857_v47 = vadd.f32 %v5856_v8, %v5855_v18 }
 0x8e6   :  { %v4584_v9 = vadd.f32 %v5857_v47, %v5822_v15  ;;  %v8182_v47 = vld [vmem:[#allocation22_spill] sm:$0xff] }
 0x8e8   :  { %v4587_v55 = vmul.f32 0.015625, %v4584_v9 }
 0x8ea   :  { %6114 = vmatmul.mubr.msk.f32.vlgmr.msra.gmra.mxu0 %vm4603_vm6, %v4587_v55  ;;  %v8183_v55 = vld [vmem:[#allocation23_spill] sm:$0xff] }
 0x8eb   :  { %4899 = vmatprep.mubr.f32.mxu0 %v8136_v62  ;;  %5569 = vmatpush1.msk.msra.mxu0 %vm2001_vm10, %v8141_v13  ;;  %vm1983_vm10 = vcmp.eq.s32.totalorder %v8176_v7, %v7883_v60 }
 0x8ec   :  { %5570 = vmatprep.subr.msk.mxu0 %vm1998_vm12, %v8141_v13  ;;  %vm1980_vm12 = vcmp.eq.s32.totalorder %v8178_v3, %v7876_v17 }
 0x8ed   :  { %5571 = vmatpush1.msk.msra.mxu0 %vm1997_vm14, %v8141_v13  ;;  %vm1979_vm14 = vcmp.eq.s32.totalorder %v8178_v3, %v7883_v60 }
 0x8ee   :  { %5572 = vmatprep.subr.msk.mxu0 %vm1994_vm0, %v8141_v13  ;;  %vm1976_vm0 = vcmp.eq.s32.totalorder %v6833_v27, %v7876_v17 }
 0x8ef   :  { %5573 = vmatpush1.msk.msra.mxu0 %vm1993_vm2, %v8141_v13  ;;  %vm1975_vm2 = vcmp.eq.s32.totalorder %v6833_v27, %v7883_v60 }
 0x8f0   :  { %5574 = vmatprep.subr.msk.mxu0 %vm1990_vm5, %v8141_v13  ;;  %vm1972_vm5 = vcmp.eq.s32.totalorder %v6545_v1, %v7876_v17 }
 0x8f1   :  { %5575 = vmatpush1.msk.msra.mxu0 %vm1989_vm4, %v8141_v13  ;;  %vm1971_vm4 = vcmp.eq.s32.totalorder %v6545_v1, %v7883_v60 }
 0x9aa   :  { %v4673_v56 = vpop.f32.mrf.mxu0 }
 0x9ab   :  { %v4674_v21 = vadd.f32 %v5547_v16, %v4673_v56  ;;  %v8184_v16 = vld [vmem:[#allocation26_spill] sm:$0xff]  ;;  %v8185_v56 = vld [vmem:[#allocation27_spill] sm:$0xff] }
 0x9ac   :  { %v6115_v11 = vpop.f32.mrf.mxu0 }
 0x9ad   :  { %v4677_v23 = vmax.f32 %v4674_v21, 0.0 }
 0x9af   :  { %6119 = vmatmul.mubr.msk.f32.vlgmr.msra.gmra.mxu1 %vm4686_vm8, %v4677_v23  ;;  %vm1987_vm8 = vcmp.eq.s32.totalorder %v6717_v51, %v7883_v60 }
 0x9b0   :  { %4828 = vmatprep.mubr.f32.mxu1 %v8136_v62  ;;  %5552 = vmatpush1.msk.msra.mxu1 %vm1999_vm9, %v8141_v13  ;;  %vm1986_vm9 = vcmp.eq.s32.totalorder %v8176_v7, %v7880_v59  ;;  %v6449_v62 = vmov 1966171168  }
 0x9b1   :  { %5553 = vmatprep.subr.msk.mxu1 %vm1996_vm11, %v8141_v13  ;;  %vm1985_vm11 = vcmp.eq.s32.totalorder %v8176_v7, %v7885_v20  ;;  %5576 = vmatprep.subr.msk.mxu0 %vm1986_vm9, %v8141_v13 }
 0x9b2   :  { %5554 = vmatpush1.msk.msra.mxu1 %vm1995_vm13, %v8141_v13  ;;  %vm1982_vm13 = vcmp.eq.s32.totalorder %v8178_v3, %v7880_v59  ;;  %5577 = vmatpush1.msk.msra.mxu0 %vm1985_vm11, %v8141_v13 }
 0x9b3   :  { %5555 = vmatprep.subr.msk.mxu1 %vm1992_vm15, %v8141_v13  ;;  %vm1981_vm15 = vcmp.eq.s32.totalorder %v8178_v3, %v7885_v20  ;;  %5578 = vmatprep.subr.msk.mxu0 %vm1982_vm13, %v8141_v13 }
 0x9b4   :  { %5556 = vmatpush1.msk.msra.mxu1 %vm1991_vm1, %v8141_v13  ;;  %vm1978_vm1 = vcmp.eq.s32.totalorder %v6833_v27, %v7880_v59  ;;  %5579 = vmatpush1.msk.msra.mxu0 %vm1981_vm15, %v8141_v13 }
 0x9b5   :  { %5557 = vmatprep.subr.msk.mxu1 %vm1988_vm3, %v8141_v13  ;;  %vm1977_vm3 = vcmp.eq.s32.totalorder %v6833_v27, %v7885_v20  ;;  %5580 = vmatprep.subr.msk.mxu0 %vm1978_vm1, %v8141_v13  ;;  %v4913_v27 = vunpack.c.l.s4 %v6449_v62 }
 0x9b6   :  { %5558 = vmatpush1.msk.msra.mxu1 %vm1987_vm8, %v8141_v13  ;;  %vm1974_vm8 = vcmp.eq.s32.totalorder %v6545_v1, %v7880_v59  ;;  %5581 = vmatpush1.msk.msra.mxu0 %vm1977_vm3, %v8141_v13 }
 0x9b7   :  { %5559 = vmatprep.subr.msk.mxu1 %vm1984_vm7, %v8141_v13  ;;  %vm1973_vm7 = vcmp.eq.s32.totalorder %v6545_v1, %v7885_v20  ;;  %5582 = vmatprep.subr.msk.mxu0 %vm1974_vm8, %v8141_v13  ;;  %v4914_v7 = vunpack.c.0.s8 %v4913_v27 }
 0x9b8   :  { %5560 = vmatpush1.msk.msra.mxu1 %vm1983_vm10, %v8141_v13  ;;  %5583 = vmatpush1.msk.msra.mxu0 %vm1973_vm7, %v8141_v13 }
 0x9b9   :  { %5561 = vmatprep.subr.msk.mxu1 %vm1980_vm12, %v8141_v13 }
 0x9ba   :  { %5562 = vmatpush1.msk.msra.mxu1 %vm1979_vm14, %v8141_v13 }
 0x9bb   :  { %5563 = vmatprep.subr.msk.mxu1 %vm1976_vm0, %v8141_v13 }
 0x9bc   :  { %5564 = vmatpush1.msk.msra.mxu1 %vm1975_vm2, %v8141_v13 }
 0x9bd   :  { %5565 = vmatprep.subr.msk.mxu1 %vm1972_vm5, %v8141_v13 }
 0x9be   :  { %5566 = vmatpush1.msk.msra.mxu1 %vm1971_vm4, %v8141_v13  ;;  %v4917_v13 = vsub.s32 %v4914_v7, %v6545_v1 }
 0xa6f   :  { %v4756_v41 = vpop.f32.mrf.mxu1 }
 0xa70   :  { %v4757_v45 = vadd.f32 %v5549_v2, %v4756_v41 }
 0xa71   :  { %v6120_v48 = vpop.f32.mrf.mxu1 }
 0xa72   :  { %6327 = vtanh.f32 %v4757_v45 }
 0xa7f   :  { %v6328_v51 = vpop.eup %6327 }
 0xa80   :  { %5567 = vmatmul.mubr.msk.f32.vlgmr.msra.gmra.mxu1 %vm4603_vm6, %v6328_v51  ;;  %5584 = vmatmul.mubr.msk.f32.vlgmr.msra.gmra.mxu0 %vm4603_vm6, %v6328_v51 }
 0xb40   :  { %v4830_v3 = vpop.f32.mrf.mxu1  ;;  %v4901_v58 = vpop.f32.mrf.mxu0 }
 0xb42   :  { %v4832_v30 = vpop.f32.mrf.mxu1  ;;  %v4903_v25 = vpop.f32.mrf.mxu0 }
 0xb43   :  { %v4910_v28 = vcombine.low %v4830_v3, %v4832_v30  ;;  %v4911_v29 = vcombine.low %v4901_v58, %v4903_v25 }
 0xb45   :  { %v4918_v33 = vrot.slane %v4910_v28, %v4917_v13  ;;  %v4925_v32 = vrot.slane %v4911_v29, %v4917_v13 }
 0xb47   :  { %v4926_v22 = vcombine.low %v4918_v33, %v4925_v32  ;;  %v4927_v37 = vcombine.high %v4918_v33, %v4925_v32 }
 0xb49   :  { %v4934_v38 = vrot.slane %v4926_v22, %v4917_v13  ;;  %v4941_v42 = vrot.slane %v4927_v37, %v4917_v13 }
 0xb4b   :  { %v4945_v52 = vrot.slane %v4934_v38, %v7025_v44  ;;  %v4949_v54 = vrot.slane %v4934_v38, %v4948_v61  ;;  %v4953_v12 = vrot.slane %v4934_v38, %v4952_v14  ;;  %v4957_v31 = vrot.slane %v4934_v38, %v4956_v34 }
 0xb4c   :  { %v4961_v6 = vrot.slane %v4941_v42, %v7025_v44  ;;  %v4965_v19 = vrot.slane %v4941_v42, %v4948_v61  ;;  %v4969_v0 = vrot.slane %v4941_v42, %v4952_v14  ;;  %v4973_v49 = vrot.slane %v4941_v42, %v4956_v34 }
 0xb4d   :  { %v4982_v39 = vmul.f32 %v4945_v52, %v7799_v4  ;;  %v4983_v50 = vmul.f32 %v4949_v54, %v7805_v26  ;;  %v4984_v1 = vmul.f32 %v4953_v12, %v7801_v5  ;;  %v4985_v18 = vmul.f32 %v4957_v31, %v7807_v36  ;;  %v8186_v5 = vld [vmem:[#allocation24_spill] sm:$0xff]  ;;  %v8187_v36 = vld [vmem:[#allocation25_spill] sm:$0xff] }
 0xb4e   :  { %v4986_v63 = vmul.f32 %v4961_v6, %v7813_v40  ;;  %v4987_v8 = vmul.f32 %v4965_v19, %v7821_v46  ;;  %v4988_v15 = vmul.f32 %v4969_v0, %v7815_v43  ;;  %v4989_v44 = vmul.f32 %v4973_v49, %v7823_v35  ;;  %v8188_v40 = vld [vmem:[#allocation28_spill] sm:$0xff]  ;;  %v8189_v46 = vld [vmem:[#allocation29_spill] sm:$0xff] }
 0xb4f   :  { %v4990_v9 = vadd.f32 %v4982_v39, %v8182_v47  ;;  %v4991_v10 = vadd.f32 %v4983_v50, %v8183_v55  ;;  %v4992_v4 = vadd.f32 %v4984_v1, %v8184_v16  ;;  %v4993_v26 = vadd.f32 %v4985_v18, %v8185_v56 }
 0xb50   :  { %v4994_v21 = vadd.f32 %v4986_v63, %v8186_v5  ;;  %v4995_v11 = vadd.f32 %v4987_v8, %v8187_v36  ;;  %v4996_v23 = vadd.f32 %v4988_v15, %v8188_v40  ;;  %v4997_v24 = vadd.f32 %v4989_v44, %v8189_v46 }
 0xb51   :  { %4998 = vst [vmem:[#allocation10] sm:$0xff] %v4990_v9  ;;  %4999 = vst [vmem:[#allocation10 + $0x8] sm:$0xff] %v4991_v10 }
 0xb52   :  { %5000 = vst [vmem:[#allocation10 + $0x10] sm:$0xff] %v4992_v4  ;;  %5001 = vst [vmem:[#allocation10 + $0x18] sm:$0xff] %v4993_v26 }
 0xb53   :  { %5002 = vst [vmem:[#allocation10 + $0x20] sm:$0xff] %v4994_v21  ;;  %5003 = vst [vmem:[#allocation10 + $0x28] sm:$0xff] %v4995_v11 }
 0xb54   :  { %5004 = vst [vmem:[#allocation10 + $0x30] sm:$0xff] %v4996_v23  ;;  %5005 = vst [vmem:[#allocation10 + $0x38] sm:$0xff] %v4997_v24 }
 0xb55   :  { %6420 = shalt.err (!%p6417_p10)
}
 0xb56   :  { %s6451_s19 = smov 512   ;;  %s6452_s4 = smov 32  }
 0xb57   :  { %5017 = dma.vmem_to_hbm [thread:$0]  %s5012_s6, 1024, %s8028_s15, [#allocation4], %s6451_s19, %s6451_s19, %s6452_s4  }
 0xb58   :  { %6435 = dma.done.wait [#allocation4], 1024  }
 0xb59   :  { %6436 = vsyncadd [#allocation4], 4294966272 }
 0xb5a   :  { %5021 = vsyncpa [#allocation3], 1 }
 0xb5b   :  { %5022 = vsyncpa [#allocation6], 1 }
 0xb5c   :  { %5023 = vsyncpa [#allocation9], 1 }
 0xb5d   :  { %5024 = vsyncpa [#allocation4], 1 }

</bundles_post_ra>
